<compile_context>
chip_gen: v7x
topology: tpu7x:2x2x1
jax: 0.10.0
libtpu: 0.0.40
codegen_flags: <defaults>
</compile_context>

<pallas_src>
import functools

import jax
import jax.numpy as jnp
import numpy as np
from jax.experimental import pallas as pl
from jax.experimental.pallas import tpu as pltpu


# --------------------------------------------------------------------------
# host-side constant builders (pure numpy; no per-call XLA work for these)
# --------------------------------------------------------------------------
def _bilinear_matrix(out_size, in_size):
    """(out_size, in_size) interpolation matrix, align_corners=True semantics."""
    if in_size == 1:
        return np.ones((out_size, 1), np.float64)
    src = np.arange(out_size, dtype=np.float64) * (in_size - 1) / max(out_size - 1, 1)
    i0 = np.clip(np.floor(src).astype(np.int64), 0, in_size - 1)
    i1 = np.minimum(i0 + 1, in_size - 1)
    w1 = src - i0
    m = np.zeros((out_size, in_size), np.float64)
    m[np.arange(out_size), i0] += 1.0 - w1
    m[np.arange(out_size), i1] += w1
    return m


def _bilinear_rows(out_size, in_size):
    """Per-output-row (j0, j1, alpha) for align_corners bilinear along one axis."""
    rows = []
    for i in range(out_size):
        if in_size == 1:
            rows.append((0, 0, 0.0))
            continue
        src = i * (in_size - 1) / max(out_size - 1, 1)
        j0 = int(np.clip(np.floor(src), 0, in_size - 1))
        j1 = min(j0 + 1, in_size - 1)
        rows.append((j0, j1, float(src - j0)))
    return tuple(rows)


def _conv3x3_tap_masks(h, w):
    """(9, h*w) 0/1 masks: validity of each 3x3 tap under zero ('SAME') padding."""
    m = np.zeros((9, h, w), np.float32)
    for ky in range(3):
        for kx in range(3):
            dy, dx = ky - 1, kx - 1
            ys = slice(max(0, -dy), h - max(0, dy))
            xs = slice(max(0, -dx), w - max(0, dx))
            m[ky * 3 + kx, ys, xs] = 1.0
    return m.reshape(9, h * w)


def _fold_conv1x1_into_3x3(w1, b1, w3, cc):
    """Compose conv3x3 o conv1x1 into one stacked (cc, 9*cin + 9) weight.

    Columns [k*cin:(k+1)*cin] = w3[k] @ w1 (tap k); columns [9*cin + k] = w3[k] @ b1
    (the 1x1 bias routed through tap k -- multiplied in-kernel by tap k's validity
    mask, which makes the boundary/zero-padding handling exact).
    """
    cin = w1.shape[1]
    hi = jax.lax.Precision.HIGHEST
    w3t = jnp.transpose(w3, (2, 3, 0, 1)).reshape(9, cc, cc)        # k = ky*3 + kx
    wx = jnp.einsum("koc,ci->koi", w3t, w1, precision=hi)           # (9, cc, cin)
    vb = jnp.einsum("koc,c->ko", w3t, b1, precision=hi)             # (9, cc)
    return jnp.concatenate(
        [jnp.transpose(wx, (1, 0, 2)).reshape(cc, 9 * cin), vb.T], axis=1)


# --------------------------------------------------------------------------
# fused kernel
# --------------------------------------------------------------------------
def _edge_guidance_kernel(e1_ref, e2_ref, ws1_ref, b31_ref, ws2_ref, b32_ref,
                          awt2_ref, masks_ref, wf_ref, bf_ref,
                          awt_out_ref, ah_out_ref,
                          cat_ref, eup_ref, *,
                          img_h, img_w, low_h, height_lerp):
    """Per-batch: branch1 conv, branch2 (separable upsample + conv), concat,
    conv_final and the 256x256 edge upsample -- all fused, lane-dense layout
    (channels on sublanes, flattened H*W on lanes)."""
    H, W = img_h, img_w
    HW = H * W
    CC = b31_ref.shape[0]                      # 64
    H2 = low_h
    C2 = e2_ref.shape[1] // H2

    def conv3x3_folded(x, ws_ref, b3_ref):
        # x: (Cin, HW).  Stack the 9 masked/shifted slabs plus the 9 tap masks
        # (bias rows) and run ONE MXU matmul with K = 9*Cin + 9.
        slabs = []
        for k in range(9):
            dy, dx = k // 3 - 1, k % 3 - 1
            off = dy * W + dx                                   # flattened offset
            s = x if off == 0 else pltpu.roll(x, shift=(-off) % HW, axis=1)
            if off != 0:
                s = s * masks_ref[k:k + 1, :]                   # zero wrapped pixels
            slabs.append(s)
        slabs.append(masks_ref[...])                            # 1x1-bias routing rows
        stacked = jnp.concatenate(slabs, axis=0)                # (9*Cin + 9, HW)
        return jnp.dot(ws_ref[...], stacked,
                       preferred_element_type=jnp.float32) + b3_ref[...]   # (CC, HW)

    # ---- branch 1 (short x1 live range: cat write + edge partial right away) ----
    x1 = conv3x3_folded(e1_ref[0], ws1_ref, b31_ref)            # (CC, HW)
    cat_ref[0, :CC, :] = x1
    edge = jnp.dot(wf_ref[:, :CC], x1, preferred_element_type=jnp.float32)   # (1, HW)

    # ---- branch 2: separable bilinear upsample of e_block2 (C2 channels) --------
    # width first: one lane-dense matmul at low height
    t = jnp.dot(e2_ref[0], awt2_ref[...],
                preferred_element_type=jnp.float32)             # (C2*H2, W)
    t3 = t.reshape(C2, H2, W)
    # height: per-output-row lerp of <=2 source rows (host-baked sparse weights)
    rows = []
    for (j0, j1, a) in height_lerp:
        r0 = t3[:, j0, :]                                       # (C2, W)
        if j1 == j0 or a == 0.0:
            rows.append(r0)
        else:
            rows.append(r0 * (1.0 - a) + t3[:, j1, :] * a)
    e2_up = jnp.concatenate(rows, axis=1)                       # (C2, HW) row-major

    x2 = conv3x3_folded(e2_up, ws2_ref, b32_ref)                # (CC, HW)
    cat_ref[0, CC:, :] = x2
    edge = (edge
            + jnp.dot(wf_ref[:, CC:], x2, preferred_element_type=jnp.float32)
            + bf_ref[...])                                      # (1, HW)

    # ---- fused 256x256 edge upsample (width first -> lane-dense (H, 256)) -------
    e2d = jnp.concatenate([edge[:, h * W:(h + 1) * W] for h in range(H)],
                          axis=0)                               # (H, W)
    tmp = jnp.dot(e2d, awt_out_ref[...],
                  preferred_element_type=jnp.float32)           # (H, 256)
    eup_ref[0, 0, :, :] = jnp.dot(ah_out_ref[...], tmp,
                                  preferred_element_type=jnp.float32)  # (256, 256)


# --------------------------------------------------------------------------
# wrapper
# --------------------------------------------------------------------------
def edge_guidance_forward(e_block1, e_block2, params):
    B, C1, H, W = e_block1.shape
    _, C2, H2, W2 = e_block2.shape
    CC = 64
    HW = H * W
    OUT_H = OUT_W = 256

    # host-side constants
    tap_masks = jnp.asarray(_conv3x3_tap_masks(H, W))                         # (9, HW)
    awt2 = jnp.asarray(_bilinear_matrix(W, W2).T.astype(np.float32))          # (W2, W)
    height_lerp = _bilinear_rows(H, H2)                                       # tuple
    awt_out = jnp.asarray(_bilinear_matrix(OUT_W, W).T.astype(np.float32))    # (W, 256)
    ah_out = jnp.asarray(_bilinear_matrix(OUT_H, H).astype(np.float32))       # (256, H)

    # fold 1x1 convs into the 3x3 convs (Cin1=4, Cin2=8 < 64 here; see NOTE above)
    ws1 = _fold_conv1x1_into_3x3(params["conv1_1x1_w"].reshape(CC, C1),
                                 params["conv1_1x1_b"].reshape(CC),
                                 params["conv1_3x3_w"], CC)                   # (64, 9*C1+9)
    b31 = params["conv1_3x3_b"].reshape(CC, 1)
    ws2 = _fold_conv1x1_into_3x3(params["conv2_1x1_w"].reshape(CC, C2),
                                 params["conv2_1x1_b"].reshape(CC),
                                 params["conv2_3x3_w"], CC)                   # (64, 9*C2+9)
    b32 = params["conv2_3x3_b"].reshape(CC, 1)
    wf = params["conv_final_w"].reshape(1, 2 * CC)
    bf = params["conv_final_b"].reshape(1, 1)

    e1_flat = e_block1.reshape(B, C1, HW)          # metadata-only reshapes
    e2_rows = e_block2.reshape(B, C2 * H2, W2)

    full2 = lambda b: (0, 0)
    in_block_shapes = [
        (1, C1, HW), (1, C2 * H2, W2),
        (CC, 9 * C1 + 9), (CC, 1), (CC, 9 * C2 + 9), (CC, 1),
        (W2, W), (9, HW), (1, 2 * CC), (1, 1), (W, OUT_W), (OUT_H, H),
    ]
    out_block_shapes = [(1, 2 * CC, HW), (1, 1, OUT_H, OUT_W)]

    # explicit, generously-padded VMEM budget (reviewer request); 32 MiB floor keeps
    # v5e's low default scoped limit from biting, 64 MiB cap respects v7x physical.
    blk_bytes = sum(int(np.prod(s)) * 4 for s in in_block_shapes + out_block_shapes)
    vmem_limit = int(min(max(6 * blk_bytes, 32 * 1024 * 1024), 64 * 1024 * 1024))

    flops_per_batch = (
        2 * CC * (9 * C1 + 9) * HW          # branch-1 fused conv
        + 2 * (C2 * H2) * W2 * W            # width interp matmul
        + 4 * C2 * HW                       # height lerp
        + 2 * CC * (9 * C2 + 9) * HW        # branch-2 fused conv
        + 2 * 2 * CC * HW                   # conv_final
        + 2 * H * W * OUT_W                 # edge width interp
        + 2 * OUT_H * H * OUT_W)            # edge height interp
    bytes_accessed = (B * 4 * (C1 * HW + C2 * H2 * W2 + 2 * CC * HW + OUT_H * OUT_W)
                      + 4 * blk_bytes)
    cost = pl.CostEstimate(flops=int(B * flops_per_batch), transcendentals=0,
                           bytes_accessed=int(bytes_accessed))

    cat_flat, edge_up = pl.pallas_call(
        functools.partial(_edge_guidance_kernel, img_h=H, img_w=W, low_h=H2,
                          height_lerp=height_lerp),
        grid=(B,),
        in_specs=[
            pl.BlockSpec((1, C1, HW), lambda b: (b, 0, 0)),
            pl.BlockSpec((1, C2 * H2, W2), lambda b: (b, 0, 0)),
            pl.BlockSpec((CC, 9 * C1 + 9), full2),
            pl.BlockSpec((CC, 1), full2),
            pl.BlockSpec((CC, 9 * C2 + 9), full2),
            pl.BlockSpec((CC, 1), full2),
            pl.BlockSpec((W2, W), full2),
            pl.BlockSpec((9, HW), full2),
            pl.BlockSpec((1, 2 * CC), full2),
            pl.BlockSpec((1, 1), full2),
            pl.BlockSpec((W, OUT_W), full2),
            pl.BlockSpec((OUT_H, H), full2),
        ],
        out_specs=[
            pl.BlockSpec((1, 2 * CC, HW), lambda b: (b, 0, 0)),
            pl.BlockSpec((1, 1, OUT_H, OUT_W), lambda b: (b, 0, 0, 0)),
        ],
        out_shape=[
            jax.ShapeDtypeStruct((B, 2 * CC, HW), jnp.float32),
            jax.ShapeDtypeStruct((B, 1, OUT_H, OUT_W), jnp.float32),
        ],
        compiler_params=pltpu.CompilerParams(
            dimension_semantics=("parallel",),
            vmem_limit_bytes=vmem_limit),
        cost_estimate=cost,
    )(e1_flat, e2_rows, ws1, b31, ws2, b32, awt2, tap_masks, wf, bf, awt_out, ah_out)

    attention_edge_features = cat_flat.reshape(B, 2 * CC, H, W)   # NCHW like PyTorch
    # TODO(synk): MaxViTBlock-based edge_attention_block is undefined in the spec;
    # returning the pre-attention concatenated features as the first output.
    return attention_edge_features, edge_up


# --------------------------------------------------------------------------
# pure-JAX reference (independent path: lax convs + gather/lerp bilinear)
# --------------------------------------------------------------------------
def _bilinear_resize_ref(x, out_h, out_w):
    B, C, hin, win = x.shape
    ys = jnp.arange(out_h, dtype=jnp.float32) * ((hin - 1) / max(out_h - 1, 1))
    xs = jnp.arange(out_w, dtype=jnp.float32) * ((win - 1) / max(out_w - 1, 1))
    y0 = jnp.clip(jnp.floor(ys).astype(jnp.int32), 0, hin - 1)
    x0 = jnp.clip(jnp.floor(xs).astype(jnp.int32), 0, win - 1)
    y1 = jnp.minimum(y0 + 1, hin - 1)
    x1 = jnp.minimum(x0 + 1, win - 1)
    wy = (ys - y0.astype(jnp.float32))[None, None, :, None]
    wx = (xs - x0.astype(jnp.float32))[None, None, None, :]
    g = lambda yi, xi: x[:, :, yi, :][:, :, :, xi]
    top = g(y0, x0) * (1.0 - wx) + g(y0, x1) * wx
    bot = g(y1, x0) * (1.0 - wx) + g(y1, x1) * wx
    return top * (1.0 - wy) + bot * wy


def _conv2d_ref(x, w, b, pad):
    y = jax.lax.conv_general_dilated(
        x, w, window_strides=(1, 1), padding=pad,
        dimension_numbers=("NCHW", "OIHW", "NCHW"),
        precision=jax.lax.Precision.HIGHEST)
    return y + b.reshape(1, -1, 1, 1)


if __name__ == "__main__":
    B, C_IN1, C_IN2 = 2, 4, 8
    H1 = W1 = 16
    H2 = W2 = 8

    key = jax.random.PRNGKey(0)
    ks = jax.random.split(key, 12)
    e_block1 = jax.random.normal(ks[0], (B, C_IN1, H1, W1), dtype=jnp.float32)
    e_block2 = jax.random.normal(ks[1], (B, C_IN2, H2, W2), dtype=jnp.float32)
    params = dict(
        conv1_1x1_w=jax.random.normal(ks[2], (64, C_IN1, 1, 1), jnp.float32) * 0.1,
        conv1_1x1_b=jax.random.normal(ks[3], (64,), jnp.float32) * 0.1,
        conv1_3x3_w=jax.random.normal(ks[4], (64, 64, 3, 3), jnp.float32) * 0.05,
        conv1_3x3_b=jax.random.normal(ks[5], (64,), jnp.float32) * 0.1,
        conv2_1x1_w=jax.random.normal(ks[6], (64, C_IN2, 1, 1), jnp.float32) * 0.1,
        conv2_1x1_b=jax.random.normal(ks[7], (64,), jnp.float32) * 0.1,
        conv2_3x3_w=jax.random.normal(ks[8], (64, 64, 3, 3), jnp.float32) * 0.05,
        conv2_3x3_b=jax.random.normal(ks[9], (64,), jnp.float32) * 0.1,
        conv_final_w=jax.random.normal(ks[10], (1, 128, 1, 1), jnp.float32) * 0.1,
        conv_final_b=jax.random.normal(ks[11], (1,), jnp.float32) * 0.1,
    )

    fwd = jax.jit(edge_guidance_forward)
    feats, edge_up = fwd(e_block1, e_block2, params)
    feats, edge_up = jax.block_until_ready((feats, edge_up))

    # ---- reference ---------------------------------------------------------
    e2_up = _bilinear_resize_ref(e_block2, H1, W1)
    x1 = _conv2d_ref(e_block1, params["conv1_1x1_w"], params["conv1_1x1_b"], "VALID")
    x1 = _conv2d_ref(x1, params["conv1_3x3_w"], params["conv1_3x3_b"], [(1, 1), (1, 1)])
    x2 = _conv2d_ref(e2_up, params["conv2_1x1_w"], params["conv2_1x1_b"], "VALID")
    x2 = _conv2d_ref(x2, params["conv2_3x3_w"], params["conv2_3x3_b"], [(1, 1), (1, 1)])
    cat_r = jnp.concatenate([x1, x2], axis=1)
    edge_r = _conv2d_ref(cat_r, params["conv_final_w"], params["conv_final_b"], "VALID")
    edge_up_r = _bilinear_resize_ref(edge_r, 256, 256)

    assert feats.shape == (B, 128, H1, W1), feats.shape
    assert edge_up.shape == (B, 1, 256, 256), edge_up.shape
    assert jnp.allclose(feats, cat_r, atol=2e-3, rtol=2e-3), \
        float(jnp.max(jnp.abs(feats - cat_r)))
    assert jnp.allclose(edge_up, edge_up_r, atol=2e-3, rtol=2e-3), \
        float(jnp.max(jnp.abs(edge_up - edge_up_r)))
    print("KERNEL_OK")
</pallas_src>

<mosaic_0001>
module attributes {stable_mosaic.version = 11 : i64} {
  func.func @_edge_guidance_kernel(%arg0: i32, %arg1: memref<1x4x256xf32, #tpu.memory_space<vmem>>, %arg2: memref<1x64x8xf32, #tpu.memory_space<vmem>>, %arg3: memref<64x45xf32, #tpu.memory_space<vmem>>, %arg4: memref<64x1xf32, #tpu.memory_space<vmem>>, %arg5: memref<64x81xf32, #tpu.memory_space<vmem>>, %arg6: memref<64x1xf32, #tpu.memory_space<vmem>>, %arg7: memref<8x16xf32, #tpu.memory_space<vmem>>, %arg8: memref<9x256xf32, #tpu.memory_space<vmem>>, %arg9: memref<1x128xf32, #tpu.memory_space<vmem>>, %arg10: memref<1x1xf32, #tpu.memory_space<vmem>>, %arg11: memref<16x256xf32, #tpu.memory_space<vmem>>, %arg12: memref<256x16xf32, #tpu.memory_space<vmem>>, %arg13: memref<1x128x256xf32, #tpu.memory_space<vmem>>, %arg14: memref<1x1x256x256xf32, #tpu.memory_space<vmem>>) attributes {dimension_semantics = [#tpu.dimension_semantics<parallel>], iteration_bounds = array<i64: 2>, scalar_prefetch = 0 : i64, scratch_operands = 0 : i64, tpu.core_type = #tpu.core_type<tc>, window_params = [{transform_indices = @transform_0, window_bounds = array<i64: 1, 4, 256>}, {transform_indices = @transform_1, window_bounds = array<i64: 1, 64, 8>}, {pipeline_mode = #tpu.pipeline_mode<synchronous>, transform_indices = @transform_2, window_bounds = array<i64: 64, 45>}, {pipeline_mode = #tpu.pipeline_mode<synchronous>, transform_indices = @transform_3, window_bounds = array<i64: 64, 1>}, {pipeline_mode = #tpu.pipeline_mode<synchronous>, transform_indices = @transform_4, window_bounds = array<i64: 64, 81>}, {pipeline_mode = #tpu.pipeline_mode<synchronous>, transform_indices = @transform_5, window_bounds = array<i64: 64, 1>}, {pipeline_mode = #tpu.pipeline_mode<synchronous>, transform_indices = @transform_6, window_bounds = array<i64: 8, 16>}, {pipeline_mode = #tpu.pipeline_mode<synchronous>, transform_indices = @transform_7, window_bounds = array<i64: 9, 256>}, {pipeline_mode = #tpu.pipeline_mode<synchronous>, transform_indices = @transform_8, window_bounds = array<i64: 1, 128>}, {pipeline_mode = #tpu.pipeline_mode<synchronous>, transform_indices = @transform_9, window_bounds = array<i64: 1, 1>}, {pipeline_mode = #tpu.pipeline_mode<synchronous>, transform_indices = @transform_10, window_bounds = array<i64: 16, 256>}, {pipeline_mode = #tpu.pipeline_mode<synchronous>, transform_indices = @transform_11, window_bounds = array<i64: 256, 16>}, {transform_indices = @transform_12, window_bounds = array<i64: 1, 128, 256>}, {transform_indices = @transform_13, window_bounds = array<i64: 1, 1, 256, 256>}]} {
    %c0 = arith.constant 0 : index
    %c0_0 = arith.constant 0 : index
    %c0_1 = arith.constant 0 : index
    %0 = vector.load %arg1[%c0, %c0_0, %c0_1] : memref<1x4x256xf32, #tpu.memory_space<vmem>>, vector<1x4x256xf32>
    %1 = vector.shape_cast %0 : vector<1x4x256xf32> to vector<4x256xf32>
    %c17_i32 = arith.constant 17 : i32
    %2 = tpu.dynamic_rotate %1 by %c17_i32 dim 1 : vector<4x256xf32>, i32 -> vector<4x256xf32>
    %c0_2 = arith.constant 0 : index
    %c0_3 = arith.constant 0 : index
    %3 = vector.load %arg8[%c0_2, %c0_3] : memref<9x256xf32, #tpu.memory_space<vmem>>, vector<1x256xf32>
    %4 = vector.broadcast %3 : vector<1x256xf32> to vector<4x256xf32>
    %5 = arith.mulf %2, %4 : vector<4x256xf32>
    %c16_i32 = arith.constant 16 : i32
    %6 = tpu.dynamic_rotate %1 by %c16_i32 dim 1 : vector<4x256xf32>, i32 -> vector<4x256xf32>
    %c1 = arith.constant 1 : index
    %c0_4 = arith.constant 0 : index
    %7 = vector.load %arg8[%c1, %c0_4] : memref<9x256xf32, #tpu.memory_space<vmem>>, vector<1x256xf32>
    %8 = vector.broadcast %7 : vector<1x256xf32> to vector<4x256xf32>
    %9 = arith.mulf %6, %8 : vector<4x256xf32>
    %c15_i32 = arith.constant 15 : i32
    %10 = tpu.dynamic_rotate %1 by %c15_i32 dim 1 : vector<4x256xf32>, i32 -> vector<4x256xf32>
    %c2 = arith.constant 2 : index
    %c0_5 = arith.constant 0 : index
    %11 = vector.load %arg8[%c2, %c0_5] : memref<9x256xf32, #tpu.memory_space<vmem>>, vector<1x256xf32>
    %12 = vector.broadcast %11 : vector<1x256xf32> to vector<4x256xf32>
    %13 = arith.mulf %10, %12 : vector<4x256xf32>
    %c1_i32 = arith.constant 1 : i32
    %14 = tpu.dynamic_rotate %1 by %c1_i32 dim 1 : vector<4x256xf32>, i32 -> vector<4x256xf32>
    %c3 = arith.constant 3 : index
    %c0_6 = arith.constant 0 : index
    %15 = vector.load %arg8[%c3, %c0_6] : memref<9x256xf32, #tpu.memory_space<vmem>>, vector<1x256xf32>
    %16 = vector.broadcast %15 : vector<1x256xf32> to vector<4x256xf32>
    %17 = arith.mulf %14, %16 : vector<4x256xf32>
    %c255_i32 = arith.constant 255 : i32
    %18 = tpu.dynamic_rotate %1 by %c255_i32 dim 1 : vector<4x256xf32>, i32 -> vector<4x256xf32>
    %c5 = arith.constant 5 : index
    %c0_7 = arith.constant 0 : index
    %19 = vector.load %arg8[%c5, %c0_7] : memref<9x256xf32, #tpu.memory_space<vmem>>, vector<1x256xf32>
    %20 = vector.broadcast %19 : vector<1x256xf32> to vector<4x256xf32>
    %21 = arith.mulf %18, %20 : vector<4x256xf32>
    %c241_i32 = arith.constant 241 : i32
    %22 = tpu.dynamic_rotate %1 by %c241_i32 dim 1 : vector<4x256xf32>, i32 -> vector<4x256xf32>
    %c6 = arith.constant 6 : index
    %c0_8 = arith.constant 0 : index
    %23 = vector.load %arg8[%c6, %c0_8] : memref<9x256xf32, #tpu.memory_space<vmem>>, vector<1x256xf32>
    %24 = vector.broadcast %23 : vector<1x256xf32> to vector<4x256xf32>
    %25 = arith.mulf %22, %24 : vector<4x256xf32>
    %c240_i32 = arith.constant 240 : i32
    %26 = tpu.dynamic_rotate %1 by %c240_i32 dim 1 : vector<4x256xf32>, i32 -> vector<4x256xf32>
    %c7 = arith.constant 7 : index
    %c0_9 = arith.constant 0 : index
    %27 = vector.load %arg8[%c7, %c0_9] : memref<9x256xf32, #tpu.memory_space<vmem>>, vector<1x256xf32>
    %28 = vector.broadcast %27 : vector<1x256xf32> to vector<4x256xf32>
    %29 = arith.mulf %26, %28 : vector<4x256xf32>
    %c239_i32 = arith.constant 239 : i32
    %30 = tpu.dynamic_rotate %1 by %c239_i32 dim 1 : vector<4x256xf32>, i32 -> vector<4x256xf32>
    %c8 = arith.constant 8 : index
    %c0_10 = arith.constant 0 : index
    %31 = vector.load %arg8[%c8, %c0_10] : memref<9x256xf32, #tpu.memory_space<vmem>>, vector<1x256xf32>
    %32 = vector.broadcast %31 : vector<1x256xf32> to vector<4x256xf32>
    %33 = arith.mulf %30, %32 : vector<4x256xf32>
    %c0_11 = arith.constant 0 : index
    %c0_12 = arith.constant 0 : index
    %34 = vector.load %arg8[%c0_11, %c0_12] : memref<9x256xf32, #tpu.memory_space<vmem>>, vector<9x256xf32>
    %35 = tpu.concatenate %5, %9, %13, %17, %1, %21, %25, %29, %33, %34 in 0 : vector<4x256xf32>, vector<4x256xf32>, vector<4x256xf32>, vector<4x256xf32>, vector<4x256xf32>, vector<4x256xf32>, vector<4x256xf32>, vector<4x256xf32>, vector<4x256xf32>, vector<9x256xf32> -> vector<45x256xf32>
    %c0_13 = arith.constant 0 : index
    %c0_14 = arith.constant 0 : index
    %36 = vector.load %arg3[%c0_13, %c0_14] : memref<64x45xf32, #tpu.memory_space<vmem>>, vector<64x45xf32>
    %cst = arith.constant dense<0.000000e+00> : vector<64x256xf32>
    %37 = tpu.matmul %36, %35, %cst {dimension_numbers = #tpu.dot_dimension_numbers<[1], [0], [0], [1], [0, 0, 1, 1], [], []>} : vector<64x45xf32>, vector<45x256xf32>, vector<64x256xf32> -> vector<64x256xf32>
    %c0_15 = arith.constant 0 : index
    %c0_16 = arith.constant 0 : index
    %38 = vector.load %arg4[%c0_15, %c0_16] : memref<64x1xf32, #tpu.memory_space<vmem>>, vector<64x1xf32>
    %39 = vector.broadcast %38 : vector<64x1xf32> to vector<64x256xf32>
    %40 = arith.addf %37, %39 : vector<64x256xf32>
    %c0_17 = arith.constant 0 : index
    %c0_18 = arith.constant 0 : index
    %c0_19 = arith.constant 0 : index
    %41 = vector.load %arg13[%c0_17, %c0_18, %c0_19] : memref<1x128x256xf32, #tpu.memory_space<vmem>>, vector<1x64x256xf32>
    %42 = vector.shape_cast %41 : vector<1x64x256xf32> to vector<64x256xf32>
    %43 = vector.shape_cast %40 : vector<64x256xf32> to vector<1x64x256xf32>
    tpu.vector_store %arg13[%c0_17, %c0_18, %c0_19], %43 {strides = array<i32>} : memref<1x128x256xf32, #tpu.memory_space<vmem>>, vector<1x64x256xf32>,
    %c0_20 = arith.constant 0 : index
    %c0_21 = arith.constant 0 : index
    %44 = vector.load %arg9[%c0_20, %c0_21] : memref<1x128xf32, #tpu.memory_space<vmem>>, vector<1x64xf32>
    %cst_22 = arith.constant dense<0.000000e+00> : vector<1x256xf32>
    %45 = tpu.matmul %44, %40, %cst_22 {dimension_numbers = #tpu.dot_dimension_numbers<[1], [0], [0], [1], [0, 0, 1, 1], [], []>} : vector<1x64xf32>, vector<64x256xf32>, vector<1x256xf32> -> vector<1x256xf32>
    %c0_23 = arith.constant 0 : index
    %c0_24 = arith.constant 0 : index
    %c0_25 = arith.constant 0 : index
    %46 = vector.load %arg2[%c0_23, %c0_24, %c0_25] : memref<1x64x8xf32, #tpu.memory_space<vmem>>, vector<1x64x8xf32>
    %47 = vector.shape_cast %46 : vector<1x64x8xf32> to vector<64x8xf32>
    %c0_26 = arith.constant 0 : index
    %c0_27 = arith.constant 0 : index
    %48 = vector.load %arg7[%c0_26, %c0_27] : memref<8x16xf32, #tpu.memory_space<vmem>>, vector<8x16xf32>
    %cst_28 = arith.constant dense<0.000000e+00> : vector<64x16xf32>
    %49 = tpu.matmul %47, %48, %cst_28 {dimension_numbers = #tpu.dot_dimension_numbers<[1], [0], [0], [1], [0, 0, 1, 1], [], []>} : vector<64x8xf32>, vector<8x16xf32>, vector<64x16xf32> -> vector<64x16xf32>
    %50 = vector.shape_cast %49 : vector<64x16xf32> to vector<8x8x16xf32>
    %51 = vector.extract_strided_slice %50 {offsets = [0, 0, 0], sizes = [8, 1, 16], strides = [1, 1, 1]} : vector<8x8x16xf32> to vector<8x1x16xf32>
    %52 = vector.shape_cast %51 : vector<8x1x16xf32> to vector<8x16xf32>
    %53 = vector.extract_strided_slice %50 {offsets = [0, 0, 0], sizes = [8, 1, 16], strides = [1, 1, 1]} : vector<8x8x16xf32> to vector<8x1x16xf32>
    %54 = vector.shape_cast %53 : vector<8x1x16xf32> to vector<8x16xf32>
    %cst_29 = arith.constant 0.533333361 : f32
    %55 = vector.broadcast %cst_29 : f32 to vector<8x16xf32>
    %56 = arith.mulf %54, %55 : vector<8x16xf32>
    %57 = vector.extract_strided_slice %50 {offsets = [0, 1, 0], sizes = [8, 1, 16], strides = [1, 1, 1]} : vector<8x8x16xf32> to vector<8x1x16xf32>
    %58 = vector.shape_cast %57 : vector<8x1x16xf32> to vector<8x16xf32>
    %cst_30 = arith.constant 0.466666669 : f32
    %59 = vector.broadcast %cst_30 : f32 to vector<8x16xf32>
    %60 = arith.mulf %58, %59 : vector<8x16xf32>
    %61 = arith.addf %56, %60 : vector<8x16xf32>
    %62 = vector.extract_strided_slice %50 {offsets = [0, 0, 0], sizes = [8, 1, 16], strides = [1, 1, 1]} : vector<8x8x16xf32> to vector<8x1x16xf32>
    %63 = vector.shape_cast %62 : vector<8x1x16xf32> to vector<8x16xf32>
    %cst_31 = arith.constant 0.0666666701 : f32
    %64 = vector.broadcast %cst_31 : f32 to vector<8x16xf32>
    %65 = arith.mulf %63, %64 : vector<8x16xf32>
    %66 = vector.extract_strided_slice %50 {offsets = [0, 1, 0], sizes = [8, 1, 16], strides = [1, 1, 1]} : vector<8x8x16xf32> to vector<8x1x16xf32>
    %67 = vector.shape_cast %66 : vector<8x1x16xf32> to vector<8x16xf32>
    %cst_32 = arith.constant 0.933333337 : f32
    %68 = vector.broadcast %cst_32 : f32 to vector<8x16xf32>
    %69 = arith.mulf %67, %68 : vector<8x16xf32>
    %70 = arith.addf %65, %69 : vector<8x16xf32>
    %71 = vector.extract_strided_slice %50 {offsets = [0, 1, 0], sizes = [8, 1, 16], strides = [1, 1, 1]} : vector<8x8x16xf32> to vector<8x1x16xf32>
    %72 = vector.shape_cast %71 : vector<8x1x16xf32> to vector<8x16xf32>
    %cst_33 = arith.constant 6.000000e-01 : f32
    %73 = vector.broadcast %cst_33 : f32 to vector<8x16xf32>
    %74 = arith.mulf %72, %73 : vector<8x16xf32>
    %75 = vector.extract_strided_slice %50 {offsets = [0, 2, 0], sizes = [8, 1, 16], strides = [1, 1, 1]} : vector<8x8x16xf32> to vector<8x1x16xf32>
    %76 = vector.shape_cast %75 : vector<8x1x16xf32> to vector<8x16xf32>
    %cst_34 = arith.constant 4.000000e-01 : f32
    %77 = vector.broadcast %cst_34 : f32 to vector<8x16xf32>
    %78 = arith.mulf %76, %77 : vector<8x16xf32>
    %79 = arith.addf %74, %78 : vector<8x16xf32>
    %80 = vector.extract_strided_slice %50 {offsets = [0, 1, 0], sizes = [8, 1, 16], strides = [1, 1, 1]} : vector<8x8x16xf32> to vector<8x1x16xf32>
    %81 = vector.shape_cast %80 : vector<8x1x16xf32> to vector<8x16xf32>
    %cst_35 = arith.constant 0.13333334 : f32
    %82 = vector.broadcast %cst_35 : f32 to vector<8x16xf32>
    %83 = arith.mulf %81, %82 : vector<8x16xf32>
    %84 = vector.extract_strided_slice %50 {offsets = [0, 2, 0], sizes = [8, 1, 16], strides = [1, 1, 1]} : vector<8x8x16xf32> to vector<8x1x16xf32>
    %85 = vector.shape_cast %84 : vector<8x1x16xf32> to vector<8x16xf32>
    %cst_36 = arith.constant 0.866666674 : f32
    %86 = vector.broadcast %cst_36 : f32 to vector<8x16xf32>
    %87 = arith.mulf %85, %86 : vector<8x16xf32>
    %88 = arith.addf %83, %87 : vector<8x16xf32>
    %89 = vector.extract_strided_slice %50 {offsets = [0, 2, 0], sizes = [8, 1, 16], strides = [1, 1, 1]} : vector<8x8x16xf32> to vector<8x1x16xf32>
    %90 = vector.shape_cast %89 : vector<8x1x16xf32> to vector<8x16xf32>
    %cst_37 = arith.constant 0.666666686 : f32
    %91 = vector.broadcast %cst_37 : f32 to vector<8x16xf32>
    %92 = arith.mulf %90, %91 : vector<8x16xf32>
    %93 = vector.extract_strided_slice %50 {offsets = [0, 3, 0], sizes = [8, 1, 16], strides = [1, 1, 1]} : vector<8x8x16xf32> to vector<8x1x16xf32>
    %94 = vector.shape_cast %93 : vector<8x1x16xf32> to vector<8x16xf32>
    %cst_38 = arith.constant 0.333333343 : f32
    %95 = vector.broadcast %cst_38 : f32 to vector<8x16xf32>
    %96 = arith.mulf %94, %95 : vector<8x16xf32>
    %97 = arith.addf %92, %96 : vector<8x16xf32>
    %98 = vector.extract_strided_slice %50 {offsets = [0, 2, 0], sizes = [8, 1, 16], strides = [1, 1, 1]} : vector<8x8x16xf32> to vector<8x1x16xf32>
    %99 = vector.shape_cast %98 : vector<8x1x16xf32> to vector<8x16xf32>
    %cst_39 = arith.constant 2.000000e-01 : f32
    %100 = vector.broadcast %cst_39 : f32 to vector<8x16xf32>
    %101 = arith.mulf %99, %100 : vector<8x16xf32>
    %102 = vector.extract_strided_slice %50 {offsets = [0, 3, 0], sizes = [8, 1, 16], strides = [1, 1, 1]} : vector<8x8x16xf32> to vector<8x1x16xf32>
    %103 = vector.shape_cast %102 : vector<8x1x16xf32> to vector<8x16xf32>
    %cst_40 = arith.constant 8.000000e-01 : f32
    %104 = vector.broadcast %cst_40 : f32 to vector<8x16xf32>
    %105 = arith.mulf %103, %104 : vector<8x16xf32>
    %106 = arith.addf %101, %105 : vector<8x16xf32>
    %107 = vector.extract_strided_slice %50 {offsets = [0, 3, 0], sizes = [8, 1, 16], strides = [1, 1, 1]} : vector<8x8x16xf32> to vector<8x1x16xf32>
    %108 = vector.shape_cast %107 : vector<8x1x16xf32> to vector<8x16xf32>
    %cst_41 = arith.constant 0.733333349 : f32
    %109 = vector.broadcast %cst_41 : f32 to vector<8x16xf32>
    %110 = arith.mulf %108, %109 : vector<8x16xf32>
    %111 = vector.extract_strided_slice %50 {offsets = [0, 4, 0], sizes = [8, 1, 16], strides = [1, 1, 1]} : vector<8x8x16xf32> to vector<8x1x16xf32>
    %112 = vector.shape_cast %111 : vector<8x1x16xf32> to vector<8x16xf32>
    %cst_42 = arith.constant 0.266666681 : f32
    %113 = vector.broadcast %cst_42 : f32 to vector<8x16xf32>
    %114 = arith.mulf %112, %113 : vector<8x16xf32>
    %115 = arith.addf %110, %114 : vector<8x16xf32>
    %116 = vector.extract_strided_slice %50 {offsets = [0, 3, 0], sizes = [8, 1, 16], strides = [1, 1, 1]} : vector<8x8x16xf32> to vector<8x1x16xf32>
    %117 = vector.shape_cast %116 : vector<8x1x16xf32> to vector<8x16xf32>
    %cst_43 = arith.constant 0.266666681 : f32
    %118 = vector.broadcast %cst_43 : f32 to vector<8x16xf32>
    %119 = arith.mulf %117, %118 : vector<8x16xf32>
    %120 = vector.extract_strided_slice %50 {offsets = [0, 4, 0], sizes = [8, 1, 16], strides = [1, 1, 1]} : vector<8x8x16xf32> to vector<8x1x16xf32>
    %121 = vector.shape_cast %120 : vector<8x1x16xf32> to vector<8x16xf32>
    %cst_44 = arith.constant 0.733333349 : f32
    %122 = vector.broadcast %cst_44 : f32 to vector<8x16xf32>
    %123 = arith.mulf %121, %122 : vector<8x16xf32>
    %124 = arith.addf %119, %123 : vector<8x16xf32>
    %125 = vector.extract_strided_slice %50 {offsets = [0, 4, 0], sizes = [8, 1, 16], strides = [1, 1, 1]} : vector<8x8x16xf32> to vector<8x1x16xf32>
    %126 = vector.shape_cast %125 : vector<8x1x16xf32> to vector<8x16xf32>
    %cst_45 = arith.constant 8.000000e-01 : f32
    %127 = vector.broadcast %cst_45 : f32 to vector<8x16xf32>
    %128 = arith.mulf %126, %127 : vector<8x16xf32>
    %129 = vector.extract_strided_slice %50 {offsets = [0, 5, 0], sizes = [8, 1, 16], strides = [1, 1, 1]} : vector<8x8x16xf32> to vector<8x1x16xf32>
    %130 = vector.shape_cast %129 : vector<8x1x16xf32> to vector<8x16xf32>
    %cst_46 = arith.constant 2.000000e-01 : f32
    %131 = vector.broadcast %cst_46 : f32 to vector<8x16xf32>
    %132 = arith.mulf %130, %131 : vector<8x16xf32>
    %133 = arith.addf %128, %132 : vector<8x16xf32>
    %134 = vector.extract_strided_slice %50 {offsets = [0, 4, 0], sizes = [8, 1, 16], strides = [1, 1, 1]} : vector<8x8x16xf32> to vector<8x1x16xf32>
    %135 = vector.shape_cast %134 : vector<8x1x16xf32> to vector<8x16xf32>
    %cst_47 = arith.constant 0.333333343 : f32
    %136 = vector.broadcast %cst_47 : f32 to vector<8x16xf32>
    %137 = arith.mulf %135, %136 : vector<8x16xf32>
    %138 = vector.extract_strided_slice %50 {offsets = [0, 5, 0], sizes = [8, 1, 16], strides = [1, 1, 1]} : vector<8x8x16xf32> to vector<8x1x16xf32>
    %139 = vector.shape_cast %138 : vector<8x1x16xf32> to vector<8x16xf32>
    %cst_48 = arith.constant 0.666666686 : f32
    %140 = vector.broadcast %cst_48 : f32 to vector<8x16xf32>
    %141 = arith.mulf %139, %140 : vector<8x16xf32>
    %142 = arith.addf %137, %141 : vector<8x16xf32>
    %143 = vector.extract_strided_slice %50 {offsets = [0, 5, 0], sizes = [8, 1, 16], strides = [1, 1, 1]} : vector<8x8x16xf32> to vector<8x1x16xf32>
    %144 = vector.shape_cast %143 : vector<8x1x16xf32> to vector<8x16xf32>
    %cst_49 = arith.constant 0.866666674 : f32
    %145 = vector.broadcast %cst_49 : f32 to vector<8x16xf32>
    %146 = arith.mulf %144, %145 : vector<8x16xf32>
    %147 = vector.extract_strided_slice %50 {offsets = [0, 6, 0], sizes = [8, 1, 16], strides = [1, 1, 1]} : vector<8x8x16xf32> to vector<8x1x16xf32>
    %148 = vector.shape_cast %147 : vector<8x1x16xf32> to vector<8x16xf32>
    %cst_50 = arith.constant 0.13333334 : f32
    %149 = vector.broadcast %cst_50 : f32 to vector<8x16xf32>
    %150 = arith.mulf %148, %149 : vector<8x16xf32>
    %151 = arith.addf %146, %150 : vector<8x16xf32>
    %152 = vector.extract_strided_slice %50 {offsets = [0, 5, 0], sizes = [8, 1, 16], strides = [1, 1, 1]} : vector<8x8x16xf32> to vector<8x1x16xf32>
    %153 = vector.shape_cast %152 : vector<8x1x16xf32> to vector<8x16xf32>
    %cst_51 = arith.constant 4.000000e-01 : f32
    %154 = vector.broadcast %cst_51 : f32 to vector<8x16xf32>
    %155 = arith.mulf %153, %154 : vector<8x16xf32>
    %156 = vector.extract_strided_slice %50 {offsets = [0, 6, 0], sizes = [8, 1, 16], strides = [1, 1, 1]} : vector<8x8x16xf32> to vector<8x1x16xf32>
    %157 = vector.shape_cast %156 : vector<8x1x16xf32> to vector<8x16xf32>
    %cst_52 = arith.constant 6.000000e-01 : f32
    %158 = vector.broadcast %cst_52 : f32 to vector<8x16xf32>
    %159 = arith.mulf %157, %158 : vector<8x16xf32>
    %160 = arith.addf %155, %159 : vector<8x16xf32>
    %161 = vector.extract_strided_slice %50 {offsets = [0, 6, 0], sizes = [8, 1, 16], strides = [1, 1, 1]} : vector<8x8x16xf32> to vector<8x1x16xf32>
    %162 = vector.shape_cast %161 : vector<8x1x16xf32> to vector<8x16xf32>
    %cst_53 = arith.constant 0.933333337 : f32
    %163 = vector.broadcast %cst_53 : f32 to vector<8x16xf32>
    %164 = arith.mulf %162, %163 : vector<8x16xf32>
    %165 = vector.extract_strided_slice %50 {offsets = [0, 7, 0], sizes = [8, 1, 16], strides = [1, 1, 1]} : vector<8x8x16xf32> to vector<8x1x16xf32>
    %166 = vector.shape_cast %165 : vector<8x1x16xf32> to vector<8x16xf32>
    %cst_54 = arith.constant 0.0666666701 : f32
    %167 = vector.broadcast %cst_54 : f32 to vector<8x16xf32>
    %168 = arith.mulf %166, %167 : vector<8x16xf32>
    %169 = arith.addf %164, %168 : vector<8x16xf32>
    %170 = vector.extract_strided_slice %50 {offsets = [0, 6, 0], sizes = [8, 1, 16], strides = [1, 1, 1]} : vector<8x8x16xf32> to vector<8x1x16xf32>
    %171 = vector.shape_cast %170 : vector<8x1x16xf32> to vector<8x16xf32>
    %cst_55 = arith.constant 0.466666669 : f32
    %172 = vector.broadcast %cst_55 : f32 to vector<8x16xf32>
    %173 = arith.mulf %171, %172 : vector<8x16xf32>
    %174 = vector.extract_strided_slice %50 {offsets = [0, 7, 0], sizes = [8, 1, 16], strides = [1, 1, 1]} : vector<8x8x16xf32> to vector<8x1x16xf32>
    %175 = vector.shape_cast %174 : vector<8x1x16xf32> to vector<8x16xf32>
    %cst_56 = arith.constant 0.533333361 : f32
    %176 = vector.broadcast %cst_56 : f32 to vector<8x16xf32>
    %177 = arith.mulf %175, %176 : vector<8x16xf32>
    %178 = arith.addf %173, %177 : vector<8x16xf32>
    %179 = vector.extract_strided_slice %50 {offsets = [0, 7, 0], sizes = [8, 1, 16], strides = [1, 1, 1]} : vector<8x8x16xf32> to vector<8x1x16xf32>
    %180 = vector.shape_cast %179 : vector<8x1x16xf32> to vector<8x16xf32>
    %181 = tpu.concatenate %52, %61, %70, %79, %88, %97, %106, %115, %124, %133, %142, %151, %160, %169, %178, %180 in 1 : vector<8x16xf32>, vector<8x16xf32>, vector<8x16xf32>, vector<8x16xf32>, vector<8x16xf32>, vector<8x16xf32>, vector<8x16xf32>, vector<8x16xf32>, vector<8x16xf32>, vector<8x16xf32>, vector<8x16xf32>, vector<8x16xf32>, vector<8x16xf32>, vector<8x16xf32>, vector<8x16xf32>, vector<8x16xf32> -> vector<8x256xf32>
    %c17_i32_57 = arith.constant 17 : i32
    %182 = tpu.dynamic_rotate %181 by %c17_i32_57 dim 1 : vector<8x256xf32>, i32 -> vector<8x256xf32>
    %c0_58 = arith.constant 0 : index
    %c0_59 = arith.constant 0 : index
    %183 = vector.load %arg8[%c0_58, %c0_59] : memref<9x256xf32, #tpu.memory_space<vmem>>, vector<1x256xf32>
    %184 = vector.broadcast %183 : vector<1x256xf32> to vector<8x256xf32>
    %185 = arith.mulf %182, %184 : vector<8x256xf32>
    %c16_i32_60 = arith.constant 16 : i32
    %186 = tpu.dynamic_rotate %181 by %c16_i32_60 dim 1 : vector<8x256xf32>, i32 -> vector<8x256xf32>
    %c1_61 = arith.constant 1 : index
    %c0_62 = arith.constant 0 : index
    %187 = vector.load %arg8[%c1_61, %c0_62] : memref<9x256xf32, #tpu.memory_space<vmem>>, vector<1x256xf32>
    %188 = vector.broadcast %187 : vector<1x256xf32> to vector<8x256xf32>
    %189 = arith.mulf %186, %188 : vector<8x256xf32>
    %c15_i32_63 = arith.constant 15 : i32
    %190 = tpu.dynamic_rotate %181 by %c15_i32_63 dim 1 : vector<8x256xf32>, i32 -> vector<8x256xf32>
    %c2_64 = arith.constant 2 : index
    %c0_65 = arith.constant 0 : index
    %191 = vector.load %arg8[%c2_64, %c0_65] : memref<9x256xf32, #tpu.memory_space<vmem>>, vector<1x256xf32>
    %192 = vector.broadcast %191 : vector<1x256xf32> to vector<8x256xf32>
    %193 = arith.mulf %190, %192 : vector<8x256xf32>
    %c1_i32_66 = arith.constant 1 : i32
    %194 = tpu.dynamic_rotate %181 by %c1_i32_66 dim 1 : vector<8x256xf32>, i32 -> vector<8x256xf32>
    %c3_67 = arith.constant 3 : index
    %c0_68 = arith.constant 0 : index
    %195 = vector.load %arg8[%c3_67, %c0_68] : memref<9x256xf32, #tpu.memory_space<vmem>>, vector<1x256xf32>
    %196 = vector.broadcast %195 : vector<1x256xf32> to vector<8x256xf32>
    %197 = arith.mulf %194, %196 : vector<8x256xf32>
    %c255_i32_69 = arith.constant 255 : i32
    %198 = tpu.dynamic_rotate %181 by %c255_i32_69 dim 1 : vector<8x256xf32>, i32 -> vector<8x256xf32>
    %c5_70 = arith.constant 5 : index
    %c0_71 = arith.constant 0 : index
    %199 = vector.load %arg8[%c5_70, %c0_71] : memref<9x256xf32, #tpu.memory_space<vmem>>, vector<1x256xf32>
    %200 = vector.broadcast %199 : vector<1x256xf32> to vector<8x256xf32>
    %201 = arith.mulf %198, %200 : vector<8x256xf32>
    %c241_i32_72 = arith.constant 241 : i32
    %202 = tpu.dynamic_rotate %181 by %c241_i32_72 dim 1 : vector<8x256xf32>, i32 -> vector<8x256xf32>
    %c6_73 = arith.constant 6 : index
    %c0_74 = arith.constant 0 : index
    %203 = vector.load %arg8[%c6_73, %c0_74] : memref<9x256xf32, #tpu.memory_space<vmem>>, vector<1x256xf32>
    %204 = vector.broadcast %203 : vector<1x256xf32> to vector<8x256xf32>
    %205 = arith.mulf %202, %204 : vector<8x256xf32>
    %c240_i32_75 = arith.constant 240 : i32
    %206 = tpu.dynamic_rotate %181 by %c240_i32_75 dim 1 : vector<8x256xf32>, i32 -> vector<8x256xf32>
    %c7_76 = arith.constant 7 : index
    %c0_77 = arith.constant 0 : index
    %207 = vector.load %arg8[%c7_76, %c0_77] : memref<9x256xf32, #tpu.memory_space<vmem>>, vector<1x256xf32>
    %208 = vector.broadcast %207 : vector<1x256xf32> to vector<8x256xf32>
    %209 = arith.mulf %206, %208 : vector<8x256xf32>
    %c239_i32_78 = arith.constant 239 : i32
    %210 = tpu.dynamic_rotate %181 by %c239_i32_78 dim 1 : vector<8x256xf32>, i32 -> vector<8x256xf32>
    %c8_79 = arith.constant 8 : index
    %c0_80 = arith.constant 0 : index
    %211 = vector.load %arg8[%c8_79, %c0_80] : memref<9x256xf32, #tpu.memory_space<vmem>>, vector<1x256xf32>
    %212 = vector.broadcast %211 : vector<1x256xf32> to vector<8x256xf32>
    %213 = arith.mulf %210, %212 : vector<8x256xf32>
    %c0_81 = arith.constant 0 : index
    %c0_82 = arith.constant 0 : index
    %214 = vector.load %arg8[%c0_81, %c0_82] : memref<9x256xf32, #tpu.memory_space<vmem>>, vector<9x256xf32>
    %215 = tpu.concatenate %185, %189, %193, %197, %181, %201, %205, %209, %213, %214 in 0 : vector<8x256xf32>, vector<8x256xf32>, vector<8x256xf32>, vector<8x256xf32>, vector<8x256xf32>, vector<8x256xf32>, vector<8x256xf32>, vector<8x256xf32>, vector<8x256xf32>, vector<9x256xf32> -> vector<81x256xf32>
    %c0_83 = arith.constant 0 : index
    %c0_84 = arith.constant 0 : index
    %216 = vector.load %arg5[%c0_83, %c0_84] : memref<64x81xf32, #tpu.memory_space<vmem>>, vector<64x81xf32>
    %cst_85 = arith.constant dense<0.000000e+00> : vector<64x256xf32>
    %217 = tpu.matmul %216, %215, %cst_85 {dimension_numbers = #tpu.dot_dimension_numbers<[1], [0], [0], [1], [0, 0, 1, 1], [], []>} : vector<64x81xf32>, vector<81x256xf32>, vector<64x256xf32> -> vector<64x256xf32>
    %c0_86 = arith.constant 0 : index
    %c0_87 = arith.constant 0 : index
    %218 = vector.load %arg6[%c0_86, %c0_87] : memref<64x1xf32, #tpu.memory_space<vmem>>, vector<64x1xf32>
    %219 = vector.broadcast %218 : vector<64x1xf32> to vector<64x256xf32>
    %220 = arith.addf %217, %219 : vector<64x256xf32>
    %c0_88 = arith.constant 0 : index
    %c64 = arith.constant 64 : index
    %c0_89 = arith.constant 0 : index
    %221 = vector.load %arg13[%c0_88, %c64, %c0_89] : memref<1x128x256xf32, #tpu.memory_space<vmem>>, vector<1x64x256xf32>
    %222 = vector.shape_cast %221 : vector<1x64x256xf32> to vector<64x256xf32>
    %223 = vector.shape_cast %220 : vector<64x256xf32> to vector<1x64x256xf32>
    tpu.vector_store %arg13[%c0_88, %c64, %c0_89], %223 {strides = array<i32>} : memref<1x128x256xf32, #tpu.memory_space<vmem>>, vector<1x64x256xf32>,
    %c0_90 = arith.constant 0 : index
    %c64_91 = arith.constant 64 : index
    %224 = vector.load %arg9[%c0_90, %c64_91] : memref<1x128xf32, #tpu.memory_space<vmem>>, vector<1x64xf32>
    %cst_92 = arith.constant dense<0.000000e+00> : vector<1x256xf32>
    %225 = tpu.matmul %224, %220, %cst_92 {dimension_numbers = #tpu.dot_dimension_numbers<[1], [0], [0], [1], [0, 0, 1, 1], [], []>} : vector<1x64xf32>, vector<64x256xf32>, vector<1x256xf32> -> vector<1x256xf32>
    %226 = arith.addf %45, %225 : vector<1x256xf32>
    %c0_93 = arith.constant 0 : index
    %c0_94 = arith.constant 0 : index
    %227 = vector.load %arg10[%c0_93, %c0_94] : memref<1x1xf32, #tpu.memory_space<vmem>>, vector<1x1xf32>
    %228 = vector.broadcast %227 : vector<1x1xf32> to vector<1x256xf32>
    %229 = arith.addf %226, %228 : vector<1x256xf32>
    %230 = vector.extract_strided_slice %229 {offsets = [0, 0], sizes = [1, 16], strides = [1, 1]} : vector<1x256xf32> to vector<1x16xf32>
    %231 = vector.extract_strided_slice %229 {offsets = [0, 16], sizes = [1, 16], strides = [1, 1]} : vector<1x256xf32> to vector<1x16xf32>
    %232 = vector.extract_strided_slice %229 {offsets = [0, 32], sizes = [1, 16], strides = [1, 1]} : vector<1x256xf32> to vector<1x16xf32>
    %233 = vector.extract_strided_slice %229 {offsets = [0, 48], sizes = [1, 16], strides = [1, 1]} : vector<1x256xf32> to vector<1x16xf32>
    %234 = vector.extract_strided_slice %229 {offsets = [0, 64], sizes = [1, 16], strides = [1, 1]} : vector<1x256xf32> to vector<1x16xf32>
    %235 = vector.extract_strided_slice %229 {offsets = [0, 80], sizes = [1, 16], strides = [1, 1]} : vector<1x256xf32> to vector<1x16xf32>
    %236 = vector.extract_strided_slice %229 {offsets = [0, 96], sizes = [1, 16], strides = [1, 1]} : vector<1x256xf32> to vector<1x16xf32>
    %237 = vector.extract_strided_slice %229 {offsets = [0, 112], sizes = [1, 16], strides = [1, 1]} : vector<1x256xf32> to vector<1x16xf32>
    %238 = vector.extract_strided_slice %229 {offsets = [0, 128], sizes = [1, 16], strides = [1, 1]} : vector<1x256xf32> to vector<1x16xf32>
    %239 = vector.extract_strided_slice %229 {offsets = [0, 144], sizes = [1, 16], strides = [1, 1]} : vector<1x256xf32> to vector<1x16xf32>
    %240 = vector.extract_strided_slice %229 {offsets = [0, 160], sizes = [1, 16], strides = [1, 1]} : vector<1x256xf32> to vector<1x16xf32>
    %241 = vector.extract_strided_slice %229 {offsets = [0, 176], sizes = [1, 16], strides = [1, 1]} : vector<1x256xf32> to vector<1x16xf32>
    %242 = vector.extract_strided_slice %229 {offsets = [0, 192], sizes = [1, 16], strides = [1, 1]} : vector<1x256xf32> to vector<1x16xf32>
    %243 = vector.extract_strided_slice %229 {offsets = [0, 208], sizes = [1, 16], strides = [1, 1]} : vector<1x256xf32> to vector<1x16xf32>
    %244 = vector.extract_strided_slice %229 {offsets = [0, 224], sizes = [1, 16], strides = [1, 1]} : vector<1x256xf32> to vector<1x16xf32>
    %245 = vector.extract_strided_slice %229 {offsets = [0, 240], sizes = [1, 16], strides = [1, 1]} : vector<1x256xf32> to vector<1x16xf32>
    %246 = tpu.concatenate %230, %231, %232, %233, %234, %235, %236, %237, %238, %239, %240, %241, %242, %243, %244, %245 in 0 : vector<1x16xf32>, vector<1x16xf32>, vector<1x16xf32>, vector<1x16xf32>, vector<1x16xf32>, vector<1x16xf32>, vector<1x16xf32>, vector<1x16xf32>, vector<1x16xf32>, vector<1x16xf32>, vector<1x16xf32>, vector<1x16xf32>, vector<1x16xf32>, vector<1x16xf32>, vector<1x16xf32>, vector<1x16xf32> -> vector<16x16xf32>
    %c0_95 = arith.constant 0 : index
    %c0_96 = arith.constant 0 : index
    %247 = vector.load %arg11[%c0_95, %c0_96] : memref<16x256xf32, #tpu.memory_space<vmem>>, vector<16x256xf32>
    %cst_97 = arith.constant dense<0.000000e+00> : vector<16x256xf32>
    %248 = tpu.matmul %246, %247, %cst_97 {dimension_numbers = #tpu.dot_dimension_numbers<[1], [0], [0], [1], [0, 0, 1, 1], [], []>} : vector<16x16xf32>, vector<16x256xf32>, vector<16x256xf32> -> vector<16x256xf32>
    %c0_98 = arith.constant 0 : index
    %c0_99 = arith.constant 0 : index
    %249 = vector.load %arg12[%c0_98, %c0_99] : memref<256x16xf32, #tpu.memory_space<vmem>>, vector<256x16xf32>
    %cst_100 = arith.constant dense<0.000000e+00> : vector<256x256xf32>
    %250 = tpu.matmul %249, %248, %cst_100 {dimension_numbers = #tpu.dot_dimension_numbers<[1], [0], [0], [1], [0, 0, 1, 1], [], []>} : vector<256x16xf32>, vector<16x256xf32>, vector<256x256xf32> -> vector<256x256xf32>
    %c0_101 = arith.constant 0 : index
    %c0_102 = arith.constant 0 : index
    %c0_103 = arith.constant 0 : index
    %c0_104 = arith.constant 0 : index
    %251 = vector.load %arg14[%c0_101, %c0_102, %c0_103, %c0_104] : memref<1x1x256x256xf32, #tpu.memory_space<vmem>>, vector<1x1x256x256xf32>
    %252 = vector.shape_cast %251 : vector<1x1x256x256xf32> to vector<256x256xf32>
    %253 = vector.shape_cast %250 : vector<256x256xf32> to vector<1x1x256x256xf32>
    tpu.vector_store %arg14[%c0_101, %c0_102, %c0_103, %c0_104], %253 {strides = array<i32>} : memref<1x1x256x256xf32, #tpu.memory_space<vmem>>, vector<1x1x256x256xf32>,
    return
  }
  func.func @transform_0(%arg0: i32) -> (i32, i32, i32) {
    %c0_i32 = arith.constant 0 : i32
    %c0_i32_0 = arith.constant 0 : i32
    %c0_i32_1 = arith.constant 0 : i32
    return %arg0, %c0_i32, %c0_i32_0 : i32, i32, i32
  }
  func.func @transform_1(%arg0: i32) -> (i32, i32, i32) {
    %c0_i32 = arith.constant 0 : i32
    %c0_i32_0 = arith.constant 0 : i32
    %c0_i32_1 = arith.constant 0 : i32
    return %arg0, %c0_i32, %c0_i32_0 : i32, i32, i32
  }
  func.func @transform_2(%arg0: i32) -> (i32, i32) {
    %c0_i32 = arith.constant 0 : i32
    %c0_i32_0 = arith.constant 0 : i32
    %c0_i32_1 = arith.constant 0 : i32
    return %c0_i32, %c0_i32_0 : i32, i32
  }
  func.func @transform_3(%arg0: i32) -> (i32, i32) {
    %c0_i32 = arith.constant 0 : i32
    %c0_i32_0 = arith.constant 0 : i32
    %c0_i32_1 = arith.constant 0 : i32
    return %c0_i32, %c0_i32_0 : i32, i32
  }
  func.func @transform_4(%arg0: i32) -> (i32, i32) {
    %c0_i32 = arith.constant 0 : i32
    %c0_i32_0 = arith.constant 0 : i32
    %c0_i32_1 = arith.constant 0 : i32
    return %c0_i32, %c0_i32_0 : i32, i32
  }
  func.func @transform_5(%arg0: i32) -> (i32, i32) {
    %c0_i32 = arith.constant 0 : i32
    %c0_i32_0 = arith.constant 0 : i32
    %c0_i32_1 = arith.constant 0 : i32
    return %c0_i32, %c0_i32_0 : i32, i32
  }
  func.func @transform_6(%arg0: i32) -> (i32, i32) {
    %c0_i32 = arith.constant 0 : i32
    %c0_i32_0 = arith.constant 0 : i32
    %c0_i32_1 = arith.constant 0 : i32
    return %c0_i32, %c0_i32_0 : i32, i32
  }
  func.func @transform_7(%arg0: i32) -> (i32, i32) {
    %c0_i32 = arith.constant 0 : i32
    %c0_i32_0 = arith.constant 0 : i32
    %c0_i32_1 = arith.constant 0 : i32
    return %c0_i32, %c0_i32_0 : i32, i32
  }
  func.func @transform_8(%arg0: i32) -> (i32, i32) {
    %c0_i32 = arith.constant 0 : i32
    %c0_i32_0 = arith.constant 0 : i32
    %c0_i32_1 = arith.constant 0 : i32
    return %c0_i32, %c0_i32_0 : i32, i32
  }
  func.func @transform_9(%arg0: i32) -> (i32, i32) {
    %c0_i32 = arith.constant 0 : i32
    %c0_i32_0 = arith.constant 0 : i32
    %c0_i32_1 = arith.constant 0 : i32
    return %c0_i32, %c0_i32_0 : i32, i32
  }
  func.func @transform_10(%arg0: i32) -> (i32, i32) {
    %c0_i32 = arith.constant 0 : i32
    %c0_i32_0 = arith.constant 0 : i32
    %c0_i32_1 = arith.constant 0 : i32
    return %c0_i32, %c0_i32_0 : i32, i32
  }
  func.func @transform_11(%arg0: i32) -> (i32, i32) {
    %c0_i32 = arith.constant 0 : i32
    %c0_i32_0 = arith.constant 0 : i32
    %c0_i32_1 = arith.constant 0 : i32
    return %c0_i32, %c0_i32_0 : i32, i32
  }
  func.func @transform_12(%arg0: i32) -> (i32, i32, i32) {
    %c0_i32 = arith.constant 0 : i32
    %c0_i32_0 = arith.constant 0 : i32
    %c0_i32_1 = arith.constant 0 : i32
    return %arg0, %c0_i32, %c0_i32_0 : i32, i32, i32
  }
  func.func @transform_13(%arg0: i32) -> (i32, i32, i32, i32) {
    %c0_i32 = arith.constant 0 : i32
    %c0_i32_0 = arith.constant 0 : i32
    %c0_i32_1 = arith.constant 0 : i32
    %c0_i32_2 = arith.constant 0 : i32
    return %arg0, %c0_i32, %c0_i32_0, %c0_i32_1 : i32, i32, i32, i32
  }
}

</mosaic_0001>

<bundles_post_ra>
// kernel: edge_guidance_forward.1
= control target key start
LH: loop header
LB: loop body
LE: loop exit
PB: predicated region body
PF: predicated region fallthrough
CT: control target
= control target key end

     0   :  { %s5232_s0 = inlined_call_operand.vmem [shape: f32[2,4,256], index: 0, kind: input, shape index: {}]   ;;  %s5233_s1 = inlined_call_operand.vmem [shape: f32[2,64,8], index: 1, kind: input, shape index: {}]   ;;  %s5234_s2 = inlined_call_operand.vmem [shape: f32[64,45], index: 2, kind: input, shape index: {}]   ;;  %s5235_s3 = inlined_call_operand.vmem [shape: f32[64,1], index: 3, kind: input, shape index: {}]   ;;  %s5236_s4 = inlined_call_operand.vmem [shape: f32[64,81], index: 4, kind: input, shape index: {}]   ;;  %s5237_s5 = inlined_call_operand.vmem [shape: f32[64,1], index: 5, kind: input, shape index: {}]   ;;  %s5238_s6 = inlined_call_operand.vmem [shape: f32[8,16], index: 6, kind: input, shape index: {}]   ;;  %s5239_s7 = inlined_call_operand.vmem [shape: f32[9,256], index: 7, kind: input, shape index: {}]   ;;  %s5240_s8 = inlined_call_operand.vmem [shape: f32[1,128], index: 8, kind: input, shape index: {}]   ;;  %s5241_s9 = inlined_call_operand.<no memory space> [shape: f32[1,1], index: 9, kind: input, shape index: {}]   ;;  %s5242_s10 = inlined_call_operand.vmem [shape: f32[16,256], index: 10, kind: input, shape index: {}]   ;;  %s5243_s11 = inlined_call_operand.vmem [shape: f32[256,16], index: 11, kind: input, shape index: {}]   ;;  %s5244_s12 = inlined_call_operand.vmem [shape: f32[2,128,256], index: 12, kind: output, shape index: {0}]   ;;  %s5245_s13 = inlined_call_operand.hbm [shape: f32[2,1,256,256], index: 13, kind: output, shape index: {1}]  }
   0x1   :  { %5303 = sst [smem:[#allocation41_spill]] %s5232_s0  ;;  %v19_v0 = vstv %s5241_s9 }
   0x2   :  { %5304 = sst [smem:[#allocation42_spill]] %s5233_s1  ;;  %20 = vst [vmem:[#allocation2] sm:$0x1] %v19_v0 }
   0x3   :  { %21 = vsyncpa [#allocation4], 0 }
   0x4   :  { %23 = vsyncpa [#allocation4 + $0x1], 0  ;;  %s3732_s27 = smov 0   ;;  %s3734_s28 = smov 0  }
   0x5   :  { %s3736_s29 = smov 0   ;;  %s3738_s30 = smov 0  }
   0x6 LB: > { %s3753_s9 = sadd.s32 4294967295, %s3639_s30   ;;  %s3318_s14 = sadd.s32 4294967294, %s3639_s30   ;;  %s3639_s30 = sphi %s3738_s30, %s5392_s30   ;;  %s3635_s29 = sphi %s3736_s29, %s5391_s29   ;;  %s3631_s28 = sphi %s3734_s28, %s5390_s28   ;;  %s3627_s27 = sphi %s3732_s27, %s5389_s27  }
   0x7   : > { %s3757_s15 = sadd.s32 1, %s3639_s30   ;;  %s324_s16 = sadd.s32 1, %s3635_s29 }
   0x8   : > { %s321_s17 = ssub.s32 %s3639_s30, %s3757_s15  ;;  %p334_p0 = scmp.ne.s32.totalorder %s3635_s29, %s3631_s28 }
   0x9   : > { %p322_p1 = scmp.eq.s32.totalorder %s321_s17, 0  ;;  %p335_p2 = scmp.eq.s32.totalorder %s3753_s9, 1 }
   0xa   : > { %p340_p3 = scmp.ne.s32.totalorder %s3631_s28, %s3627_s27  ;;  %p341_p4 = scmp.eq.s32.totalorder %s3318_s14, 1 }
   0xb   : > { %s3768_s18 = scalar_select %p322_p1, %s3635_s29, %s324_s16  }
   0xc   : > { %p3770_p5 = por %p335_p2, %p334_p0  ;;  %p3774_p6 = por %p341_p4, %p340_p3 }
   0xd   : > { %p3321_p7 = scmp.ge.s32.totalorder %s3639_s30, 1  ;;  %p405_p8 = scmp.lt.s32.totalorder %s3639_s30, 3 }
   0xf   : > { %p406_p9 = pnand %p3321_p7, %p405_p8 }
  0x11   : > { %409 = sbr.rel (%p406_p9) target bundleno = 1788 (0x6fc), region = 68 }
  0x18   : > { %v930_v1 = vld [vmem:[%s5238_s6] sm:$0xff]  ;;  %p459_p10 = scmp.lt.s32.totalorder %s3753_s9, 1  ;;  %vm931_vm0 = vcmask 64512   ;;  %s5307_s1 = sld [smem:[#allocation42_spill]]  ;;  %vm1630_vm1 = vcmask 1041409   ;;  %vm1633_vm2 = vcmask 1042434  }
  0x19   : > { %3426 = vmatprep.subr.mxu1 %v930_v1  ;;  %vm1636_vm3 = vcmask 1043459   ;;  %vm1639_vm4 = vcmask 1044484   ;;  %vm1642_vm5 = vcmask 1045509   ;;  %vm1645_vm6 = vcmask 1046534   ;;  %s5293_s16 = smov 80   ;;  %s5299_s17 = smov 16  }
  0x1a   : > { %3427 = vmatpush3.msra.mxu1 %v930_v1  ;;  %s3785_s23 = scalar_select %p459_p10, %s3753_s9, 1  ;;  %vm1648_vm7 = vcmask 1047559   ;;  %vm2016_vm8 = vcmask 130048   ;;  %vm2018_vm9 = vcmask 261120   ;;  %vm2020_vm10 = vcmask 392192  }
  0x1b   : > { %s5295_s21 = smov 96   ;;  %s5289_s22 = smov 32   ;;  %vm2022_vm11 = vcmask 523264   ;;  %vm2024_vm12 = vcmask 654336   ;;  %vm2026_vm13 = vcmask 785408   ;;  %vm2028_vm14 = vcmask 916480  }
  0x1c   : > { %s3414_s24 = sshll.u32 %s3785_s23, 6  ;;  %s5297_s25 = smov 64  }
  0x1d   : > { %s5301_s26 = smov 112   ;;  %s5381_s0 = sld [smem:[#allocation41_spill]] }
  0x1e   : > { %s468_s14 = scalar_lea.vmem %s5307_s1, %s3414_s24  ;;  %s5291_s24 = smov 48  }
  0x1f   : > { %v922_v2 = vld [vmem:[%s468_s14] sm:$0xff]  ;;  %v923_v3 = vld [vmem:[%s468_s14 + $0x8] sm:$0xff]  ;;  %v924_v4 = vld [vmem:[%s468_s14 + $0x10] sm:$0xff] }
  0x20   : > { %3428 = vmatprep.mubr.msk.f32.mxu1 %vm931_vm0, %v922_v2  ;;  %v925_v5 = vld [vmem:[%s468_s14 + $0x18] sm:$0xff]  ;;  %v926_v6 = vld [vmem:[%s468_s14 + $0x20] sm:$0xff]  ;;  %v927_v7 = vld [vmem:[%s468_s14 + $0x28] sm:$0xff] }
  0x21   : > { %3429 = vmatmul.mubr.msk.f32.vlgmr.msra.gmra.mrb[0].mxu1 %vm931_vm0, %v923_v3  ;;  %v928_v8 = vld [vmem:[%s468_s14 + $0x30] sm:$0xff]  ;;  %v929_v9 = vld [vmem:[%s468_s14 + $0x38] sm:$0xff]  ;;  %s3413_s14 = sshll.u32 %s3785_s23, 3 }
  0x22   : > { %3431 = vmatprep.mubr.msk.f32.mxu1 %vm931_vm0, %v924_v4 }
  0x25   : > { %3432 = vmatmul.mubr.msk.f32.gmra.mrb[2].mxu1 %vm931_vm0, %v925_v5 }
  0x26   : > { %3434 = vmatprep.mubr.msk.f32.mxu1 %vm931_vm0, %v926_v6 }
  0x29   : > { %3435 = vmatmul.mubr.msk.f32.gmra.mrb[4].mxu1 %vm931_vm0, %v927_v7 }
  0x2a   : > { %3437 = vmatprep.mubr.msk.f32.mxu1 %vm931_vm0, %v928_v8 }
  0x2d   : > { %3438 = vmatmul.mubr.msk.f32.gmra.mrb[6].mxu1 %vm931_vm0, %v929_v9 }
  0xf4   : > { %v3799_v10 = vpop.f32.mrb[0].mxu1 }
  0xf5   : > { %5308 = vst [vmem:[#allocation6_spill] sm:$0xff] %v3799_v10  ;;  %v3801_v11 = vpop.f32.mrb[1].mxu1  ;;  %v3804_v12 = vmul.f32 0.06666667, %v3799_v10  ;;  %v3807_v13 = vmul.f32 0.93333334, %v3799_v10 }
  0xf6   : > { %5309 = vst [vmem:[#allocation7_spill] sm:$0xff] %v3801_v11  ;;  %v3811_v15 = vmul.f32 0.06666667, %v3801_v11  ;;  %v3814_v16 = vmul.f32 0.93333334, %v3801_v11 }
  0xf7   : > { %v3817_v17 = vmul.f32 0.53333336, %v3801_v11  ;;  %v1566_v18 = vrot.slane %v3804_v12, 1  ;;  %v3821_v19 = vmul.f32 0.53333336, %v3799_v10 }
  0xf8   : > { %v3824_v20 = vmul.f32 0.46666667, %v3801_v11  ;;  %v3827_v22 = vpop.f32.mrb[2].mxu1  ;;  %v1565_v23 = vrot.slane %v3811_v15, 1  ;;  %v3831_v24 = vmul.f32 0.46666667, %v3799_v10 }
  0xf9   : > { %5310 = vst [vmem:[#allocation8_spill] sm:$0xff] %v3827_v22  ;;  %v1597_v25 = vrot.slane %v3817_v17, 1  ;;  %v3835_v27 = vpop.f32.mrb[3].mxu1  ;;  %v3838_v28 = vmul.f32 0.06666667, %v3827_v22  ;;  %v1582_v30 = vadd.f32 %v1566_v18, %v3807_v13 }
  0xfa   : > { %5311 = vst [vmem:[#allocation9_spill] sm:$0xff] %v3835_v27  ;;  %v3841_v29 = vmul.f32 0.93333334, %v3827_v22  ;;  %v1085_v31 = vrot.slane %v3824_v20, 1  ;;  %v3846_v32 = vmul.f32 0.06666667, %v3835_v27  ;;  %v1581_v34 = vadd.f32 %v1565_v23, %v3814_v16 }
  0xfb   : > { %v3849_v33 = vmul.f32 0.93333334, %v3835_v27  ;;  %v3853_v35 = vmul.f32 0.53333336, %v3835_v27  ;;  %v1568_v36 = vrot.slane %v3838_v28, 1  ;;  %v1958_v37 = vrot.slane %v1582_v30, 5 }
  0xfc   : > { %v3857_v38 = vmul.f32 0.53333336, %v3827_v22  ;;  %v3860_v39 = vmul.f32 0.46666667, %v3835_v27  ;;  %v3862_v40 = vpop.f32.mrb[4].mxu1  ;;  %v1567_v41 = vrot.slane %v3846_v32, 1  ;;  %v1101_v3 = vadd.f32 %v1085_v31, %v3817_v17 }
  0xfd   : > { %5312 = vst [vmem:[#allocation10_spill] sm:$0xff] %v3862_v40  ;;  %v1957_v42 = vrot.slane %v1581_v34, 6  ;;  %v3866_v43 = vmul.f32 0.46666667, %v3827_v22  ;;  %v1086_v44 = vrot.slane %v3831_v24, 1  ;;  %v3869_v45 = vpop.f32.mrb[5].mxu1  ;;  %v1584_v48 = vadd.f32 %v1568_v36, %v3841_v29 }
  0xfe   : > { %5313 = vst [vmem:[#allocation11_spill] sm:$0xff] %v3869_v45  ;;  %v3872_v46 = vmul.f32 0.06666667, %v3862_v40  ;;  %v3875_v47 = vmul.f32 0.93333334, %v3862_v40  ;;  %v1087_v49 = vrot.slane %v3860_v39, 1  ;;  %v1583_v52 = vadd.f32 %v1567_v41, %v3849_v33 }
  0xff   : > { %v3880_v50 = vmul.f32 0.06666667, %v3869_v45  ;;  %v3883_v51 = vmul.f32 0.93333334, %v3869_v45  ;;  %v1959_v53 = vsel %vm1630_vm1, %v1958_v37, %v1957_v42  ;;  %v1962_v55 = vrot.slane %v1584_v48, 3 }
 0x100   : > { %v1570_v54 = vrot.slane %v3872_v46, 1  ;;  %v3889_v56 = vmul.f32 0.53333336, %v3869_v45  ;;  %v3892_v57 = vmul.f32 0.53333336, %v3862_v40  ;;  %v3894_v58 = vpop.f32.mrb[6].mxu1 }
 0x101   : > { %5314 = vst [vmem:[#allocation12_spill] sm:$0xff] %v3894_v58  ;;  %v1569_v59 = vrot.slane %v3880_v50, 1  ;;  %v1960_v60 = vrot.slane %v1583_v52, 4  ;;  %v3898_v61 = vmul.f32 0.46666667, %v3869_v45  ;;  %v1088_v62 = vrot.slane %v3866_v43, 1 }
 0x102   : > { %v3901_v63 = vpop.f32.mrb[7].mxu1  ;;  %v3904_v0 = vmul.f32 0.06666667, %v3894_v58  ;;  %v3907_v1 = vmul.f32 0.93333334, %v3894_v58  ;;  %v1586_v2 = vadd.f32 %v1570_v54, %v3875_v47 }
 0x103   : > { %5315 = vst [vmem:[#allocation13_spill] sm:$0xff] %v3901_v63  ;;  %v3912_v4 = vmul.f32 0.06666667, %v3901_v63  ;;  %v3915_v5 = vmul.f32 0.93333334, %v3901_v63  ;;  %v1585_v6 = vadd.f32 %v1569_v59, %v3883_v51  ;;  %v1961_v7 = vsel %vm1633_vm2, %v1960_v60, %v1959_v53 }
 0x104   : > { %v1572_v8 = vrot.slane %v3904_v0, 1  ;;  %v1963_v9 = vsel %vm1636_vm3, %v1962_v55, %v1961_v7  ;;  %v1966_v18 = vrot.slane %v1586_v2, 1  ;;  %v1067_v23 = vmul.f32 0.53333336, %v3901_v63 }
 0x105   : > { %v1571_v30 = vrot.slane %v3912_v4, 1  ;;  %v1964_v31 = vrot.slane %v1585_v6, 2  ;;  %v1068_v34 = vmul.f32 0.53333336, %v3894_v58  ;;  %v1074_v36 = vmul.f32 0.46666667, %v3862_v40 }
 0x106   : > { %v1588_v37 = vadd.f32 %v1572_v8, %v3907_v1  ;;  %v1075_v41 = vmul.f32 0.46666667, %v3901_v63  ;;  %v1076_v42 = vmul.f32 0.46666667, %v3894_v58  ;;  %v1089_v48 = vrot.slane %v3898_v61, 1 }
 0x107   : > { %v1587_v52 = vadd.f32 %v1571_v30, %v3915_v5  ;;  %v1965_v53 = vsel %vm1639_vm4, %v1964_v31, %v1963_v9  ;;  %v1090_v54 = vrot.slane %v1074_v36, 1  ;;  %v1102_v55 = vadd.f32 %v1086_v44, %v3821_v19 }
 0x108   : > { %v1967_v59 = vsel %vm1642_vm5, %v1966_v18, %v1965_v53  ;;  %v1969_v60 = vrot.slane %v1588_v37, 7  ;;  %v1091_v2 = vrot.slane %v1075_v41, 1  ;;  %v1092_v6 = vrot.slane %v1076_v42, 1 }
 0x109   : > { %v1968_v7 = vsel %vm1645_vm6, %v1587_v52, %v1967_v59  ;;  %v1103_v8 = vadd.f32 %v1087_v49, %v3853_v35  ;;  %v1104_v14 = vadd.f32 %v1088_v62, %v3857_v38  ;;  %v1105_v21 = vadd.f32 %v1089_v48, %v3889_v56 }
 0x10a   : > { %v1970_v30 = vsel %vm1648_vm7, %v1969_v60, %v1968_v7  ;;  %v1106_v9 = vadd.f32 %v1090_v54, %v3892_v57  ;;  %v1107_v31 = vadd.f32 %v1091_v2, %v1067_v23  ;;  %v1108_v26 = vadd.f32 %v1092_v6, %v1068_v34 }
 0x10b   : > { %1971 = vrot.lane.b32.xlu1 %v1970_v30, %s5293_s16  ;;  %v1659_v44 = vrot.slane %v1102_v55, 7  ;;  %v1661_v18 = vrot.slane %v1103_v8, 6  ;;  %v1663_v37 = vrot.slane %v1104_v14, 5  ;;  %v1665_v53 = vrot.slane %v1105_v21, 4 }
 0x10c   : > { %v1667_v52 = vrot.slane %v1106_v9, 3  ;;  %v1669_v59 = vrot.slane %v1107_v31, 2  ;;  %v1671_v49 = vrot.slane %v1108_v26, 1  ;;  %v1598_v62 = vrot.slane %v3821_v19, 1 }
 0x10d   : > { %v1660_v48 = vsel %vm1630_vm1, %v1659_v44, %v1101_v3  ;;  %v1599_v60 = vrot.slane %v3853_v35, 1  ;;  %v1600_v54 = vrot.slane %v3857_v38, 1  ;;  %v1601_v2 = vrot.slane %v3889_v56, 1 }
 0x10e   : > { %v1662_v6 = vsel %vm1633_vm2, %v1661_v18, %v1660_v48  ;;  %v1602_v55 = vrot.slane %v3892_v57, 1  ;;  %v1603_v7 = vrot.slane %v1067_v23, 1  ;;  %v1604_v14 = vrot.slane %v1068_v34, 1 }
 0x10f   : > { %v1664_v21 = vsel %vm1636_vm3, %v1663_v37, %v1662_v6  ;;  %v1613_v19 = vadd.f32 %v1597_v25, %v3824_v20  ;;  %v1614_v26 = vadd.f32 %v1598_v62, %v3831_v24  ;;  %v1615_v35 = vadd.f32 %v1599_v60, %v3860_v39 }
 0x110   : > { %v1666_v38 = vsel %vm1639_vm4, %v1665_v53, %v1664_v21  ;;  %v1616_v56 = vadd.f32 %v1600_v54, %v3866_v43  ;;  %v1617_v3 = vadd.f32 %v1601_v2, %v3898_v61  ;;  %v1618_v8 = vadd.f32 %v1602_v55, %v1074_v36 }
 0x111   : > { %v1668_v57 = vsel %vm1642_vm5, %v1667_v52, %v1666_v38  ;;  %v1619_v23 = vadd.f32 %v1603_v7, %v1075_v41  ;;  %v1620_v34 = vadd.f32 %v1604_v14, %v1076_v42  ;;  %v1982_v30 = vrot.slane %v1613_v19, 6 }
 0x112   : > { %v1670_v9 = vsel %vm1645_vm6, %v1669_v59, %v1668_v57  ;;  %v1983_v17 = vrot.slane %v1614_v26, 5  ;;  %v1985_v20 = vrot.slane %v1615_v35, 4  ;;  %v1987_v25 = vrot.slane %v1616_v56, 3 }
 0x113   : > { %v1672_v24 = vsel %vm1648_vm7, %v1671_v49, %v1670_v9  ;;  %v1989_v39 = vrot.slane %v1617_v3, 2  ;;  %v1991_v31 = vrot.slane %v1618_v8, 1  ;;  %v1994_v44 = vrot.slane %v1620_v34, 7 }
 0x114   : > { %1673 = vrot.lane.b32.xlu0 %v1672_v24, %s5299_s17  ;;  %v1984_v43 = vsel %vm1630_vm1, %v1983_v17, %v1982_v30  ;;  %v3962_v61 = vmul.f32 0.2, %v3801_v11  ;;  %v3965_v36 = vmul.f32 0.2, %v3799_v10  ;;  %v3968_v41 = vmul.f32 0.2, %v3835_v27 }
 0x115   : > { %v1986_v42 = vsel %vm1633_vm2, %v1985_v20, %v1984_v43  ;;  %v3972_v18 = vmul.f32 0.2, %v3827_v22  ;;  %v3975_v37 = vmul.f32 0.2, %v3869_v45  ;;  %v3978_v53 = vmul.f32 0.2, %v3862_v40 }
 0x116   : > { %5316 = vst [vmem:[#allocation14_spill] sm:$0xff] %v3962_v61  ;;  %5317 = vst [vmem:[#allocation15_spill] sm:$0xff] %v3965_v36  ;;  %v1988_v52 = vsel %vm1636_vm3, %v1987_v25, %v1986_v42  ;;  %v3982_v59 = vmul.f32 0.2, %v3901_v63  ;;  %v3985_v49 = vmul.f32 0.2, %v3894_v58 }
 0x117   : > { %5318 = vst [vmem:[#allocation16_spill] sm:$0xff] %v3968_v41  ;;  %5319 = vst [vmem:[#allocation17_spill] sm:$0xff] %v3972_v18  ;;  %v3988_v62 = vmul.f32 0.8, %v3801_v11  ;;  %v1990_v48 = vsel %vm1639_vm4, %v1989_v39, %v1988_v52  ;;  %v3992_v60 = vmul.f32 0.8, %v3799_v10 }
 0x118   : > { %5320 = vst [vmem:[#allocation18_spill] sm:$0xff] %v3975_v37  ;;  %5321 = vst [vmem:[#allocation19_spill] sm:$0xff] %v3978_v53  ;;  %v3995_v54 = vmul.f32 0.8, %v3835_v27  ;;  %v3998_v2 = vmul.f32 0.8, %v3827_v22  ;;  %v1992_v6 = vsel %vm1642_vm5, %v1991_v31, %v1990_v48 }
 0x119   : > { %5322 = vst [vmem:[#allocation20_spill] sm:$0xff] %v3982_v59  ;;  %5323 = vst [vmem:[#allocation21_spill] sm:$0xff] %v3985_v49  ;;  %v4002_v55 = vmul.f32 0.8, %v3869_v45  ;;  %v4005_v7 = vmul.f32 0.8, %v3862_v40  ;;  %v1993_v21 = vsel %vm1645_vm6, %v1619_v23, %v1992_v6 }
 0x11a   : > { %5324 = vst [vmem:[#allocation22_spill] sm:$0xff] %v3988_v62  ;;  %5325 = vst [vmem:[#allocation23_spill] sm:$0xff] %v3992_v60  ;;  %v4008_v14 = vmul.f32 0.8, %v3901_v63  ;;  %v4012_v19 = vmul.f32 0.8, %v3894_v58  ;;  %v1995_v38 = vsel %vm1648_vm7, %v1994_v44, %v1993_v21 }
 0x11b   : > { %5326 = vst [vmem:[#allocation24_spill] sm:$0xff] %v3995_v54  ;;  %5327 = vst [vmem:[#allocation25_spill] sm:$0xff] %v3998_v2  ;;  %v1437_v26 = vrot.slane %v3962_v61, 1  ;;  %v1438_v35 = vrot.slane %v3965_v36, 1  ;;  %v1439_v56 = vrot.slane %v3968_v41, 1  ;;  %v1440_v3 = vrot.slane %v3972_v18, 1  ;;  %1996 = vrot.lane.b32.xlu1 %v1995_v38, %s5295_s21 }
 0x11c   : > { %5328 = vst [vmem:[#allocation26_spill] sm:$0xff] %v4002_v55  ;;  %5329 = vst [vmem:[#allocation27_spill] sm:$0xff] %v4005_v7  ;;  %v1441_v8 = vrot.slane %v3975_v37, 1  ;;  %v1442_v57 = vrot.slane %v3978_v53, 1  ;;  %v1443_v23 = vrot.slane %v3982_v59, 1  ;;  %v1444_v34 = vrot.slane %v3985_v49, 1 }
 0x11d   : > { %5330 = vst [vmem:[#allocation28_spill] sm:$0xff] %v4008_v14  ;;  %5331 = vst [vmem:[#allocation29_spill] sm:$0xff] %v4012_v19  ;;  %v1453_v30 = vadd.f32 %v1437_v26, %v3988_v62  ;;  %v1454_v9 = vadd.f32 %v1438_v35, %v3992_v60  ;;  %v1455_v17 = vadd.f32 %v1439_v56, %v3995_v54  ;;  %v1135_v48 = vrot.slane %v3849_v33, 1 }
 0x11e   : > { %v1456_v20 = vadd.f32 %v1440_v3, %v3998_v2  ;;  %v1457_v25 = vadd.f32 %v1441_v8, %v4002_v55  ;;  %v1458_v24 = vadd.f32 %v1442_v57, %v4005_v7  ;;  %v1459_v39 = vadd.f32 %v1443_v23, %v4008_v14 }
 0x11f   : > { %v1460_v31 = vadd.f32 %v1444_v34, %v4012_v19  ;;  %v1857_v44 = vrot.slane %v1453_v30, 4  ;;  %v1858_v43 = vrot.slane %v1454_v9, 3  ;;  %v1860_v42 = vrot.slane %v1455_v17, 2 }
 0x120   : > { %v1862_v52 = vrot.slane %v1456_v20, 1  ;;  %v1865_v6 = vrot.slane %v1458_v24, 7  ;;  %v1867_v21 = vrot.slane %v1459_v39, 6  ;;  %v1136_v35 = vrot.slane %v3841_v29, 1 }
 0x121   : > { %v1869_v26 = vrot.slane %v1460_v31, 5  ;;  %v1859_v38 = vsel %vm1630_vm1, %v1858_v43, %v1857_v44  ;;  %v1137_v56 = vrot.slane %v3883_v51, 1  ;;  %v1138_v3 = vrot.slane %v3875_v47, 1 }
 0x122   : > { %v1139_v8 = vrot.slane %v3915_v5, 1  ;;  %v1861_v57 = vsel %vm1633_vm2, %v1860_v42, %v1859_v38  ;;  %v1140_v23 = vrot.slane %v3907_v1, 1  ;;  %v5332_v33 = vrot.slane %v3814_v16, 1 }
 0x123   : > { %v5333_v30 = vrot.slane %v3807_v13, 1  ;;  %v1863_v9 = vsel %vm1636_vm3, %v1862_v52, %v1861_v57  ;;  %v1151_v51 = vadd.f32 %v1135_v48, %v3846_v32  ;;  %v1152_v47 = vadd.f32 %v1136_v35, %v3838_v28 }
 0x124   : > { %v1149_v34 = vadd.f32 %v5332_v33, %v3811_v15  ;;  %v1153_v5 = vadd.f32 %v1137_v56, %v3880_v50  ;;  %v1864_v17 = vsel %vm1639_vm4, %v1457_v25, %v1863_v9  ;;  %v1154_v1 = vadd.f32 %v1138_v3, %v3872_v46 }
 0x125   : > { %v1150_v29 = vadd.f32 %v5333_v30, %v3804_v12  ;;  %v1155_v20 = vadd.f32 %v1139_v8, %v3912_v4  ;;  %v1156_v15 = vadd.f32 %v1140_v23, %v3904_v0  ;;  %v1866_v16 = vsel %vm1642_vm5, %v1865_v6, %v1864_v17 }
 0x126   : > { %v1686_v12 = vrot.slane %v1151_v51, 6  ;;  %v1688_v24 = vrot.slane %v1152_v47, 5  ;;  %v1868_v39 = vsel %vm1645_vm6, %v1867_v21, %v1866_v16  ;;  %v1690_v32 = vrot.slane %v1153_v5, 4 }
 0x127   : > { %v1684_v13 = vrot.slane %v1150_v29, 7  ;;  %v1692_v31 = vrot.slane %v1154_v1, 3  ;;  %v1694_v28 = vrot.slane %v1155_v20, 2  ;;  %v1870_v50 = vsel %vm1648_vm7, %v1869_v26, %v1868_v39 }
 0x128   : > { %v1696_v44 = vrot.slane %v1156_v15, 1  ;;  %v4059_v46 = vmul.f32 0.6, %v3801_v11  ;;  %1871 = vrot.lane.b32.xlu0 %v1870_v50, %s5299_s17  ;;  %v4064_v4 = vmul.f32 0.6, %v3799_v10 }
 0x129   : > { %v1685_v25 = vsel %vm1630_vm1, %v1684_v13, %v1149_v34  ;;  %v4067_v43 = vmul.f32 0.6, %v3835_v27  ;;  %v4070_v42 = vmul.f32 0.6, %v3827_v22  ;;  %v4074_v48 = vmul.f32 0.6, %v3869_v45 }
 0x12a   : > { %v1687_v0 = vsel %vm1633_vm2, %v1686_v12, %v1685_v25  ;;  %v4077_v6 = vmul.f32 0.6, %v3862_v40  ;;  %v4080_v21 = vmul.f32 0.6, %v3901_v63  ;;  %v4084_v35 = vmul.f32 0.6, %v3894_v58 }
 0x12b   : > { %v1689_v52 = vsel %vm1636_vm3, %v1688_v24, %v1687_v0  ;;  %v4087_v38 = vmul.f32 0.4, %v3801_v11  ;;  %v4090_v56 = vmul.f32 0.4, %v3799_v10  ;;  %v4094_v8 = vmul.f32 0.4, %v3835_v27 }
 0x12c   : > { %5334 = vst [vmem:[#allocation30_spill] sm:$0xff] %v4077_v6  ;;  %5335 = vst [vmem:[#allocation31_spill] sm:$0xff] %v4080_v21  ;;  %v1691_v26 = vsel %vm1639_vm4, %v1690_v32, %v1689_v52  ;;  %v4097_v57 = vmul.f32 0.4, %v3827_v22  ;;  %v4100_v23 = vmul.f32 0.4, %v3869_v45 }
 0x12d   : > { %5336 = vst [vmem:[#allocation32_spill] sm:$0xff] %v4084_v35  ;;  %5337 = vst [vmem:[#allocation33_spill] sm:$0xff] %v4087_v38  ;;  %v1693_v3 = vsel %vm1642_vm5, %v1692_v31, %v1691_v26  ;;  %v4104_v34 = vmul.f32 0.4, %v3862_v40  ;;  %v4107_v30 = vmul.f32 0.4, %v3901_v63 }
 0x12e   : > { %5338 = vst [vmem:[#allocation34_spill] sm:$0xff] %v4090_v56  ;;  %5339 = vst [vmem:[#allocation35_spill] sm:$0xff] %v4094_v8  ;;  %v1695_v33 = vsel %vm1645_vm6, %v1694_v28, %v1693_v3  ;;  %v4110_v29 = vmul.f32 0.4, %v3894_v58  ;;  %v1181_v51 = vrot.slane %v4087_v38, 1  ;;  %v1182_v47 = vrot.slane %v4090_v56, 1 }
 0x12f   : > { %5340 = vst [vmem:[#allocation36_spill] sm:$0xff] %v4097_v57  ;;  %5341 = vst [vmem:[#allocation37_spill] sm:$0xff] %v4100_v23  ;;  %v1697_v9 = vsel %vm1648_vm7, %v1696_v44, %v1695_v33  ;;  %v1183_v5 = vrot.slane %v4094_v8, 1  ;;  %v1184_v17 = vrot.slane %v4097_v57, 1  ;;  %v1185_v1 = vrot.slane %v4100_v23, 1 }
 0x130   : > { %5342 = vst [vmem:[#allocation38_spill] sm:$0xff] %v4104_v34  ;;  %5343 = vst [vmem:[#allocation39_spill] sm:$0xff] %v4107_v30  ;;  %1698 = vrot.lane.b32.xlu1 %v1697_v9, %s5289_s22  ;;  %v1186_v20 = vrot.slane %v4104_v34, 1  ;;  %v1187_v15 = vrot.slane %v4107_v30, 1  ;;  %v1188_v16 = vrot.slane %v4110_v29, 1  ;;  %v1197_v13 = vadd.f32 %v1181_v51, %v4059_v46 }
 0x131   : > { %5344 = vst [vmem:[#allocation40_spill] sm:$0xff] %v4110_v29  ;;  %v1198_v12 = vadd.f32 %v1182_v47, %v4064_v4  ;;  %v1199_v24 = vadd.f32 %v1183_v5, %v4067_v43  ;;  %v1200_v39 = vadd.f32 %v1184_v17, %v4070_v42  ;;  %v1201_v32 = vadd.f32 %v1185_v1, %v4074_v48 }
 0x132   : > { %v1202_v31 = vadd.f32 %v1186_v20, %v4077_v6  ;;  %v1203_v28 = vadd.f32 %v1187_v15, %v4080_v21  ;;  %v1204_v50 = vadd.f32 %v1188_v16, %v4084_v35  ;;  %v1709_v25 = vrot.slane %v1197_v13, 1 }
 0x133   : > { %v1711_v44 = vrot.slane %v1199_v24, 7  ;;  %v4131_v0 = vmul.f32 0.6666667, %v3801_v11  ;;  %v1713_v52 = vrot.slane %v1200_v39, 6  ;;  %v1715_v26 = vrot.slane %v1201_v32, 5 }
 0x134   : > { %v1717_v3 = vrot.slane %v1202_v31, 4  ;;  %v1719_v33 = vrot.slane %v1203_v28, 3  ;;  %v1710_v9 = vsel %vm1630_vm1, %v1198_v12, %v1709_v25  ;;  %v1721_v51 = vrot.slane %v1204_v50, 2 }
 0x135   : > { %v4135_v47 = vmul.f32 0.6666667, %v3799_v10  ;;  %v4138_v5 = vmul.f32 0.6666667, %v3835_v27  ;;  %v1712_v17 = vsel %vm1633_vm2, %v1711_v44, %v1710_v9  ;;  %v4142_v1 = vmul.f32 0.6666667, %v3827_v22 }
 0x136   : > { %v4145_v20 = vmul.f32 0.6666667, %v3869_v45  ;;  %v4148_v15 = vmul.f32 0.6666667, %v3862_v40  ;;  %v1714_v16 = vsel %vm1636_vm3, %v1713_v52, %v1712_v17  ;;  %v4152_v13 = vmul.f32 0.6666667, %v3901_v63 }
 0x137   : > { %v4155_v12 = vmul.f32 0.6666667, %v3894_v58  ;;  %v4158_v24 = vmul.f32 0.33333334, %v3801_v11  ;;  %v1716_v39 = vsel %vm1639_vm4, %v1715_v26, %v1714_v16  ;;  %v4162_v32 = vmul.f32 0.33333334, %v3799_v10 }
 0x138   : > { %v4165_v31 = vmul.f32 0.33333334, %v3835_v27  ;;  %v4168_v28 = vmul.f32 0.33333334, %v3827_v22  ;;  %v1718_v50 = vsel %vm1642_vm5, %v1717_v3, %v1716_v39  ;;  %v4172_v25 = vmul.f32 0.33333334, %v3869_v45 }
 0x139   : > { %v4175_v44 = vmul.f32 0.33333334, %v3862_v40  ;;  %v4178_v52 = vmul.f32 0.33333334, %v3901_v63  ;;  %v1720_v26 = vsel %vm1645_vm6, %v1719_v33, %v1718_v50  ;;  %v4182_v9 = vmul.f32 0.33333334, %v3894_v58 }
 0x13a   : > { %v1469_v17 = vrot.slane %v4131_v0, 1  ;;  %v1470_v16 = vrot.slane %v4135_v47, 1  ;;  %v1722_v3 = vsel %vm1648_vm7, %v1721_v51, %v1720_v26  ;;  %v1471_v39 = vrot.slane %v4138_v5, 1 }
 0x13b   : > { %v1472_v49 = vrot.slane %v4142_v1, 1  ;;  %v1473_v59 = vrot.slane %v4145_v20, 1  ;;  %1723 = vrot.lane.b32.xlu0 %v1722_v3, %s5291_s24  ;;  %v1474_v33 = vrot.slane %v4148_v15, 1  ;;  %v1475_v50 = vrot.slane %v4152_v13, 1 }
 0x13c   : > { %v1476_v53 = vrot.slane %v4155_v12, 1  ;;  %v1485_v37 = vadd.f32 %v1469_v17, %v4158_v24  ;;  %v1486_v18 = vadd.f32 %v1470_v16, %v4162_v32  ;;  %v1487_v51 = vadd.f32 %v1471_v39, %v4165_v31 }
 0x13d   : > { %v1488_v26 = vadd.f32 %v1472_v49, %v4168_v28  ;;  %v1489_v41 = vadd.f32 %v1473_v59, %v4172_v25  ;;  %v1490_v36 = vadd.f32 %v1474_v33, %v4175_v44  ;;  %v1491_v3 = vadd.f32 %v1475_v50, %v4178_v52 }
 0x13e   : > { %v1492_v61 = vadd.f32 %v1476_v53, %v4182_v9  ;;  %v1882_v19 = vrot.slane %v1485_v37, 4  ;;  %v1883_v14 = vrot.slane %v1486_v18, 3  ;;  %v1885_v7 = vrot.slane %v1487_v51, 2 }
 0x13f   : > { %v1887_v55 = vrot.slane %v1488_v26, 1  ;;  %v1205_v17 = vmul.f32 0.13333334, %v3801_v11  ;;  %v1890_v2 = vrot.slane %v1490_v36, 7  ;;  %v1892_v16 = vrot.slane %v1491_v3, 6 }
 0x140   : > { %v1894_v54 = vrot.slane %v1492_v61, 5  ;;  %v1206_v39 = vmul.f32 0.13333334, %v3799_v10  ;;  %v1884_v49 = vsel %vm1630_vm1, %v1883_v14, %v1882_v19  ;;  %v1207_v59 = vmul.f32 0.13333334, %v3835_v27 }
 0x141   : > { %v1208_v33 = vmul.f32 0.13333334, %v3827_v22  ;;  %v1209_v50 = vmul.f32 0.13333334, %v3869_v45  ;;  %v1886_v37 = vsel %vm1633_vm2, %v1885_v7, %v1884_v49  ;;  %v1210_v18 = vmul.f32 0.13333334, %v3862_v40 }
 0x142   : > { %v1211_v53 = vmul.f32 0.13333334, %v3901_v63  ;;  %v1212_v36 = vmul.f32 0.13333334, %v3894_v58  ;;  %v1888_v61 = vsel %vm1636_vm3, %v1887_v55, %v1886_v37  ;;  %v1213_v51 = vmul.f32 0.8666667, %v3801_v11 }
 0x143   : > { %v1214_v14 = vmul.f32 0.8666667, %v3799_v10  ;;  %v1215_v19 = vmul.f32 0.8666667, %v3835_v27  ;;  %v1889_v26 = vsel %vm1639_vm4, %v1489_v41, %v1888_v61  ;;  %v1216_v3 = vmul.f32 0.8666667, %v3827_v22 }
 0x144   : > { %v1217_v7 = vmul.f32 0.8666667, %v3869_v45  ;;  %v1218_v49 = vmul.f32 0.8666667, %v3862_v40  ;;  %v1891_v60 = vsel %vm1642_vm5, %v1890_v2, %v1889_v26  ;;  %v1219_v62 = vmul.f32 0.8666667, %v3901_v63 }
 0x145   : > { %v1220_v55 = vmul.f32 0.8666667, %v3894_v58  ;;  %v1229_v37 = vrot.slane %v1213_v51, 1  ;;  %v1893_v11 = vsel %vm1645_vm6, %v1892_v16, %v1891_v60  ;;  %v1230_v10 = vrot.slane %v1214_v14, 1 }
 0x146   : > { %v1231_v29 = vrot.slane %v1215_v19, 1  ;;  %v1232_v27 = vrot.slane %v1216_v3, 1  ;;  %v1895_v41 = vsel %vm1648_vm7, %v1894_v54, %v1893_v11  ;;  %v1233_v61 = vrot.slane %v1217_v7, 1 }
 0x147   : > { %v1234_v22 = vrot.slane %v1218_v49, 1  ;;  %v1235_v30 = vrot.slane %v1219_v62, 1  ;;  %1896 = vrot.lane.b32.xlu1 %v1895_v41, %s5289_s22  ;;  %v1236_v40 = vrot.slane %v1220_v55, 1  ;;  %v1245_v45 = vadd.f32 %v1229_v37, %v1205_v17  ;;  %s3649_s22 = smov 17  }
 0x148   : > { %v1246_v2 = vadd.f32 %v1230_v10, %v1206_v39  ;;  %v1247_v26 = vadd.f32 %v1231_v29, %v1207_v59  ;;  %v1248_v63 = vadd.f32 %v1232_v27, %v1208_v33  ;;  %v1249_v34 = vadd.f32 %v1233_v61, %v1209_v50 }
 0x149   : > { %v1250_v58 = vadd.f32 %v1234_v22, %v1210_v18  ;;  %v1251_v23 = vadd.f32 %v1235_v30, %v1211_v53  ;;  %v1252_v57 = vadd.f32 %v1236_v40, %v1212_v36  ;;  %v1734_v60 = vrot.slane %v1245_v45, 1 }
 0x14a   : > { %v1736_v16 = vrot.slane %v1247_v26, 7  ;;  %v1501_v8 = vrot.slane %v1205_v17, 1  ;;  %v1738_v56 = vrot.slane %v1248_v63, 6  ;;  %v1740_v38 = vrot.slane %v1249_v34, 5 }
 0x14b   : > { %v1742_v11 = vrot.slane %v1250_v58, 4  ;;  %v1744_v54 = vrot.slane %v1251_v23, 3  ;;  %v1735_v35 = vsel %vm1630_vm1, %v1246_v2, %v1734_v60  ;;  %v1746_v21 = vrot.slane %v1252_v57, 2 }
 0x14c   : > { %v1502_v41 = vrot.slane %v1206_v39, 1  ;;  %v1503_v6 = vrot.slane %v1207_v59, 1  ;;  %v1737_v10 = vsel %vm1633_vm2, %v1736_v16, %v1735_v35  ;;  %v1504_v29 = vrot.slane %v1208_v33, 1 }
 0x14d   : > { %v1505_v27 = vrot.slane %v1209_v50, 1  ;;  %v1506_v37 = vrot.slane %v1210_v18, 1  ;;  %v1739_v22 = vsel %vm1636_vm3, %v1738_v56, %v1737_v10  ;;  %v1507_v40 = vrot.slane %v1211_v53, 1 }
 0x14e   : > { %v1508_v45 = vrot.slane %v1212_v36, 1  ;;  %v1517_v30 = vadd.f32 %v1501_v8, %v1213_v51  ;;  %v1741_v63 = vsel %vm1639_vm4, %v1740_v38, %v1739_v22  ;;  %v1518_v34 = vadd.f32 %v1502_v41, %v1214_v14  ;;  %v5345_v22 = vld [vmem:[#allocation30_spill] sm:$0xff] }
 0x14f   : > { %v1519_v58 = vadd.f32 %v1503_v6, %v1215_v19  ;;  %v1520_v23 = vadd.f32 %v1504_v29, %v1216_v3  ;;  %v1743_v17 = vsel %vm1642_vm5, %v1742_v11, %v1741_v63  ;;  %v1521_v57 = vadd.f32 %v1505_v27, %v1217_v7 }
 0x150   : > { %v1522_v39 = vadd.f32 %v1506_v37, %v1218_v49  ;;  %v1523_v59 = vadd.f32 %v1507_v40, %v1219_v62  ;;  %v1745_v35 = vsel %vm1645_vm6, %v1744_v54, %v1743_v17  ;;  %v1524_v33 = vadd.f32 %v1508_v45, %v1220_v55  ;;  %v5349_v17 = vld [vmem:[#allocation34_spill] sm:$0xff] }
 0x151   : > { %v1907_v50 = vrot.slane %v1517_v30, 5  ;;  %v1908_v18 = vrot.slane %v1518_v34, 4  ;;  %v1747_v56 = vsel %vm1648_vm7, %v1746_v21, %v1745_v35  ;;  %v1910_v53 = vrot.slane %v1519_v58, 3  ;;  %v5346_v30 = vld [vmem:[#allocation31_spill] sm:$0xff]  ;;  %v5347_v34 = vld [vmem:[#allocation32_spill] sm:$0xff]  ;;  %v5352_v35 = vld [vmem:[#allocation37_spill] sm:$0xff] }
 0x152   : > { %v1912_v36 = vrot.slane %v1520_v23, 2  ;;  %v1914_v8 = vrot.slane %v1521_v57, 1  ;;  %1748 = vrot.lane.b32.xlu0 %v1747_v56, %s5297_s25  ;;  %v1917_v38 = vrot.slane %v1523_v59, 7  ;;  %v1919_v51 = vrot.slane %v1524_v33, 6  ;;  %v5348_v23 = vld [vmem:[#allocation33_spill] sm:$0xff]  ;;  %v5350_v57 = vld [vmem:[#allocation35_spill] sm:$0xff] }
 0x153   : > { %v1909_v6 = vsel %vm1630_vm1, %v1908_v18, %v1907_v50  ;;  %v1277_v14 = vrot.slane %v4158_v24, 1  ;;  %v1278_v19 = vrot.slane %v4162_v32, 1  ;;  %v1279_v3 = vrot.slane %v4165_v31, 1  ;;  %v5351_v59 = vld [vmem:[#allocation36_spill] sm:$0xff]  ;;  %v5353_v50 = vld [vmem:[#allocation38_spill] sm:$0xff]  ;;  %v5354_v56 = vld [vmem:[#allocation39_spill] sm:$0xff] }
 0x154   : > { %v1911_v62 = vsel %vm1633_vm2, %v1910_v53, %v1909_v6  ;;  %v1280_v21 = vrot.slane %v4168_v28, 1  ;;  %v1281_v49 = vrot.slane %v4172_v25, 1  ;;  %v1282_v55 = vrot.slane %v4175_v44, 1 }
 0x155   : > { %v1913_v7 = vsel %vm1636_vm3, %v1912_v36, %v1911_v62  ;;  %v1283_v61 = vrot.slane %v4178_v52, 1  ;;  %v1284_v24 = vrot.slane %v4182_v9, 1  ;;  %v1293_v26 = vadd.f32 %v1277_v14, %v4131_v0 }
 0x156   : > { %v1915_v2 = vsel %vm1639_vm4, %v1914_v8, %v1913_v7  ;;  %v1294_v32 = vadd.f32 %v1278_v19, %v4135_v47  ;;  %v1295_v28 = vadd.f32 %v1279_v3, %v4138_v5  ;;  %v1296_v60 = vadd.f32 %v1280_v21, %v4142_v1  ;;  %v5355_v8 = vld [vmem:[#allocation40_spill] sm:$0xff] }
 0x157   : > { %v1916_v31 = vsel %vm1642_vm5, %v1522_v39, %v1915_v2  ;;  %v1297_v25 = vadd.f32 %v1281_v49, %v4145_v20  ;;  %v1298_v52 = vadd.f32 %v1282_v55, %v4148_v15  ;;  %v1299_v16 = vadd.f32 %v1283_v61, %v4152_v13  ;;  %v5356_v55 = vld [vmem:[#allocation22_spill] sm:$0xff] }
 0x158   : > { %v1918_v44 = vsel %vm1645_vm6, %v1917_v38, %v1916_v31  ;;  %v1300_v9 = vadd.f32 %v1284_v24, %v4155_v12  ;;  %v1759_v11 = vrot.slane %v1293_v26, 2  ;;  %v1760_v47 = vrot.slane %v1294_v32, 1  ;;  %v5357_v24 = vld [vmem:[#allocation23_spill] sm:$0xff]  ;;  %v5358_v32 = vld [vmem:[#allocation24_spill] sm:$0xff] }
 0x159   : > { %v1920_v0 = vsel %vm1648_vm7, %v1919_v51, %v1918_v44  ;;  %v1763_v54 = vrot.slane %v1296_v60, 7  ;;  %v1765_v5 = vrot.slane %v1297_v25, 6  ;;  %v1767_v41 = vrot.slane %v1298_v52, 5  ;;  %v5360_v44 = vld [vmem:[#allocation26_spill] sm:$0xff] }
 0x15a   : > { %1921 = vrot.lane.b32.xlu1 %v1920_v0, %s5291_s24  ;;  %v1769_v1 = vrot.slane %v1299_v16, 4  ;;  %v1771_v10 = vrot.slane %v1300_v9, 3  ;;  %v1761_v20 = vsel %vm1630_vm1, %v1760_v47, %v1759_v11  ;;  %v1533_v29 = vrot.slane %v4059_v46, 1  ;;  %v5361_v16 = vld [vmem:[#allocation27_spill] sm:$0xff]  ;;  %v5362_v0 = vld [vmem:[#allocation28_spill] sm:$0xff]  ;;  %s3650_s24 = smov 15  }
 0x15b   : > { %v1534_v15 = vrot.slane %v4064_v4, 1  ;;  %v1535_v13 = vrot.slane %v4067_v43, 1  ;;  %v1762_v12 = vsel %vm1633_vm2, %v1295_v28, %v1761_v20  ;;  %v1536_v27 = vrot.slane %v4070_v42, 1  ;;  %v5359_v28 = vld [vmem:[#allocation25_spill] sm:$0xff] }
 0x15c   : > { %v1537_v37 = vrot.slane %v4074_v48, 1  ;;  %v1538_v40 = vrot.slane %v5345_v22, 1  ;;  %v1764_v45 = vsel %vm1636_vm3, %v1763_v54, %v1762_v12  ;;  %v1539_v63 = vrot.slane %v5346_v30, 1  ;;  %v5363_v54 = vld [vmem:[#allocation29_spill] sm:$0xff] }
 0x15d   : > { %v1540_v58 = vrot.slane %v5347_v34, 1  ;;  %v1549_v46 = vadd.f32 %v1533_v29, %v5348_v23  ;;  %v1766_v4 = vsel %vm1639_vm4, %v1765_v5, %v1764_v45  ;;  %v1550_v43 = vadd.f32 %v1534_v15, %v5349_v17  ;;  %v5366_v15 = vld [vmem:[#allocation16_spill] sm:$0xff]  ;;  %v5367_v12 = vld [vmem:[#allocation17_spill] sm:$0xff]  ;;  %v5369_v45 = vld [vmem:[#allocation19_spill] sm:$0xff] }
 0x15e   : > { %v1551_v39 = vadd.f32 %v1535_v13, %v5350_v57  ;;  %v1552_v42 = vadd.f32 %v1536_v27, %v5351_v59  ;;  %v1768_v48 = vsel %vm1642_vm5, %v1767_v41, %v1766_v4  ;;  %v1553_v33 = vadd.f32 %v1537_v37, %v5352_v35  ;;  %v5364_v41 = vld [vmem:[#allocation14_spill] sm:$0xff]  ;;  %v5372_v35 = vld [vmem:[#allocation7_spill] sm:$0xff] }
 0x15f   : > { %v1554_v18 = vadd.f32 %v1538_v40, %v5353_v50  ;;  %v1555_v53 = vadd.f32 %v1539_v63, %v5354_v56  ;;  %v1770_v36 = vsel %vm1645_vm6, %v1769_v1, %v1768_v48  ;;  %v1556_v6 = vadd.f32 %v1540_v58, %v5355_v8  ;;  %v5368_v37 = vld [vmem:[#allocation18_spill] sm:$0xff]  ;;  %v5370_v63 = vld [vmem:[#allocation20_spill] sm:$0xff]  ;;  %v5371_v58 = vld [vmem:[#allocation21_spill] sm:$0xff] }
 0x160   : > { %v1932_v38 = vrot.slane %v1549_v46, 5  ;;  %v1933_v51 = vrot.slane %v1550_v43, 4  ;;  %v1772_v14 = vsel %vm1648_vm7, %v1771_v10, %v1770_v36  ;;  %v1935_v62 = vrot.slane %v1551_v39, 3  ;;  %v5365_v10 = vld [vmem:[#allocation15_spill] sm:$0xff]  ;;  %v5373_v50 = vld [vmem:[#allocation9_spill] sm:$0xff] }
 0x161   : > { %v1937_v19 = vrot.slane %v1552_v42, 2  ;;  %v1939_v3 = vrot.slane %v1553_v33, 1  ;;  %1773 = vrot.lane.b32.xlu0 %v1772_v14, %s5293_s16  ;;  %v1942_v7 = vrot.slane %v1555_v53, 7  ;;  %v1944_v49 = vrot.slane %v1556_v6, 6  ;;  %v5374_v53 = vld [vmem:[#allocation8_spill] sm:$0xff]  ;;  %v5375_v8 = vld [vmem:[#allocation11_spill] sm:$0xff]  ;;  %s463_s16 = scalar_lea.vmem %s5381_s0, %s3413_s14 }
 0x162   : > { %v1934_v21 = vsel %vm1630_vm1, %v1933_v51, %v1932_v38  ;;  %v1325_v61 = vrot.slane %v5356_v55, 1  ;;  %v1326_v26 = vrot.slane %v5357_v24, 1  ;;  %v1327_v31 = vrot.slane %v5358_v32, 1  ;;  %v5376_v38 = vld [vmem:[#allocation10_spill] sm:$0xff]  ;;  %s3651_s14 = smov 127   ;;  %s5385_s0 = smov 80  }
 0x163   : > { %v1936_v2 = vsel %vm1633_vm2, %v1935_v62, %v1934_v21  ;;  %v1328_v60 = vrot.slane %v5359_v28, 1  ;;  %v1329_v52 = vrot.slane %v5360_v44, 1  ;;  %v1330_v9 = vrot.slane %v5361_v16, 1  ;;  %v5377_v62 = vld [vmem:[#allocation6_spill] sm:$0xff]  ;;  %v5379_v21 = vld [vmem:[#allocation13_spill] sm:$0xff] }
 0x164   : > { %v1938_v25 = vsel %vm1636_vm3, %v1937_v19, %v1936_v2  ;;  %v1331_v11 = vrot.slane %v5362_v0, 1  ;;  %v1332_v5 = vrot.slane %v5363_v54, 1  ;;  %v1341_v1 = vadd.f32 %v1325_v61, %v5364_v41 }
 0x165   : > { %v1940_v47 = vsel %vm1639_vm4, %v1939_v3, %v1938_v25  ;;  %v1342_v20 = vadd.f32 %v1326_v26, %v5365_v10  ;;  %v1343_v13 = vadd.f32 %v1327_v31, %v5366_v15  ;;  %v1344_v27 = vadd.f32 %v1328_v60, %v5367_v12 }
 0x166   : > { %v1941_v29 = vsel %vm1642_vm5, %v1554_v18, %v1940_v47  ;;  %v1345_v22 = vadd.f32 %v1329_v52, %v5368_v37  ;;  %v1346_v30 = vadd.f32 %v1330_v9, %v5369_v45  ;;  %v1347_v34 = vadd.f32 %v1331_v11, %v5370_v63 }
 0x167   : > { %v1943_v40 = vsel %vm1645_vm6, %v1942_v7, %v1941_v29  ;;  %v1348_v23 = vadd.f32 %v1332_v5, %v5371_v58  ;;  %v1784_v4 = vrot.slane %v1341_v1, 2  ;;  %v1785_v17 = vrot.slane %v1342_v20, 1  ;;  %v5380_v1 = vld [vmem:[#allocation12_spill] sm:$0xff] }
 0x168   : > { %v1945_v46 = vsel %vm1648_vm7, %v1944_v49, %v1943_v40  ;;  %v1788_v43 = vrot.slane %v1344_v27, 7  ;;  %v1790_v57 = vrot.slane %v1345_v22, 6  ;;  %v1792_v39 = vrot.slane %v1346_v30, 5 }
 0x169   : > { %1946 = vrot.lane.b32.xlu1 %v1945_v46, %s5297_s25  ;;  %v1794_v59 = vrot.slane %v1347_v34, 4  ;;  %v1786_v42 = vsel %vm1630_vm1, %v1785_v17, %v1784_v4  ;;  %v1796_v48 = vrot.slane %v1348_v23, 3  ;;  %v1999_v33 = vrot.slane %v5372_v35, 7  ;;  %s3653_s25 = smov 111  }
 0x16a   : > { %v2002_v18 = vrot.slane %v5373_v50, 5  ;;  %v1787_v56 = vsel %vm1633_vm2, %v1343_v13, %v1786_v42  ;;  %v2004_v36 = vrot.slane %v5374_v53, 4  ;;  %v2006_v6 = vrot.slane %v5375_v8, 3 }
 0x16b   : > { %v2008_v51 = vrot.slane %v5376_v38, 2  ;;  %v1789_v14 = vsel %vm1636_vm3, %v1788_v43, %v1787_v56  ;;  %v5378_v19 = vrot.slane %v5377_v62, 6  ;;  %v2010_v7 = vrot.slane %v5379_v21, 1 }
 0x16c   : > { %v4319_v49 = vmul.f32 0.73333335, %v5372_v35  ;;  %v1791_v55 = vsel %vm1639_vm4, %v1790_v57, %v1789_v14  ;;  %v4324_v2 = vmul.f32 0.73333335, %v5377_v62  ;;  %v4327_v24 = vmul.f32 0.73333335, %v5373_v50 }
 0x16d   : > { %v2001_v3 = vsel %vm1630_vm1, %v5378_v19, %v1999_v33  ;;  %v1793_v26 = vsel %vm1642_vm5, %v1792_v39, %v1791_v55  ;;  %v4332_v31 = vmul.f32 0.73333335, %v5374_v53  ;;  %v4335_v28 = vmul.f32 0.73333335, %v5375_v8 }
 0x16e   : > { %v2003_v61 = vsel %vm1633_vm2, %v2002_v18, %v2001_v3  ;;  %v1795_v60 = vsel %vm1645_vm6, %v1794_v59, %v1793_v26  ;;  %v4340_v44 = vmul.f32 0.73333335, %v5376_v38  ;;  %v4343_v52 = vmul.f32 0.73333335, %v5379_v21 }
 0x16f   : > { %v2005_v32 = vsel %vm1636_vm3, %v2004_v36, %v2003_v61  ;;  %v1797_v16 = vsel %vm1648_vm7, %v1796_v48, %v1795_v60  ;;  %v1357_v0 = vmul.f32 0.26666668, %v5372_v35  ;;  %v1358_v11 = vmul.f32 0.26666668, %v5377_v62 }
 0x170   : > { %v2007_v25 = vsel %vm1639_vm4, %v2006_v6, %v2005_v32  ;;  %1798 = vrot.lane.b32.xlu0 %v1797_v16, %s5295_s21  ;;  %v1359_v54 = vmul.f32 0.26666668, %v5373_v50  ;;  %v1360_v5 = vmul.f32 0.26666668, %v5374_v53  ;;  %v4354_v41 = vmul.f32 0.26666668, %v5375_v8 }
 0x171   : > { %v2009_v9 = vsel %vm1642_vm5, %v2008_v51, %v2007_v25  ;;  %v1362_v20 = vmul.f32 0.26666668, %v5376_v38  ;;  %v4360_v29 = vmul.f32 0.26666668, %v5379_v21  ;;  %v4363_v15 = vmul.f32 0.26666668, %v5380_v1 }
 0x172   : > { %v2011_v47 = vsel %vm1645_vm6, %v2010_v7, %v2009_v9  ;;  %v1373_v13 = vrot.slane %v1357_v0, 1  ;;  %v1374_v12 = vrot.slane %v1358_v11, 1  ;;  %v1375_v27 = vrot.slane %v1359_v54, 1  ;;  %s3652_s21 = smov 113  }
 0x173   : > { %v2012_v10 = vsel %vm1648_vm7, %v5380_v1, %v2011_v47  ;;  %v1376_v37 = vrot.slane %v1360_v5, 1  ;;  %v1377_v22 = vrot.slane %v4354_v41, 1  ;;  %v1378_v40 = vrot.slane %v1362_v20, 1 }
 0x174   : > { %2013 = vrot.lane.b32.xlu1 %v2012_v10, %s5301_s26  ;;  %v1379_v45 = vrot.slane %v4360_v29, 1  ;;  %v1380_v30 = vrot.slane %v4363_v15, 1  ;;  %v1356_v63 = vmul.f32 0.73333335, %v5380_v1  ;;  %v1389_v34 = vadd.f32 %v1373_v13, %v4319_v49 }
 0x175   : > { %v1390_v58 = vadd.f32 %v1374_v12, %v4324_v2  ;;  %v1391_v23 = vadd.f32 %v1375_v27, %v4327_v24  ;;  %v1392_v46 = vadd.f32 %v1376_v37, %v4332_v31  ;;  %v1393_v4 = vadd.f32 %v1377_v22, %v4335_v28  ;;  %v4412_v27 = vld [vmem:[%s463_s16] sm:$0xff]  ;;  %s3648_s16 = smov 1  }
 0x176   : > { %v1394_v17 = vadd.f32 %v1378_v40, %v4340_v44  ;;  %v1395_v43 = vadd.f32 %v1379_v45, %v4343_v52  ;;  %v1396_v57 = vadd.f32 %v1380_v30, %v1356_v63  ;;  %v1405_v39 = vrot.slane %v4319_v49, 1 }
 0x177   : > { %v1406_v59 = vrot.slane %v4324_v2, 1  ;;  %v1407_v42 = vrot.slane %v4327_v24, 1  ;;  %v1408_v48 = vrot.slane %v4332_v31, 1  ;;  %v1409_v33 = vrot.slane %v4335_v28, 1 }
 0x178   : > { %v1410_v18 = vrot.slane %v4340_v44, 1  ;;  %v1411_v56 = vrot.slane %v4343_v52, 1  ;;  %v1412_v36 = vrot.slane %v1356_v63, 1  ;;  %v1809_v6 = vrot.slane %v1389_v34, 3 }
 0x179   : > { %v1810_v51 = vrot.slane %v1390_v58, 2  ;;  %v1812_v14 = vrot.slane %v1391_v23, 1  ;;  %v1815_v19 = vrot.slane %v1393_v4, 7  ;;  %v1817_v3 = vrot.slane %v1394_v17, 6 }
 0x17a   : > { %v1819_v7 = vrot.slane %v1395_v43, 5  ;;  %v1629_v49 = vrot.slane %v5377_v62, 7  ;;  %v1821_v61 = vrot.slane %v1396_v57, 4  ;;  %v1632_v2 = vrot.slane %v5373_v50, 6 }
 0x17b   : > { %v1811_v55 = vsel %vm1630_vm1, %v1810_v51, %v1809_v6  ;;  %v1638_v24 = vrot.slane %v5375_v8, 4  ;;  %v1635_v31 = vrot.slane %v5374_v53, 5  ;;  %v1641_v28 = vrot.slane %v5376_v38, 3 }
 0x17c   : > { %v1813_v26 = vsel %vm1633_vm2, %v1812_v14, %v1811_v55  ;;  %v1631_v32 = vsel %vm1630_vm1, %v1629_v49, %v5372_v35  ;;  %v1644_v25 = vrot.slane %v5379_v21, 2  ;;  %v1647_v50 = vrot.slane %v5380_v1, 1 }
 0x17d   : > { %v1814_v60 = vsel %vm1636_vm3, %v1392_v46, %v1813_v26  ;;  %v1634_v62 = vsel %vm1633_vm2, %v1632_v2, %v1631_v32  ;;  %v1421_v52 = vadd.f32 %v1405_v39, %v1357_v0  ;;  %v1422_v16 = vadd.f32 %v1406_v59, %v1358_v11  ;;  %v1972_v4 = vpop.permute.xlu1 %1971 }
 0x17e   : > { %v1816_v8 = vsel %vm1639_vm4, %v1815_v19, %v1814_v60  ;;  %v1637_v44 = vsel %vm1636_vm3, %v1635_v31, %v1634_v62  ;;  %v1423_v38 = vadd.f32 %v1407_v42, %v1359_v54  ;;  %v1424_v9 = vadd.f32 %v1408_v48, %v1360_v5 }
 0x17f   : > { %v1818_v35 = vsel %vm1642_vm5, %v1817_v3, %v1816_v8  ;;  %v1640_v53 = vsel %vm1639_vm4, %v1638_v24, %v1637_v44  ;;  %v1425_v1 = vadd.f32 %v1409_v33, %v4354_v41  ;;  %v1426_v10 = vadd.f32 %v1410_v18, %v1362_v20  ;;  %v2212_v44 = vld [vmem:[%s5237_s5 + $0x18] sm:$0xff] }
 0x180   : > { %v1820_v21 = vsel %vm1645_vm6, %v1819_v7, %v1818_v35  ;;  %v1643_v47 = vsel %vm1642_vm5, %v1641_v28, %v1640_v53  ;;  %v1427_v13 = vadd.f32 %v1411_v56, %v4360_v29  ;;  %v1428_v12 = vadd.f32 %v1412_v36, %v4363_v15  ;;  %v2213_v35 = vld [vmem:[%s5237_s5 + $0x20] sm:$0xff] }
 0x181   : > { %v1822_v0 = vsel %vm1648_vm7, %v1821_v61, %v1820_v21  ;;  %v1646_v11 = vsel %vm1645_vm6, %v1644_v25, %v1643_v47  ;;  %v1834_v5 = vrot.slane %v1421_v52, 3  ;;  %v1835_v37 = vrot.slane %v1422_v16, 2  ;;  %v2209_v25 = vld [vmem:[%s5237_s5] sm:$0xff]  ;;  %v2211_v52 = vld [vmem:[%s5237_s5 + $0x10] sm:$0xff]  ;;  %v2214_v16 = vld [vmem:[%s5237_s5 + $0x28] sm:$0xff] }
 0x182   : > { %1823 = vrot.lane.b32.xlu0 %v1822_v0, %s5301_s26  ;;  %v1649_v54 = vsel %vm1648_vm7, %v1647_v50, %v1646_v11  ;;  %v1837_v22 = vrot.slane %v1423_v38, 1  ;;  %v1840_v40 = vrot.slane %v1425_v1, 7  ;;  %v4419_v20 = vcombine.high %v4412_v27, %v4412_v27  ;;  %v2210_v50 = vld [vmem:[%s5237_s5 + $0x8] sm:$0xff]  ;;  %v2216_v38 = vld [vmem:[%s5237_s5 + $0x38] sm:$0xff]  ;;  %v714_v47 = vld [vmem:[%s5235_s3] sm:$0xff] }
 0x183   : > { %v1836_v41 = vsel %vm1630_vm1, %v1835_v37, %v1834_v5  ;;  %v1844_v45 = vrot.slane %v1427_v13, 5  ;;  %v1842_v30 = vrot.slane %v1426_v10, 6  ;;  %v1846_v58 = vrot.slane %v1428_v12, 4  ;;  %v715_v21 = vld [vmem:[%s5235_s3 + $0x8] sm:$0xff]  ;;  %v717_v10 = vld [vmem:[%s5235_s3 + $0x18] sm:$0xff]  ;;  %v716_v0 = vld [vmem:[%s5235_s3 + $0x10] sm:$0xff] }
 0x184   : > { %v1838_v29 = vsel %vm1633_vm2, %v1837_v22, %v1836_v41  ;;  %503 = vrot.lane.b32.xlu1 %v4419_v20, %s5299_s17  ;;  %v3654_v62 = vmov 0.0   ;;  %v3655_v8 = vmov 0   ;;  %v719_v13 = vld [vmem:[%s5235_s3 + $0x28] sm:$0xff]  ;;  %v718_v12 = vld [vmem:[%s5235_s3 + $0x20] sm:$0xff]  ;;  %v721_v37 = vld [vmem:[%s5235_s3 + $0x38] sm:$0xff] }
 0x185   : > { %v1839_v15 = vsel %vm1636_vm3, %v1424_v9, %v1838_v29  ;;  %2353 = vmatprep.mubr.f32.mxu1 %v3654_v62  ;;  %856 = vmatprep.mubr.f32.mxu0 %v3654_v62  ;;  %v2215_v9 = vld [vmem:[%s5237_s5 + $0x30] sm:$0xff]  ;;  %v2573_v29 = vld [vmem:[#allocation2] sm:$0x1] }
 0x186   : > { %501 = vrot.lane.b32.xlu0 %v4412_v27, %s5299_s17  ;;  %v1841_v63 = vsel %vm1639_vm4, %v1840_v40, %v1839_v15  ;;  %v1674_v39 = vpop.permute.xlu0 %1673  ;;  %3575 = vset.pattern.permute.xlu1 %v3655_v8  ;;  %v720_v22 = vld [vmem:[%s5235_s3 + $0x30] sm:$0xff]  ;;  %v482_v15 = vlaneseq }
 0x187   : > { %v1843_v34 = vsel %vm1642_vm5, %v1842_v30, %v1841_v63  ;;  %v2017_v55 = vsel %vm2016_vm8, %v1649_v54, %v1674_v39  ;;  %3574 = vset.pattern.permute.xlu0 %v3655_v8  ;;  %v3357_v8 = vld [vmem:[%s5239_s7 + $0x5] ss:$8 sm:$0x3] }
 0x188   : > { %v1845_v23 = vsel %vm1645_vm6, %v1844_v45, %v1843_v34  ;;  %547 = vrot.lane.b32.xlu1 %v4419_v20, %s3648_s16  ;;  %v3371_v45 = vld [vmem:[%s5240_s8] ss:$0 sm:$0xff]  ;;  %v490_v63 = vshrl.u32 %v482_v15, 7 }
 0x189   : > { %v1847_v46 = vsel %vm1648_vm7, %v1846_v58, %v1845_v23  ;;  %v4563_v23 = vand.u32 127, %v482_v15  ;;  %v3331_v15 = vld [vmem:[%s5239_s7 + $0x3] ss:$8 sm:$0x3]  ;;  %vm687_vm7 = vcmask 1043456  }
 0x18a   : > { %545 = vrot.lane.b32.xlu0 %v4412_v27, %s3648_s16 }
 0x18b   : > { %vm484_vm15 = vcmp.lt.s32.totalorder %v4563_v23, 17  ;;  %vm505_vm0 = vcmp.lt.s32.totalorder %v4563_v23, 16  ;;  %vm527_vm1 = vcmp.lt.s32.totalorder %v4563_v23, 15  ;;  %vm549_vm2 = vcmp.lt.s32.totalorder %v4563_v23, 1 }
 0x18c   : > { %480 = vrot.lane.b32.xlu1 %v4419_v20, %s3649_s22  ;;  %vm571_vm3 = vcmp.lt.s32.totalorder %v4563_v23, 127  ;;  %vm593_vm4 = vcmp.lt.s32.totalorder %v4563_v23, 113  ;;  %vm615_vm5 = vcmp.lt.s32.totalorder %v4563_v23, 112  ;;  %vm637_vm6 = vcmp.lt.s32.totalorder %v4563_v23, 111 }
 0x18d   : > { %v1997_v17 = vpop.permute.xlu1 %1996 }
 0x18e   : > { %478 = vrot.lane.b32.xlu0 %v4412_v27, %s3649_s22 }
 0x19a   : > { %v1872_v42 = vpop.permute.xlu0 %1871 }
 0x19b   : > { %v2030_v48 = vsel %vm2016_vm8, %v1847_v46, %v1872_v42  ;;  %v2043_v46 = vld [vmem:[%s5239_s7] ss:$8 sm:$0x3] }
 0x1a2   : > { %v1699_v43 = vpop.permute.xlu1 %1698 }
 0x1a3   : > { %v2019_v61 = vsel %vm2018_vm9, %v2017_v55, %v1699_v43  ;;  %v4573_v43 = vsub.s32 1, %v490_v63 }
 0x1a5   : > { %v2052_v42 = vrot.slane %v2043_v46, %v4573_v43 }
 0x1ad   : > { %v1724_v56 = vpop.permute.xlu0 %1723 }
 0x1ae   : > { %v2021_v24 = vsel %vm2020_vm10, %v2019_v61, %v1724_v56  ;;  %v3355_v61 = vld [vmem:[%s5239_s7 + $0x2] ss:$8 sm:$0x3] }
 0x1b9   : > { %v1897_v57 = vpop.permute.xlu1 %1896 }
 0x1ba   : > { %v2031_v33 = vsel %vm2018_vm9, %v2030_v48, %v1897_v57  ;;  %vm2282_vm9 = vcmask 1040384  }
 0x1c4   : > { %v1749_v14 = vpop.permute.xlu0 %1748 }
 0x1c5   : > { %v2023_v26 = vsel %vm2022_vm11, %v2021_v24, %v1749_v14 }
 0x1cc   : > { %v1922_v59 = vpop.permute.xlu1 %1921 }
 0x1cd   : > { %v2032_v36 = vsel %vm2020_vm10, %v2031_v33, %v1922_v59  ;;  %vm2257_vm10 = vcmask 662528  }
 0x1d3   : > { %v1774_v49 = vpop.permute.xlu0 %1773 }
 0x1d4   : > { %v2025_v32 = vsel %vm2024_vm12, %v2023_v26, %v1774_v49 }
 0x1db   : > { %v1947_v18 = vpop.permute.xlu1 %1946 }
 0x1dc   : > { %v2033_v6 = vsel %vm2022_vm11, %v2032_v36, %v1947_v18 }
 0x1dd   : > { %v2034_v51 = vsel %vm2024_vm12, %v2033_v6, %v1972_v4  ;;  %v3354_v4 = vld [vmem:[%s5239_s7 + $0x1] ss:$8 sm:$0x3]  ;;  %vm787_vm12 = vcmask 1044480  }
 0x1de   : > { %v2035_v19 = vsel %vm2026_vm13, %v2034_v51, %v1997_v17  ;;  %v4571_v17 = vsub.s32 0, %v490_v63  ;;  %v2072_v33 = vrot.slane %v3354_v4, %v4573_v43 }
 0x1e0   : > { %v2048_v59 = vrot.slane %v2043_v46, %v4571_v17  ;;  %v2068_v48 = vrot.slane %v3354_v4, %v4571_v17  ;;  %v3359_v4 = vld [vmem:[%s5239_s7 + $0x7] ss:$8 sm:$0x3] }
 0x1e2   : > { %v1799_v2 = vpop.permute.xlu0 %1798 }
 0x1e3   : > { %v2027_v31 = vsel %vm2026_vm13, %v2025_v32, %v1799_v2  ;;  %v3356_v2 = vld [vmem:[%s5239_s7 + $0x3] ss:$8 sm:$0x3]  ;;  %vm3656_vm13 = vmmov 1  }
 0x1e6   : > { %v2014_v3 = vpop.permute.xlu1 %2013 }
 0x1e7   : > { %v4446_v7 = vsel %vm2028_vm14, %v2035_v19, %v2014_v3 }
 0x1e8   : > { %2039 = vrot.lane.b32.xlu1 %v4446_v7, %s3649_s22 }
 0x1ec   : > { %2059 = vrot.lane.b32.xlu1 %v4446_v7, %s5299_s17 }
 0x1f0   : > { %2079 = vrot.lane.b32.xlu1 %v4446_v7, %s3650_s24 }
 0x1f4   : > { %2099 = vrot.lane.b32.xlu1 %v4446_v7, %s3648_s16  ;;  %v1824_v28 = vpop.permute.xlu0 %1823 }
 0x1f5   : > { %v4463_v60 = vsel %vm2028_vm14, %v2027_v31, %v1824_v28  ;;  %v2088_v31 = vrot.slane %v3355_v61, %v4571_v17  ;;  %v2092_v28 = vrot.slane %v3355_v61, %v4573_v43  ;;  %vm3449_vm14 = vmpackc.low %vm787_vm12, %vm3656_vm13 }
 0x1f6   : > { %2037 = vrot.lane.b32.xlu0 %v4463_v60, %s3649_s22  ;;  %v4517_v53 = vpop.permute.xlu1 %503  ;;  %s3415_s22 = sshll.u32 %s3785_s23, 8 }
 0x1f8   : > { %2119 = vrot.lane.b32.xlu1 %v4446_v7, %s3651_s14  ;;  %v4547_v54 = vpop.permute.xlu0 %501 }
 0x1fa   : > { %2057 = vrot.lane.b32.xlu0 %v4463_v60, %s5299_s17  ;;  %v4531_v1 = vpop.permute.xlu1 %547  ;;  %s5386_s17 = smov 48  }
 0x1fc   : > { %2139 = vrot.lane.b32.xlu1 %v4446_v7, %s3652_s21  ;;  %v4555_v41 = vpop.permute.xlu0 %545 }
 0x1fd   : > { %v550_v61 = vsel %vm549_vm2, %v4555_v41, %v4531_v1 }
 0x1fe   : > { %2077 = vrot.lane.b32.xlu0 %v4463_v60, %s3650_s24  ;;  %v4539_v11 = vpop.permute.xlu1 %480 }
 0x200   : > { %2159 = vrot.lane.b32.xlu1 %v4446_v7, %s5301_s26  ;;  %v4561_v34 = vpop.permute.xlu0 %478 }
 0x202   : > { %2097 = vrot.lane.b32.xlu0 %v4463_v60, %s3648_s16  ;;  %s5384_s16 = smov 112  }
 0x204   : > { %2179 = vrot.lane.b32.xlu1 %v4446_v7, %s3653_s25 }
 0x206   : > { %2117 = vrot.lane.b32.xlu0 %v4463_v60, %s3651_s14 }
 0x208   : > { %525 = vrot.lane.b32.xlu1 %v4419_v20, %s3650_s24 }
 0x20a   : > { %2137 = vrot.lane.b32.xlu0 %v4463_v60, %s3652_s21 }
 0x20c   : > { %569 = vrot.lane.b32.xlu1 %v4419_v20, %s3651_s14 }
 0x20e   : > { %2157 = vrot.lane.b32.xlu0 %v4463_v60, %s5301_s26 }
 0x210   : > { %613 = vrot.lane.b32.xlu1 %v4419_v20, %s5301_s26 }
 0x212   : > { %2177 = vrot.lane.b32.xlu0 %v4463_v60, %s3653_s25 }
 0x214   : > { %591 = vrot.lane.b32.xlu1 %v4419_v20, %s3652_s21 }
 0x216   : > { %523 = vrot.lane.b32.xlu0 %v4412_v27, %s3650_s24  ;;  %s5388_s24 = smov 16  }
 0x218   : > { %635 = vrot.lane.b32.xlu1 %v4419_v20, %s3653_s25 }
 0x21a   : > { %567 = vrot.lane.b32.xlu0 %v4412_v27, %s3651_s14  ;;  %s4862_s14 = scalar_lea.vmem %s5244_s12, %s3415_s22  ;;  %s5387_s22 = smov 32  }
 0x21c   : > { %2224 = vperm.xlu1 %3575, %v2210_v50   ;;  %v2112_v50 = vrot.slane %v3356_v2, %v4573_v43 }
 0x21e   : > { %611 = vrot.lane.b32.xlu0 %v4412_v27, %s5301_s26  ;;  %s456_s26 = sand.u32 1, %s3631_s28  }
 0x220   : > { %2229 = vperm.xlu1 %3575, %v2211_v52  }
 0x222   : > { %589 = vrot.lane.b32.xlu0 %v4412_v27, %s3652_s21  ;;  %s5382_s21 = smov 64  }
 0x224   : > { %2239 = vperm.xlu1 %3575, %v2213_v35  }
 0x226   : > { %633 = vrot.lane.b32.xlu0 %v4412_v27, %s3653_s25  ;;  %s5383_s25 = smov 96  }
 0x228   : > { %2249 = vperm.xlu1 %3575, %v2215_v9  }
 0x22a   : > { %2219 = vperm.xlu0 %3574, %v2209_v25   ;;  %v2108_v25 = vrot.slane %v3356_v2, %v4571_v17  ;;  %v551_v2 = vsel %vm549_vm2, %v4531_v1, %v4555_v41 }
 0x22c   : > { %724 = vperm.xlu1 %3575, %v714_v47   ;;  %v2132_v47 = vrot.slane %v3357_v8, %v4573_v43 }
 0x22e   : > { %2234 = vperm.xlu0 %3574, %v2212_v44  }
 0x230   : > { %734 = vperm.xlu1 %3575, %v716_v0  }
 0x232   : > { %2244 = vperm.xlu0 %3574, %v2214_v16  }
 0x234   : > { %744 = vperm.xlu1 %3575, %v718_v12  }
 0x236   : > { %2254 = vperm.xlu0 %3574, %v2216_v38  }
 0x238   : > { %754 = vperm.xlu1 %3575, %v720_v22  }
 0x23a   : > { %729 = vperm.xlu0 %3574, %v715_v21   ;;  %v2128_v21 = vrot.slane %v3357_v8, %v4571_v17 }
 0x23c   : > { %2424 = vrot.lane.b32.xlu1 %v3371_v45, %s5382_s21 }
 0x23e   : > { %739 = vperm.xlu0 %3574, %v717_v10  }
 0x242   : > { %749 = vperm.xlu0 %3574, %v719_v13  }
 0x246   : > { %759 = vperm.xlu0 %3574, %v721_v37  }
 0x24a   : > { %2576 = vperm.xlu0 %3574, %v2573_v29  }
 0x25a   : > { %v2040_v5 = vpop.permute.xlu1 %2039 }
 0x25e   : > { %v2060_v40 = vpop.permute.xlu1 %2059 }
 0x262   : > { %v2080_v30 = vpop.permute.xlu1 %2079 }
 0x266   : > { %v2100_v58 = vpop.permute.xlu1 %2099 }
 0x268   : > { %v2038_v57 = vpop.permute.xlu0 %2037 }
 0x269   : > { %v2041_v18 = vsel %vm484_vm15, %v2038_v57, %v2040_v5  ;;  %v2042_v56 = vsel %vm484_vm15, %v2040_v5, %v2038_v57 }
 0x26a   : > { %v2120_v39 = vpop.permute.xlu1 %2119  ;;  %v2055_v14 = vmul.f32 %v2048_v59, %v2042_v56  ;;  %v2056_v19 = vmul.f32 %v2052_v42, %v2041_v18 }
 0x26c   : > { %v2058_v36 = vpop.permute.xlu0 %2057 }
 0x26d   : > { %v2061_v6 = vsel %vm505_vm0, %v2058_v36, %v2060_v40  ;;  %v2062_v51 = vsel %vm505_vm0, %v2060_v40, %v2058_v36  ;;  %v3329_v40 = vld [vmem:[%s5239_s7 + $0x1] ss:$8 sm:$0x3]  ;;  %v2172_v36 = vrot.slane %v3359_v4, %v4573_v43 }
 0x26e   : > { %v2075_v3 = vmul.f32 %v2068_v48, %v2062_v51  ;;  %v2076_v49 = vmul.f32 %v2072_v33, %v2061_v6  ;;  %v2140_v55 = vpop.permute.xlu1 %2139  ;;  %v514_v42 = vrot.slane %v3329_v40, %v4571_v17  ;;  %v518_v48 = vrot.slane %v3329_v40, %v4573_v43 }
 0x26f   : > { %v558_v33 = vrot.slane %v3331_v15, %v4571_v17  ;;  %v506_v51 = vsel %vm505_vm0, %v4547_v54, %v4517_v53 }
 0x270   : > { %v3456_v24 = vpack.c.bf16 %v2075_v3, %v2055_v14  ;;  %v2078_v26 = vpop.permute.xlu0 %2077  ;;  %v3454_v32 = vpack.c.bf16 %v2076_v49, %v2056_v19  ;;  %v562_v14 = vrot.slane %v3331_v15, %v4573_v43  ;;  %v507_v49 = vsel %vm505_vm0, %v4517_v53, %v4547_v54 }
 0x271   : > { %v2081_v44 = vsel %vm527_vm1, %v2078_v26, %v2080_v30  ;;  %v2082_v52 = vsel %vm527_vm1, %v2080_v30, %v2078_v26  ;;  %vm2646_vm0 = vcmask 1042432  }
 0x272   : > { %3455 = vmatprep.subr.bf16.mxu1 %v3454_v32  ;;  %v2160_v35 = vpop.permute.xlu1 %2159  ;;  %v2095_v10 = vmul.f32 %v2088_v31, %v2082_v52  ;;  %v2096_v0 = vmul.f32 %v2092_v28, %v2081_v44  ;;  %v3330_v52 = vld [vmem:[%s5239_s7 + $0x2] ss:$8 sm:$0x3] }
 0x273   : > { %3457 = vmatpush1.bf16.msra.mxu1 %v3456_v24  ;;  %v540_v40 = vrot.slane %v3330_v52, %v4573_v43 }
 0x274   : > { %v2098_v16 = vpop.permute.xlu0 %2097 }
 0x275   : > { %v2101_v38 = vsel %vm549_vm2, %v2098_v16, %v2100_v58  ;;  %v2102_v9 = vsel %vm549_vm2, %v2100_v58, %v2098_v16  ;;  %v3358_v58 = vld [vmem:[%s5239_s7 + $0x6] ss:$8 sm:$0x3]  ;;  %v485_v16 = vsel %vm484_vm15, %v4561_v34, %v4539_v11  ;;  %vm2652_vm2 = vcmask 1046528  }
 0x276   : > { %v2115_v13 = vmul.f32 %v2108_v25, %v2102_v9  ;;  %v2116_v12 = vmul.f32 %v2112_v50, %v2101_v38  ;;  %v2180_v46 = vpop.permute.xlu1 %2179  ;;  %v2148_v18 = vrot.slane %v3358_v58, %v4571_v17  ;;  %v2152_v56 = vrot.slane %v3358_v58, %v4573_v43 }
 0x277   : > { %v521_v25 = vmul.f32 %v514_v42, %v507_v49  ;;  %v522_v50 = vmul.f32 %v518_v48, %v506_v51 }
 0x278   : > { %v3460_v5 = vpack.c.bf16 %v2115_v13, %v2095_v10  ;;  %v2118_v37 = vpop.permute.xlu0 %2117  ;;  %v3458_v22 = vpack.c.bf16 %v2116_v12, %v2096_v0  ;;  %v565_v10 = vmul.f32 %v558_v33, %v551_v2  ;;  %v566_v0 = vmul.f32 %v562_v14, %v550_v61  ;;  %v4692_v13 = vld [vmem:[%s5239_s7] sm:$0xff] }
 0x279   : > { %v2121_v29 = vsel %vm571_vm3, %v2118_v37, %v2120_v39  ;;  %v2122_v45 = vsel %vm571_vm3, %v2120_v39, %v2118_v37 }
 0x27a   : > { %v2135_v30 = vmul.f32 %v2128_v21, %v2121_v29  ;;  %v2136_v63 = vmul.f32 %v2132_v47, %v2122_v45  ;;  %3459 = vmatprep.subr.bf16.mxu1 %v3458_v22  ;;  %v526_v6 = vpop.permute.xlu1 %525  ;;  %v536_v22 = vrot.slane %v3330_v52, %v4571_v17  ;;  %v661_v29 = vrot.slane %v521_v25, 4 }
 0x27b   : > { %3461 = vmatpush1.bf16.msra.mxu1 %v3460_v5  ;;  %v662_v45 = vrot.slane %v522_v50, 4  ;;  %v667_v42 = vrot.slane %v565_v10, 4  ;;  %v668_v48 = vrot.slane %v566_v0, 4 }
 0x27c   : > { %v3464_v57 = vpack.c.bf16 %v2135_v30, %v4463_v60  ;;  %v2138_v39 = vpop.permute.xlu0 %2137  ;;  %v3462_v59 = vpack.c.bf16 %v2136_v63, %v4446_v7  ;;  %v2168_v60 = vrot.slane %v3359_v4, %v4571_v17  ;;  %v3360_v7 = vld [vmem:[%s5239_s7 + $0x10] ss:$8 sm:$0x3]  ;;  %v3332_v4 = vld [vmem:[%s5239_s7 + $0x5] ss:$8 sm:$0x3] }
 0x27d   : > { %v2141_v19 = vsel %vm593_vm4, %v2138_v39, %v2140_v55  ;;  %v2142_v3 = vsel %vm593_vm4, %v2140_v55, %v2138_v39  ;;  %v487_v55 = vld [vmem:[%s5239_s7] ss:$8 sm:$0x3]  ;;  %v2188_v26 = vrot.slane %v3360_v7, %v4571_v17  ;;  %v2192_v32 = vrot.slane %v3360_v7, %v4573_v43 }
 0x27e   : > { %3463 = vmatprep.subr.bf16.mxu1 %v3462_v59  ;;  %v2155_v31 = vmul.f32 %v2148_v18, %v2141_v19  ;;  %v2156_v28 = vmul.f32 %v2152_v56, %v2142_v3  ;;  %v492_v8 = vrot.slane %v487_v55, %v4571_v17  ;;  %v496_v44 = vrot.slane %v487_v55, %v4573_v43  ;;  %v570_v47 = vpop.permute.xlu1 %569  ;;  %v2200_v59 = vld [vmem:[%s5239_s7 + $0x18] sm:$0x1]  ;;  %v2199_v3 = vld [vmem:[%s5239_s7 + $0x10] sm:$0x1] }
 0x27f   : > { %3465 = vmatpush1.bf16.msra.mxu1 %v3464_v57  ;;  %v584_v14 = vrot.slane %v3332_v4, %v4573_v43 }
 0x280   : > { %v2158_v24 = vpop.permute.xlu0 %2157  ;;  %v500_v30 = vmul.f32 %v496_v44, %v485_v16  ;;  %v3335_v44 = vld [vmem:[%s5239_s7 + $0x10] ss:$8 sm:$0x3] }
 0x281   : > { %v2161_v53 = vsel %vm615_vm5, %v2158_v24, %v2160_v35  ;;  %v2162_v54 = vsel %vm615_vm5, %v2160_v35, %v2158_v24  ;;  %v486_v35 = vsel %vm484_vm15, %v4539_v11, %v4561_v34  ;;  %v4701_v11 = vld [vmem:[%s5239_s7 + $0x8] sm:$0xff]  ;;  %vm762_vm15 = vcmask 367616  }
 0x282   : > { %v2175_v1 = vmul.f32 %v2168_v60, %v2161_v53  ;;  %v2176_v41 = vmul.f32 %v2172_v36, %v2162_v54  ;;  %v499_v15 = vmul.f32 %v492_v8, %v486_v35  ;;  %v614_v56 = vpop.permute.xlu1 %613  ;;  %v580_v60 = vrot.slane %v3332_v4, %v4571_v17  ;;  %v2201_v53 = vld [vmem:[%s5236_s4] sm:$0xff]  ;;  %v2202_v8 = vld [vmem:[%s5236_s4 + $0x8] sm:$0xff] }
 0x283   : > { %v697_v36 = vsel %vm687_vm7, %v500_v30, %v662_v45  ;;  %v689_v10 = vrot.slane %v4701_v11, 4 }
 0x284   : > { %v3468_v38 = vpack.c.bf16 %v2175_v1, %v2155_v31  ;;  %v2178_v9 = vpop.permute.xlu0 %2177  ;;  %v3466_v21 = vpack.c.bf16 %v2176_v41, %v2156_v28  ;;  %v696_v7 = vsel %vm687_vm7, %v499_v15, %v661_v29 }
 0x285   : > { %v2181_v12 = vsel %vm637_vm6, %v2178_v9, %v2180_v46  ;;  %v2182_v5 = vsel %vm637_vm6, %v2180_v46, %v2178_v9  ;;  %v658_v9 = vld [vmem:[%s5239_s7 + $0x18] sm:$0x1] }
 0x286   : > { %v2195_v34 = vmul.f32 %v2188_v26, %v2181_v12  ;;  %v2196_v37 = vmul.f32 %v2192_v32, %v2182_v5  ;;  %3467 = vmatprep.subr.bf16.mxu1 %v3466_v21  ;;  %v3333_v32 = vld [vmem:[%s5239_s7 + $0x6] ss:$8 sm:$0x3]  ;;  %v592_v41 = vpop.permute.xlu1 %591  ;;  %v657_v21 = vld [vmem:[%s5239_s7 + $0x10] sm:$0x1] }
 0x287   : > { %3469 = vmatpush1.bf16.msra.mxu1 %v3468_v38  ;;  %v602_v35 = vrot.slane %v3333_v32, %v4571_v17  ;;  %v606_v38 = vrot.slane %v3333_v32, %v4573_v43  ;;  %v690_v29 = vrot.slane %v657_v21, 4 }
 0x288   : > { %v3472_v63 = vpack.c.bf16 %v4692_v13, %v2195_v34  ;;  %v524_v58 = vpop.permute.xlu0 %523  ;;  %v3470_v46 = vpack.c.bf16 %v4701_v11, %v2196_v37  ;;  %v646_v34 = vrot.slane %v3335_v44, %v4571_v17  ;;  %v650_v37 = vrot.slane %v3335_v44, %v4573_v43 }
 0x289   : > { %v528_v57 = vsel %vm527_vm1, %v524_v58, %v526_v6  ;;  %v529_v39 = vsel %vm527_vm1, %v526_v6, %v524_v58  ;;  %v3334_v6 = vld [vmem:[%s5239_s7 + $0x7] ss:$8 sm:$0x3]  ;;  %v692_v11 = vrot.slane %v658_v9, 4  ;;  %vm2650_vm1 = vcmask 1045504  }
 0x28a   : > { %v543_v33 = vmul.f32 %v536_v22, %v529_v39  ;;  %v544_v18 = vmul.f32 %v540_v40, %v528_v57  ;;  %3471 = vmatprep.subr.bf16.mxu1 %v3470_v46  ;;  %v624_v54 = vrot.slane %v3334_v6, %v4571_v17  ;;  %v628_v26 = vrot.slane %v3334_v6, %v4573_v43  ;;  %v636_v58 = vpop.permute.xlu1 %635 }
 0x28b   : > { %3473 = vmatpush1.bf16.msra.mxu1 %v3472_v63 }
 0x28c   : > { %v568_v51 = vpop.permute.xlu0 %567  ;;  %3361 = vmatprep.subr.msk.mxu1 %vm2282_vm9, %v2200_v59  ;;  %v699_v19 = vsel %vm687_vm7, %v544_v18, %v668_v48  ;;  %v698_v49 = vsel %vm687_vm7, %v543_v33, %v667_v42 }
 0x28d   : > { %v572_v61 = vsel %vm571_vm3, %v568_v51, %v570_v47  ;;  %v573_v2 = vsel %vm571_vm3, %v570_v47, %v568_v51  ;;  %v3440_v55 = vpack.c.bf16 %v699_v19, %v697_v36  ;;  %v3442_v24 = vpack.c.bf16 %v698_v49, %v696_v7  ;;  %v2205_v51 = vld [vmem:[%s5236_s4 + $0x20] sm:$0xff]  ;;  %v2206_v19 = vld [vmem:[%s5236_s4 + $0x28] sm:$0xff]  ;;  %v2207_v49 = vld [vmem:[%s5236_s4 + $0x30] sm:$0xff] }
 0x28e   : > { %v587_v31 = vmul.f32 %v580_v60, %v572_v61  ;;  %v588_v28 = vmul.f32 %v584_v14, %v573_v2  ;;  %v688_v47 = vrot.slane %v4692_v13, 4  ;;  %v2203_v13 = vld [vmem:[%s5236_s4 + $0x10] sm:$0xff]  ;;  %v706_v14 = vld [vmem:[%s5234_s2] sm:$0xff]  ;;  %v2208_v2 = vld [vmem:[%s5236_s4 + $0x38] sm:$0xff] }
 0x28f   : > { %3441 = vmatprep.subr.bf16.mxu0 %v3440_v55  ;;  %3362 = vmatpush1.msk.msra.mxu1 %vm2282_vm9, %v2199_v3  ;;  %v707_v3 = vld [vmem:[%s5234_s2 + $0x8] sm:$0xff]  ;;  %v708_v61 = vld [vmem:[%s5234_s2 + $0x10] sm:$0xff]  ;;  %v709_v55 = vld [vmem:[%s5234_s2 + $0x18] sm:$0xff] }
 0x290   : > { %v612_v1 = vpop.permute.xlu0 %611  ;;  %3443 = vmatpush1.bf16.msra.mxu0 %v3442_v24  ;;  %3363 = vmatmul.mubr.msk.f32.vlgmr.msra.gmra.mrb[8].mxu1 %vm2257_vm10, %v2201_v53  ;;  %v673_v0 = vrot.slane %v587_v31, 4  ;;  %v674_v12 = vrot.slane %v588_v28, 4  ;;  %v691_v60 = vsel %vm687_vm7, %v688_v47, %v690_v29  ;;  %v710_v24 = vld [vmem:[%s5234_s2 + $0x20] sm:$0xff]  ;;  %v711_v53 = vld [vmem:[%s5234_s2 + $0x28] sm:$0xff] }
 0x291   : > { %v616_v25 = vsel %vm615_vm5, %v612_v1, %v614_v56  ;;  %v617_v50 = vsel %vm615_vm5, %v614_v56, %v612_v1  ;;  %2359 = vmatprep.mubr.f32.mxu1 %v3654_v62 }
 0x292   : > { %v631_v52 = vmul.f32 %v624_v54, %v616_v25  ;;  %v632_v16 = vmul.f32 %v628_v26, %v617_v50  ;;  %v701_v46 = vsel %vm687_vm7, %v4419_v20, %v674_v12  ;;  %v700_v57 = vsel %vm687_vm7, %v4412_v27, %v673_v0  ;;  %v2204_v20 = vld [vmem:[%s5236_s4 + $0x18] sm:$0xff]  ;;  %v712_v54 = vld [vmem:[%s5234_s2 + $0x30] sm:$0xff] }
 0x293   : > { %v693_v27 = vsel %vm687_vm7, %v689_v10, %v692_v11  ;;  %v713_v26 = vld [vmem:[%s5234_s2 + $0x38] sm:$0xff] }
 0x294   : > { %v590_v5 = vpop.permute.xlu0 %589  ;;  %3364 = vmatmul.mubr.msk.f32.gmra.mrb[10].mxu1 %vm2257_vm10, %v2202_v8  ;;  %v679_v45 = vrot.slane %v631_v52, 4  ;;  %v680_v15 = vrot.slane %v632_v16, 4 }
 0x295   : > { %v594_v22 = vsel %vm593_vm4, %v590_v5, %v592_v41  ;;  %v595_v40 = vsel %vm593_vm4, %v592_v41, %v590_v5  ;;  %2365 = vmatprep.mubr.f32.mxu1 %v3654_v62 }
 0x296   : > { %v609_v30 = vmul.f32 %v602_v35, %v594_v22  ;;  %v610_v63 = vmul.f32 %v606_v38, %v595_v40 }
 0x298   : > { %v634_v43 = vpop.permute.xlu0 %633  ;;  %3365 = vmatmul.mubr.msk.f32.gmra.mrb[12].mxu1 %vm2257_vm10, %v2203_v13  ;;  %v703_v4 = vsel %vm687_vm7, %v610_v63, %v680_v15  ;;  %v702_v39 = vsel %vm687_vm7, %v609_v30, %v679_v45 }
 0x299   : > { %v638_v59 = vsel %vm637_vm6, %v634_v43, %v636_v58  ;;  %v639_v42 = vsel %vm637_vm6, %v636_v58, %v634_v43  ;;  %v3444_v48 = vpack.c.bf16 %v703_v4, %v701_v46  ;;  %2371 = vmatprep.mubr.f32.mxu1 %v3654_v62  ;;  %v3446_v33 = vpack.c.bf16 %v702_v39, %v700_v57 }
 0x29a   : > { %v653_v18 = vmul.f32 %v646_v34, %v638_v59  ;;  %v654_v56 = vmul.f32 %v650_v37, %v639_v42 }
 0x29b   : > { %3445 = vmatprep.subr.bf16.mxu0 %v3444_v48  ;;  %v2225_v32 = vpop.permute.xlu1 %2224 }
 0x29c   : > { %v704_v36 = vsel %vm687_vm7, %v653_v18, %v688_v47  ;;  %v705_v23 = vsel %vm687_vm7, %v654_v56, %v689_v10  ;;  %3447 = vmatpush1.bf16.msra.mxu0 %v3446_v33  ;;  %3366 = vmatmul.mubr.msk.f32.gmra.mrb[14].mxu1 %vm2257_vm10, %v2204_v20 }
 0x29d   : > { %v3448_v7 = vpack.c.bf16 %v693_v27, %v705_v23  ;;  %2377 = vmatprep.mubr.f32.mxu1 %v3654_v62  ;;  %v3451_v6 = vpack.c.bf16 %v691_v60, %v704_v36 }
 0x29f   : > { %3450 = vmatprep.subr.msk.bf16.mxu0 %vm3449_vm14, %v3448_v7  ;;  %v2230_v31 = vpop.permute.xlu1 %2229 }
 0x2a0   : > { %3453 = vmatpush1.bf16.msk.msra.mxu0 %vm3449_vm14, %v3451_v6  ;;  %3367 = vmatmul.mubr.msk.f32.gmra.mrb[16].mxu1 %vm2257_vm10, %v2205_v51 }
 0x2a1   : > { %2383 = vmatprep.mubr.f32.mxu1 %v3654_v62 }
 0x2a3   : > { %3338 = vmatmul.mubr.msk.f32.vlgmr.msra.gmra.mrb[0].mxu0 %vm762_vm15, %v706_v14  ;;  %v2240_v41 = vpop.permute.xlu1 %2239 }
 0x2a4   : > { %3368 = vmatmul.mubr.msk.f32.gmra.mrb[18].mxu1 %vm2257_vm10, %v2206_v19  ;;  %862 = vmatprep.mubr.f32.mxu0 %v3654_v62 }
 0x2a5   : > { %2389 = vmatprep.mubr.f32.mxu1 %v3654_v62 }
 0x2a7   : > { %3339 = vmatmul.mubr.msk.f32.gmra.mrb[2].mxu0 %vm762_vm15, %v707_v3  ;;  %v2250_v9 = vpop.permute.xlu1 %2249 }
 0x2a8   : > { %3369 = vmatmul.mubr.msk.f32.gmra.mrb[20].mxu1 %vm2257_vm10, %v2207_v49  ;;  %868 = vmatprep.mubr.f32.mxu0 %v3654_v62 }
 0x2a9   : > { %2395 = vmatprep.mubr.f32.mxu1 %v3654_v62  ;;  %v2220_v28 = vpop.permute.xlu0 %2219 }
 0x2ab   : > { %3340 = vmatmul.mubr.msk.f32.gmra.mrb[4].mxu0 %vm762_vm15, %v708_v61  ;;  %v725_v22 = vpop.permute.xlu1 %724 }
 0x2ac   : > { %3370 = vmatmul.mubr.msk.f32.gmra.mrb[22].mxu1 %vm2257_vm10, %v2208_v2  ;;  %874 = vmatprep.mubr.f32.mxu0 %v3654_v62 }
 0x2ad   : > { %2735 = vmatprep.mubr.f32.mxu1 %v3654_v62  ;;  %v2235_v52 = vpop.permute.xlu0 %2234 }
 0x2af   : > { %3341 = vmatmul.mubr.msk.f32.gmra.mrb[6].mxu0 %vm762_vm15, %v709_v55  ;;  %v735_v46 = vpop.permute.xlu1 %734 }
 0x2b0   : > { %880 = vmatprep.mubr.f32.mxu0 %v3654_v62 }
 0x2b1   : > { %v2245_v34 = vpop.permute.xlu0 %2244 }
 0x2b3   : > { %3342 = vmatmul.mubr.msk.f32.gmra.mrb[8].mxu0 %vm762_vm15, %v710_v24  ;;  %v745_v6 = vpop.permute.xlu1 %744 }
 0x2b4   : > { %886 = vmatprep.mubr.f32.mxu0 %v3654_v62 }
 0x2b5   : > { %v2255_v30 = vpop.permute.xlu0 %2254 }
 0x2b7   : > { %3343 = vmatmul.mubr.msk.f32.gmra.mrb[10].mxu0 %vm762_vm15, %v711_v53 }
 0x2b8   : > { %892 = vmatprep.mubr.f32.mxu0 %v3654_v62 }
 0x2b9   : > { %v730_v18 = vpop.permute.xlu0 %729 }
 0x2bb   : > { %3344 = vmatmul.mubr.msk.f32.gmra.mrb[12].mxu0 %vm762_vm15, %v712_v54 }
 0x2bc   : > { %898 = vmatprep.mubr.f32.mxu0 %v3654_v62 }
 0x2bf   : > { %3345 = vmatmul.mubr.msk.f32.gmra.mrb[14].mxu0 %vm762_vm15, %v713_v26 }
 0x2c0   : > { %2492 = vmatprep.mubr.f32.mxu0 %v3654_v62 }
 0x363   : > { %v2355_v1 = vpop.f32.mrb[8].mxu1 }
 0x364   : > { %v2356_v25 = vadd.f32 %v2355_v1, %v2220_v28  ;;  %v2357_v50 = vpop.f32.mrb[9].mxu1  ;;  %v755_v1 = vpop.permute.xlu1 %754 }
 0x365   : > { %v2358_v8 = vadd.f32 %v2357_v50, %v2220_v28 }
 0x366   : > { %2402 = vst [vmem:[%s4862_s14 + $0x80] sm:$0xff] %v2356_v25 }
 0x367   : > { %2403 = vst [vmem:[%s4862_s14 + $0x88] sm:$0xff] %v2358_v8  ;;  %v2361_v44 = vpop.f32.mrb[10].mxu1 }
 0x368   : > { %v2362_v16 = vadd.f32 %v2361_v44, %v2225_v32  ;;  %v2363_v35 = vpop.f32.mrb[11].mxu1 }
 0x369   : > { %v2364_v38 = vadd.f32 %v2363_v35, %v2225_v32 }
 0x36a   : > { %2404 = vst [vmem:[%s4862_s14 + $0x90] sm:$0xff] %v2362_v16  ;;  %v3476_v21 = vpack.c.bf16 %v2362_v16, %v2356_v25 }
 0x36b   : > { %2405 = vst [vmem:[%s4862_s14 + $0x98] sm:$0xff] %v2364_v38  ;;  %v3474_v47 = vpack.c.bf16 %v2364_v38, %v2358_v8  ;;  %v2367_v10 = vpop.f32.mrb[12].mxu1 }
 0x36c   : > { %v2368_v0 = vadd.f32 %v2367_v10, %v2230_v31  ;;  %v2369_v12 = vpop.f32.mrb[13].mxu1 }
 0x36d   : > { %v2370_v5 = vadd.f32 %v2369_v12, %v2230_v31  ;;  %3475 = vmatprep.subr.bf16.mxu0 %v3474_v47  ;;  %v740_v31 = vpop.permute.xlu0 %739 }
 0x36e   : > { %2406 = vst [vmem:[%s4862_s14 + $0xa0] sm:$0xff] %v2368_v0  ;;  %3477 = vmatpush1.bf16.msra.mxu0 %v3476_v21 }
 0x36f   : > { %2407 = vst [vmem:[%s4862_s14 + $0xa8] sm:$0xff] %v2370_v5  ;;  %v2373_v37 = vpop.f32.mrb[14].mxu1 }
 0x370   : > { %v2374_v40 = vadd.f32 %v2373_v37, %v2235_v52  ;;  %v2375_v13 = vpop.f32.mrb[15].mxu1 }
 0x371   : > { %v2376_v11 = vadd.f32 %v2375_v13, %v2235_v52 }
 0x372   : > { %2408 = vst [vmem:[%s4862_s14 + $0xb0] sm:$0xff] %v2374_v40  ;;  %v3480_v29 = vpack.c.bf16 %v2374_v40, %v2368_v0  ;;  %v750_v0 = vpop.permute.xlu0 %749 }
 0x373   : > { %2409 = vst [vmem:[%s4862_s14 + $0xb8] sm:$0xff] %v2376_v11  ;;  %v3478_v45 = vpack.c.bf16 %v2376_v11, %v2370_v5  ;;  %v2379_v15 = vpop.f32.mrb[16].mxu1 }
 0x374   : > { %v2380_v63 = vadd.f32 %v2379_v15, %v2240_v41  ;;  %v2381_v58 = vpop.f32.mrb[17].mxu1 }
 0x375   : > { %v2382_v43 = vadd.f32 %v2381_v58, %v2240_v41  ;;  %3479 = vmatprep.subr.bf16.mxu0 %v3478_v45 }
 0x376   : > { %2410 = vst [vmem:[%s4862_s14 + $0xc0] sm:$0xff] %v2380_v63  ;;  %v858_v4 = vpop.f32.mrb[0].mxu0  ;;  %3481 = vmatpush1.bf16.msra.mxu0 %v3480_v29  ;;  %v760_v15 = vpop.permute.xlu0 %759 }
 0x377   : > { %2411 = vst [vmem:[%s4862_s14 + $0xc8] sm:$0xff] %v2382_v43  ;;  %v4874_v57 = vadd.f32 %v858_v4, %v725_v22  ;;  %v860_v39 = vpop.f32.mrb[1].mxu0  ;;  %v2385_v59 = vpop.f32.mrb[18].mxu1 }
 0x378   : > { %v861_v42 = vadd.f32 %v860_v39, %v725_v22  ;;  %v2386_v48 = vadd.f32 %v2385_v59, %v2245_v34  ;;  %v2387_v33 = vpop.f32.mrb[19].mxu1  ;;  %v2662_v39 = vld [vmem:[%s5242_s10 + $0x8] sm:$0xff]  ;;  %v2664_v59 = vld [vmem:[%s5242_s10 + $0x18] sm:$0xff] }
 0x379   : > { %905 = vst [vmem:[%s4862_s14] sm:$0xff] %v4874_v57  ;;  %v2388_v20 = vadd.f32 %v2387_v33, %v2245_v34  ;;  %v2663_v33 = vld [vmem:[%s5242_s10 + $0x10] sm:$0xff] }
 0x37a   : > { %906 = vst [vmem:[%s4862_s14 + $0x8] sm:$0xff] %v861_v42  ;;  %2412 = vst [vmem:[%s4862_s14 + $0xd0] sm:$0xff] %v2386_v48  ;;  %v3484_v56 = vpack.c.bf16 %v2386_v48, %v2380_v63  ;;  %v864_v27 = vpop.f32.mrb[2].mxu0  ;;  %v3506_v48 = vpack.c.bf16 %v2664_v59, %v2662_v39  ;;  %v2765_v39 = vld [vmem:[%s5243_s11 + $0x88] sm:$0xff]  ;;  %v2750_v59 = vld [vmem:[%s5243_s11 + $0x10] sm:$0xff] }
 0x37b   : > { %2413 = vst [vmem:[%s4862_s14 + $0xd8] sm:$0xff] %v2388_v20  ;;  %v3482_v60 = vpack.c.bf16 %v2388_v20, %v2382_v43  ;;  %v865_v36 = vadd.f32 %v864_v27, %v730_v18  ;;  %v866_v23 = vpop.f32.mrb[3].mxu0  ;;  %v2391_v7 = vpop.f32.mrb[20].mxu1 }
 0x37c   : > { %v867_v51 = vadd.f32 %v866_v23, %v730_v18  ;;  %v2392_v14 = vadd.f32 %v2391_v7, %v2250_v9  ;;  %v2393_v19 = vpop.f32.mrb[21].mxu1  ;;  %3507 = vmatprep.subr.bf16.mxu1 %v3506_v48  ;;  %v2577_v18 = vpop.permute.xlu0 %2576  ;;  %v2751_v48 = vld [vmem:[%s5243_s11 + $0x18] sm:$0xff] }
 0x37d   : > { %907 = vst [vmem:[%s4862_s14 + $0x10] sm:$0xff] %v865_v36  ;;  %v3492_v3 = vpack.c.bf16 %v865_v36, %v4874_v57  ;;  %v2394_v49 = vadd.f32 %v2393_v19, %v2250_v9  ;;  %3483 = vmatprep.subr.bf16.mxu0 %v3482_v60  ;;  %v2425_v9 = vpop.permute.xlu1 %2424  ;;  %v921_v57 = vld [vmem:[%s5240_s8] sm:$0x1] }
 0x37e   : > { %908 = vst [vmem:[%s4862_s14 + $0x18] sm:$0xff] %v867_v51  ;;  %v3490_v61 = vpack.c.bf16 %v867_v51, %v861_v42  ;;  %2414 = vst [vmem:[%s4862_s14 + $0xe0] sm:$0xff] %v2392_v14  ;;  %v870_v2 = vpop.f32.mrb[4].mxu0  ;;  %3485 = vmatpush1.bf16.msra.mxu0 %v3484_v56  ;;  %v2661_v42 = vld [vmem:[%s5242_s10] sm:$0xff]  ;;  %v2582_v56 = vrot.slane %v2577_v18, %v4571_v17 }
 0x37f   : > { %2415 = vst [vmem:[%s4862_s14 + $0xe8] sm:$0xff] %v2394_v49  ;;  %v871_v55 = vadd.f32 %v870_v2, %v735_v46  ;;  %v872_v24 = vpop.f32.mrb[5].mxu0  ;;  %v2397_v53 = vpop.f32.mrb[22].mxu1  ;;  %v3508_v20 = vpack.c.bf16 %v2663_v33, %v2661_v42  ;;  %v2766_v42 = vld [vmem:[%s5243_s11 + $0x90] sm:$0xff]  ;;  %v2767_v33 = vld [vmem:[%s5243_s11 + $0x98] sm:$0xff]  ;;  %v2768_v18 = vld [vmem:[%s5243_s11 + $0xa0] sm:$0xff] }
 0x380   : > { %v873_v54 = vadd.f32 %v872_v24, %v735_v46  ;;  %v2398_v26 = vadd.f32 %v2397_v53, %v2255_v30  ;;  %v2399_v32 = vpop.f32.mrb[23].mxu1 }
 0x381   : > { %909 = vst [vmem:[%s4862_s14 + $0x20] sm:$0xff] %v871_v55  ;;  %v2400_v28 = vadd.f32 %v2399_v32, %v2255_v30  ;;  %3509 = vmatpush1.bf16.msra.mxu1 %v3508_v20  ;;  %v2752_v20 = vld [vmem:[%s5243_s11 + $0x20] sm:$0xff] }
 0x382   : > { %910 = vst [vmem:[%s4862_s14 + $0x28] sm:$0xff] %v873_v54  ;;  %2416 = vst [vmem:[%s4862_s14 + $0xf0] sm:$0xff] %v2398_v26  ;;  %v3488_v41 = vpack.c.bf16 %v2398_v26, %v2392_v14  ;;  %v876_v25 = vpop.f32.mrb[6].mxu0 }
 0x383   : > { %2417 = vst [vmem:[%s4862_s14 + $0xf8] sm:$0xff] %v2400_v28  ;;  %v3486_v50 = vpack.c.bf16 %v2400_v28, %v2394_v49  ;;  %v877_v8 = vadd.f32 %v876_v25, %v740_v31  ;;  %v878_v44 = vpop.f32.mrb[7].mxu0 }
 0x384   : > { %v879_v52 = vadd.f32 %v878_v44, %v740_v31 }
 0x385   : > { %911 = vst [vmem:[%s4862_s14 + $0x30] sm:$0xff] %v877_v8  ;;  %v3496_v16 = vpack.c.bf16 %v877_v8, %v871_v55  ;;  %3487 = vmatprep.subr.bf16.mxu0 %v3486_v50 }
 0x386   : > { %912 = vst [vmem:[%s4862_s14 + $0x38] sm:$0xff] %v879_v52  ;;  %v3494_v35 = vpack.c.bf16 %v879_v52, %v873_v54  ;;  %v882_v38 = vpop.f32.mrb[8].mxu0  ;;  %3489 = vmatpush1.bf16.msra.mxu0 %v3488_v41 }
 0x387   : > { %v883_v21 = vadd.f32 %v882_v38, %v745_v6  ;;  %v884_v47 = vpop.f32.mrb[9].mxu0  ;;  %3491 = vmatprep.subr.bf16.mxu0 %v3490_v61 }
 0x388   : > { %v885_v10 = vadd.f32 %v884_v47, %v745_v6 }
 0x389   : > { %913 = vst [vmem:[%s4862_s14 + $0x40] sm:$0xff] %v883_v21  ;;  %3372 = vmatmul.mubr.msk.f32.vlgmr.msra.gmra.mrb[16].mxu0 %vm2022_vm11, %v2425_v9 }
 0x38a   : > { %914 = vst [vmem:[%s4862_s14 + $0x48] sm:$0xff] %v885_v10  ;;  %v888_v12 = vpop.f32.mrb[10].mxu0  ;;  %3493 = vmatpush1.bf16.msra.mxu0 %v3492_v3  ;;  %2566 = vmatprep.mubr.f32.mxu0 %v3654_v62 }
 0x38b   : > { %v889_v5 = vadd.f32 %v888_v12, %v750_v0  ;;  %v890_v34 = vpop.f32.mrb[11].mxu0  ;;  %3495 = vmatprep.subr.bf16.mxu0 %v3494_v35 }
 0x38c   : > { %v891_v37 = vadd.f32 %v890_v34, %v750_v0 }
 0x38d   : > { %915 = vst [vmem:[%s4862_s14 + $0x50] sm:$0xff] %v889_v5  ;;  %v3500_v22 = vpack.c.bf16 %v889_v5, %v883_v21 }
 0x38e   : > { %916 = vst [vmem:[%s4862_s14 + $0x58] sm:$0xff] %v891_v37  ;;  %v3498_v40 = vpack.c.bf16 %v891_v37, %v885_v10  ;;  %v894_v13 = vpop.f32.mrb[12].mxu0  ;;  %3497 = vmatpush1.bf16.msra.mxu0 %v3496_v16 }
 0x38f   : > { %v895_v11 = vadd.f32 %v894_v13, %v755_v1  ;;  %v896_v29 = vpop.f32.mrb[13].mxu0 }
 0x390   : > { %v897_v45 = vadd.f32 %v896_v29, %v755_v1  ;;  %3499 = vmatprep.subr.bf16.mxu0 %v3498_v40 }
 0x391   : > { %917 = vst [vmem:[%s4862_s14 + $0x60] sm:$0xff] %v895_v11 }
 0x392   : > { %918 = vst [vmem:[%s4862_s14 + $0x68] sm:$0xff] %v897_v45  ;;  %v900_v30 = vpop.f32.mrb[14].mxu0  ;;  %3501 = vmatpush1.bf16.msra.mxu0 %v3500_v22 }
 0x393   : > { %v901_v63 = vadd.f32 %v900_v30, %v760_v15  ;;  %v902_v58 = vpop.f32.mrb[15].mxu0 }
 0x394   : > { %v903_v43 = vadd.f32 %v902_v58, %v760_v15 }
 0x395   : > { %919 = vst [vmem:[%s4862_s14 + $0x70] sm:$0xff] %v901_v63  ;;  %v3504_v46 = vpack.c.bf16 %v901_v63, %v895_v11 }
 0x396   : > { %920 = vst [vmem:[%s4862_s14 + $0x78] sm:$0xff] %v903_v43  ;;  %v3502_v4 = vpack.c.bf16 %v903_v43, %v897_v45  ;;  %s3322_s14 = sshll.u32 %s456_s26, 9 }
 0x397   : > { %s5113_s23 = scalar_lea.vmem [#allocation3], %s3322_s14  ;;  %s3657_s14 = smov [#allocation3]  }
 0x398   : > { %3503 = vmatprep.subr.bf16.mxu0 %v3502_v4  ;;  %v2764_v4 = vld [vmem:[%s5243_s11 + $0x80] sm:$0xff] }
 0x399   : > { %3505 = vmatpush1.bf16.msra.mxu0 %v3504_v46  ;;  %v2748_v46 = vld [vmem:[%s5243_s11] sm:$0xff] }
 0x39c   : > { %3373 = vmatmul.mubr.msk.f32.vlgmr.msra.gmra.mrb[16].mxu0 %vm2022_vm11, %v921_v57  ;;  %vm2644_vm11 = vcmask 1041408   ;;  %v2749_v57 = vld [vmem:[%s5243_s11 + $0x8] sm:$0xff] }
 0x39d   : > { %2940 = vmatprep.mubr.f32.mxu0 %v3654_v62 }
 0x46f   : > { %v2568_v27 = vpop.f32.mrb[16].mxu0 }
 0x470   : > { %v2583_v60 = vadd.f32 %v2582_v56, %v2568_v27  ;;  %v2570_v36 = vpop.f32.mrb[17].mxu0  ;;  %v2769_v27 = vld [vmem:[%s5243_s11 + $0xa8] sm:$0xff] }
 0x471   : > { %v2584_v6 = vadd.f32 %v2582_v56, %v2570_v36  ;;  %v2753_v56 = vld [vmem:[%s5243_s11 + $0x28] sm:$0xff]  ;;  %v2770_v36 = vld [vmem:[%s5243_s11 + $0xb0] sm:$0xff] }
 0x472   : > { %v2590_v23 = vrot.slane %v2583_v60, 6  ;;  %v2586_v7 = vrot.slane %v2583_v60, 7  ;;  %v2598_v51 = vrot.slane %v2583_v60, 4  ;;  %v2594_v14 = vrot.slane %v2583_v60, 5 }
 0x473   : > { %v2602_v19 = vrot.slane %v2583_v60, 3  ;;  %v2615_v3 = vrot.slane %v2584_v6, 7  ;;  %v2606_v17 = vrot.slane %v2583_v60, 2  ;;  %v2619_v49 = vrot.slane %v2584_v6, 6 }
 0x474   : > { %2591 = vrot.lane.b32.xlu0 %v2590_v23, %s5383_s25  ;;  %2587 = vrot.lane.b32.xlu1 %v2586_v7, %s5384_s16  ;;  %v2610_v61 = vrot.slane %v2583_v60, 1  ;;  %v2623_v2 = vrot.slane %v2584_v6, 5  ;;  %v2627_v55 = vrot.slane %v2584_v6, 4  ;;  %v2631_v24 = vrot.slane %v2584_v6, 3  ;;  %v2755_v23 = vld [vmem:[%s5243_s11 + $0x38] sm:$0xff] }
 0x475   : > { %v2635_v53 = vrot.slane %v2584_v6, 2  ;;  %v2639_v54 = vrot.slane %v2584_v6, 1  ;;  %v2771_v7 = vld [vmem:[%s5243_s11 + $0xb8] sm:$0xff] }
 0x478   : > { %2599 = vrot.lane.b32.xlu0 %v2598_v51, %s5382_s21  ;;  %2595 = vrot.lane.b32.xlu1 %v2594_v14, %s5385_s0  ;;  %v2772_v51 = vld [vmem:[%s5243_s11 + $0xc0] sm:$0xff]  ;;  %v2757_v14 = vld [vmem:[%s5243_s11 + $0x48] sm:$0xff] }
 0x47c   : > { %2603 = vrot.lane.b32.xlu1 %v2602_v19, %s5386_s17  ;;  %2616 = vrot.lane.b32.xlu0 %v2615_v3, %s5384_s16  ;;  %v2773_v19 = vld [vmem:[%s5243_s11 + $0xc8] sm:$0xff]  ;;  %v2758_v3 = vld [vmem:[%s5243_s11 + $0x50] sm:$0xff]  ;;  %s3219_s16 = sshll.u32 %s5113_s23, 4  ;;  %s5182_s16 = int_to_ptr.vmem [resolvable:$true] %s3219_s16 }
 0x480   : > { %2607 = vrot.lane.b32.xlu1 %v2606_v17, %s5387_s22  ;;  %2620 = vrot.lane.b32.xlu0 %v2619_v49, %s5383_s25  ;;  %v2774_v17 = vld [vmem:[%s5243_s11 + $0xd0] sm:$0xff]  ;;  %v2759_v49 = vld [vmem:[%s5243_s11 + $0x58] sm:$0xff]  ;;  %s3416_s25 = sshll.u32 %s3753_s9, 13  ;;  %s5190_s9 = scalar_lea.sflag [#allocation4], %s456_s26 }
 0x484   : > { %2611 = vrot.lane.b32.xlu1 %v2610_v61, %s5388_s24  ;;  %2624 = vrot.lane.b32.xlu0 %v2623_v2, %s5385_s0  ;;  %v2775_v61 = vld [vmem:[%s5243_s11 + $0xd8] sm:$0xff]  ;;  %v2760_v2 = vld [vmem:[%s5243_s11 + $0x60] sm:$0xff] }
 0x488   : > { %2628 = vrot.lane.b32.xlu1 %v2627_v55, %s5382_s21  ;;  %2632 = vrot.lane.b32.xlu0 %v2631_v24, %s5386_s17  ;;  %v2776_v55 = vld [vmem:[%s5243_s11 + $0xe0] sm:$0xff]  ;;  %v2761_v24 = vld [vmem:[%s5243_s11 + $0x68] sm:$0xff]  ;;  %s3577_s21 = scalar_lea.vmem %s5182_s16, 8192 }
 0x489   : > { %p3578_p11 = scmp.ne.s32.totalorder %s5182_s16, %s3577_s21 }
 0x48b   : > { %p3579_p12 = pnand %p3578_p11, %p3770_p5 }
 0x48c   : > { %2636 = vrot.lane.b32.xlu1 %v2635_v53, %s5387_s22  ;;  %2640 = vrot.lane.b32.xlu0 %v2639_v54, %s5388_s24  ;;  %v2777_v53 = vld [vmem:[%s5243_s11 + $0xe8] sm:$0xff]  ;;  %v2762_v54 = vld [vmem:[%s5243_s11 + $0x70] sm:$0xff]  ;;  %s5180_s22 = scalar_lea.hbm %s5245_s13, %s3416_s25  ;;  %s3581_s25 = sshll.u32 %s3657_s14, 4  ;;  %s3582_s25 = int_to_ptr.vmem [resolvable:$false] %s3581_s25 }
 0x48d   : > { %p3580_p13 = pneg %p3579_p12  ;;  %s3583_s0 = scalar_lea.vmem %s3582_s25, 16384 }
 0x48e   : > { %p3584_p0 = scmp.lt.s32.totalorder %s5182_s16, %s3582_s25  ;;  %p3585_p1 = scmp.lt.s32.totalorder %s3583_s0, %s3577_s21 }
 0x490   : > { %p3586_p2 = por %p3585_p1, %p3584_p0 }
 0x492   : > { %p3587_p3 = pnand %p3586_p2, %p3580_p13 }
 0x4e6   : > { %v2592_v26 = vpop.permute.xlu0 %2591  ;;  %v2588_v32 = vpop.permute.xlu1 %2587 }
 0x4e7   : > { %v2643_v1 = vsel %vm2282_vm9, %v2583_v60, %v2588_v32  ;;  %v2754_v60 = vld [vmem:[%s5243_s11 + $0x30] sm:$0xff]  ;;  %v2763_v32 = vld [vmem:[%s5243_s11 + $0x78] sm:$0xff] }
 0x4e8   : > { %v2645_v50 = vsel %vm2644_vm11, %v2643_v1, %v2592_v26  ;;  %v2778_v26 = vld [vmem:[%s5243_s11 + $0xf0] sm:$0xff] }
 0x4ea   : > { %v2600_v31 = vpop.permute.xlu0 %2599  ;;  %v2596_v28 = vpop.permute.xlu1 %2595 }
 0x4eb   : > { %v2647_v8 = vsel %vm2646_vm0, %v2645_v50, %v2596_v28 }
 0x4ec   : > { %v2648_v16 = vsel %vm687_vm7, %v2647_v8, %v2600_v31  ;;  %v2779_v31 = vld [vmem:[%s5243_s11 + $0xf8] sm:$0xff] }
 0x4ee   : > { %v2604_v41 = vpop.permute.xlu1 %2603  ;;  %v2617_v25 = vpop.permute.xlu0 %2616 }
 0x4ef   : > { %v2649_v35 = vsel %vm787_vm12, %v2648_v16, %v2604_v41  ;;  %v2654_v10 = vsel %vm2282_vm9, %v2584_v6, %v2617_v25  ;;  %v2756_v6 = vld [vmem:[%s5243_s11 + $0x40] sm:$0xff] }
 0x4f2   : > { %v2608_v44 = vpop.permute.xlu1 %2607  ;;  %v2621_v52 = vpop.permute.xlu0 %2620 }
 0x4f3   : > { %v2651_v38 = vsel %vm2650_vm1, %v2649_v35, %v2608_v44  ;;  %v2655_v0 = vsel %vm2644_vm11, %v2654_v10, %v2621_v52 }
 0x4f6   : > { %v2612_v9 = vpop.permute.xlu1 %2611  ;;  %v2625_v21 = vpop.permute.xlu0 %2624 }
 0x4f7   : > { %v2653_v47 = vsel %vm2652_vm2, %v2651_v38, %v2612_v9  ;;  %v2656_v12 = vsel %vm2646_vm0, %v2655_v0, %v2625_v21 }
 0x4f8   : > { %3374 = vmatmul.mubr.msk.f32.vlgmr.msra.gmra.mrb[24].mxu1 %vm2016_vm8, %v2653_v47 }
 0x4f9   : > { %2741 = vmatprep.mubr.f32.mxu1 %v3654_v62 }
 0x4fa   : > { %v2629_v5 = vpop.permute.xlu1 %2628  ;;  %v2633_v34 = vpop.permute.xlu0 %2632 }
 0x4fb   : > { %v2657_v37 = vsel %vm687_vm7, %v2656_v12, %v2629_v5 }
 0x4fc   : > { %v2658_v22 = vsel %vm787_vm12, %v2657_v37, %v2633_v34 }
 0x4fe   : > { %v2637_v40 = vpop.permute.xlu1 %2636  ;;  %v2641_v13 = vpop.permute.xlu0 %2640 }
 0x4ff   : > { %v2659_v11 = vsel %vm2650_vm1, %v2658_v22, %v2637_v40 }
 0x500   : > { %v2660_v29 = vsel %vm2652_vm2, %v2659_v11, %v2641_v13 }
 0x501   : > { %3375 = vmatmul.mubr.msk.f32.gmra.mrb[26].mxu1 %vm2016_vm8, %v2660_v29 }
 0x502   : > { %3036 = vmatprep.mubr.f32.mxu1 %v3654_v62 }
 0x5cb   : > { %v2737_v45 = vpop.f32.mrb[24].mxu1 }
 0x5cc   : > { %v2739_v15 = vpop.f32.mrb[25].mxu1 }
 0x5d4   : > { %v2743_v30 = vpop.f32.mrb[26].mxu1 }
 0x5d5   : > { %v3512_v63 = vpack.c.bf16 %v2743_v30, %v2737_v45  ;;  %v2745_v58 = vpop.f32.mrb[27].mxu1 }
 0x5d6   : > { %v3510_v43 = vpack.c.bf16 %v2745_v58, %v2739_v15 }
 0x5d8   : > { %3511 = vmatprep.subr.bf16.mxu0 %v3510_v43  ;;  %3514 = vmatprep.subr.bf16.mxu1 %v3510_v43 }
 0x5d9   : > { %3513 = vmatpush1.bf16.msra.mxu0 %v3512_v63  ;;  %3515 = vmatpush1.bf16.msra.mxu1 %v3512_v63 }
 0x5dc   : > { %3376 = vmatmul.mubr.msk.f32.vlgmr.msra.gmra.mrb[18].mxu0 %vm2016_vm8, %v2748_v46  ;;  %3392 = vmatmul.mubr.msk.f32.vlgmr.msra.gmra.mrb[28].mxu1 %vm2016_vm8, %v2764_v4 }
 0x5dd   : > { %2946 = vmatprep.mubr.f32.mxu0 %v3654_v62  ;;  %3042 = vmatprep.mubr.f32.mxu1 %v3654_v62 }
 0x5e0   : > { %3377 = vmatmul.mubr.msk.f32.gmra.mrb[20].mxu0 %vm2016_vm8, %v2749_v57  ;;  %3393 = vmatmul.mubr.msk.f32.gmra.mrb[30].mxu1 %vm2016_vm8, %v2765_v39 }
 0x5e1   : > { %2952 = vmatprep.mubr.f32.mxu0 %v3654_v62  ;;  %3048 = vmatprep.mubr.f32.mxu1 %v3654_v62 }
 0x5e4   : > { %3378 = vmatmul.mubr.msk.f32.gmra.mrb[22].mxu0 %vm2016_vm8, %v2750_v59  ;;  %3394 = vmatmul.mubr.msk.f32.gmra.mrb[32].mxu1 %vm2016_vm8, %v2766_v42 }
 0x5e5   : > { %2958 = vmatprep.mubr.f32.mxu0 %v3654_v62  ;;  %3054 = vmatprep.mubr.f32.mxu1 %v3654_v62 }
 0x5e8   : > { %3379 = vmatmul.mubr.msk.f32.gmra.mrb[24].mxu0 %vm2016_vm8, %v2751_v48  ;;  %3395 = vmatmul.mubr.msk.f32.gmra.mrb[34].mxu1 %vm2016_vm8, %v2767_v33 }
 0x5e9   : > { %2964 = vmatprep.mubr.f32.mxu0 %v3654_v62  ;;  %3060 = vmatprep.mubr.f32.mxu1 %v3654_v62 }
 0x5ec   : > { %3380 = vmatmul.mubr.msk.f32.gmra.mrb[26].mxu0 %vm2016_vm8, %v2752_v20  ;;  %3396 = vmatmul.mubr.msk.f32.gmra.mrb[36].mxu1 %vm2016_vm8, %v2768_v18 }
 0x5ed   : > { %2970 = vmatprep.mubr.f32.mxu0 %v3654_v62  ;;  %3066 = vmatprep.mubr.f32.mxu1 %v3654_v62 }
 0x5f0   : > { %3381 = vmatmul.mubr.msk.f32.gmra.mrb[28].mxu0 %vm2016_vm8, %v2753_v56  ;;  %3397 = vmatmul.mubr.msk.f32.gmra.mrb[38].mxu1 %vm2016_vm8, %v2769_v27 }
 0x5f1   : > { %2976 = vmatprep.mubr.f32.mxu0 %v3654_v62  ;;  %3072 = vmatprep.mubr.f32.mxu1 %v3654_v62 }
 0x5f4   : > { %3382 = vmatmul.mubr.msk.f32.gmra.mrb[30].mxu0 %vm2016_vm8, %v2754_v60  ;;  %3398 = vmatmul.mubr.msk.f32.gmra.mrb[40].mxu1 %vm2016_vm8, %v2770_v36 }
 0x5f5   : > { %2982 = vmatprep.mubr.f32.mxu0 %v3654_v62  ;;  %3078 = vmatprep.mubr.f32.mxu1 %v3654_v62 }
 0x5f8   : > { %3383 = vmatmul.mubr.msk.f32.gmra.mrb[32].mxu0 %vm2016_vm8, %v2755_v23  ;;  %3399 = vmatmul.mubr.msk.f32.gmra.mrb[42].mxu1 %vm2016_vm8, %v2771_v7 }
 0x5f9   : > { %2988 = vmatprep.mubr.f32.mxu0 %v3654_v62  ;;  %3084 = vmatprep.mubr.f32.mxu1 %v3654_v62 }
 0x5fc   : > { %3384 = vmatmul.mubr.msk.f32.gmra.mrb[34].mxu0 %vm2016_vm8, %v2756_v6  ;;  %3400 = vmatmul.mubr.msk.f32.gmra.mrb[44].mxu1 %vm2016_vm8, %v2772_v51 }
 0x5fd   : > { %2994 = vmatprep.mubr.f32.mxu0 %v3654_v62  ;;  %3090 = vmatprep.mubr.f32.mxu1 %v3654_v62 }
 0x600   : > { %3385 = vmatmul.mubr.msk.f32.gmra.mrb[36].mxu0 %vm2016_vm8, %v2757_v14  ;;  %3401 = vmatmul.mubr.msk.f32.gmra.mrb[46].mxu1 %vm2016_vm8, %v2773_v19 }
 0x601   : > { %3000 = vmatprep.mubr.f32.mxu0 %v3654_v62  ;;  %3096 = vmatprep.mubr.f32.mxu1 %v3654_v62 }
 0x604   : > { %3386 = vmatmul.mubr.msk.f32.gmra.mrb[38].mxu0 %vm2016_vm8, %v2758_v3  ;;  %3402 = vmatmul.mubr.msk.f32.gmra.mrb[48].mxu1 %vm2016_vm8, %v2774_v17 }
 0x605   : > { %3006 = vmatprep.mubr.f32.mxu0 %v3654_v62  ;;  %3102 = vmatprep.mubr.f32.mxu1 %v3654_v62 }
 0x608   : > { %3387 = vmatmul.mubr.msk.f32.gmra.mrb[40].mxu0 %vm2016_vm8, %v2759_v49  ;;  %3403 = vmatmul.mubr.msk.f32.gmra.mrb[50].mxu1 %vm2016_vm8, %v2775_v61 }
 0x609   : > { %3012 = vmatprep.mubr.f32.mxu0 %v3654_v62  ;;  %3108 = vmatprep.mubr.f32.mxu1 %v3654_v62 }
 0x60c   : > { %3388 = vmatmul.mubr.msk.f32.gmra.mrb[42].mxu0 %vm2016_vm8, %v2760_v2  ;;  %3404 = vmatmul.mubr.msk.f32.gmra.mrb[52].mxu1 %vm2016_vm8, %v2776_v55 }
 0x60d   : > { %3018 = vmatprep.mubr.f32.mxu0 %v3654_v62  ;;  %3114 = vmatprep.mubr.f32.mxu1 %v3654_v62 }
 0x610   : > { %3389 = vmatmul.mubr.msk.f32.gmra.mrb[44].mxu0 %vm2016_vm8, %v2761_v24  ;;  %3405 = vmatmul.mubr.msk.f32.gmra.mrb[54].mxu1 %vm2016_vm8, %v2777_v53 }
 0x611   : > { %3024 = vmatprep.mubr.f32.mxu0 %v3654_v62  ;;  %3120 = vmatprep.mubr.f32.mxu1 %v3654_v62 }
 0x614   : > { %3390 = vmatmul.mubr.msk.f32.gmra.mrb[46].mxu0 %vm2016_vm8, %v2762_v54  ;;  %3406 = vmatmul.mubr.msk.f32.gmra.mrb[56].mxu1 %vm2016_vm8, %v2778_v26 }
 0x615   : > { %3030 = vmatprep.mubr.f32.mxu0 %v3654_v62  ;;  %3126 = vmatprep.mubr.f32.mxu1 %v3654_v62 }
 0x618   : > { %3391 = vmatmul.mubr.msk.f32.gmra.mrb[48].mxu0 %vm2016_vm8, %v2763_v32  ;;  %3407 = vmatmul.mubr.msk.f32.gmra.mrb[58].mxu1 %vm2016_vm8, %v2779_v31 }
 0x6af   : > { %v2942_v28 = vpop.f32.mrb[18].mxu0  ;;  %v3038_v1 = vpop.f32.mrb[28].mxu1 }
 0x6b0   : > { %3133 = vst [vmem:[%s5113_s23] sm:$0xff] %v2942_v28  ;;  %3165 = vst [vmem:[%s5113_s23 + $0x100] sm:$0xff] %v3038_v1  ;;  %v2944_v62 = vpop.f32.mrb[19].mxu0  ;;  %v3040_v41 = vpop.f32.mrb[29].mxu1 }
 0x6b1   : > { %3134 = vst [vmem:[%s5113_s23 + $0x8] sm:$0xff] %v2944_v62  ;;  %3166 = vst [vmem:[%s5113_s23 + $0x108] sm:$0xff] %v3040_v41 }
 0x6b3   : > { %v2948_v25 = vpop.f32.mrb[20].mxu0  ;;  %v3044_v50 = vpop.f32.mrb[30].mxu1 }
 0x6b4   : > { %3135 = vst [vmem:[%s5113_s23 + $0x10] sm:$0xff] %v2948_v25  ;;  %3167 = vst [vmem:[%s5113_s23 + $0x110] sm:$0xff] %v3044_v50  ;;  %v2950_v8 = vpop.f32.mrb[21].mxu0  ;;  %v3046_v44 = vpop.f32.mrb[31].mxu1 }
 0x6b5   : > { %3136 = vst [vmem:[%s5113_s23 + $0x18] sm:$0xff] %v2950_v8  ;;  %3168 = vst [vmem:[%s5113_s23 + $0x118] sm:$0xff] %v3046_v44 }
 0x6b7   : > { %v2954_v52 = vpop.f32.mrb[22].mxu0  ;;  %v3050_v16 = vpop.f32.mrb[32].mxu1 }
 0x6b8   : > { %3137 = vst [vmem:[%s5113_s23 + $0x20] sm:$0xff] %v2954_v52  ;;  %3169 = vst [vmem:[%s5113_s23 + $0x120] sm:$0xff] %v3050_v16  ;;  %v2956_v35 = vpop.f32.mrb[23].mxu0  ;;  %v3052_v38 = vpop.f32.mrb[33].mxu1 }
 0x6b9   : > { %3138 = vst [vmem:[%s5113_s23 + $0x28] sm:$0xff] %v2956_v35  ;;  %3170 = vst [vmem:[%s5113_s23 + $0x128] sm:$0xff] %v3052_v38 }
 0x6bb   : > { %v2960_v9 = vpop.f32.mrb[24].mxu0  ;;  %v3056_v21 = vpop.f32.mrb[34].mxu1 }
 0x6bc   : > { %3139 = vst [vmem:[%s5113_s23 + $0x30] sm:$0xff] %v2960_v9  ;;  %3171 = vst [vmem:[%s5113_s23 + $0x130] sm:$0xff] %v3056_v21  ;;  %v2962_v47 = vpop.f32.mrb[25].mxu0  ;;  %v3058_v10 = vpop.f32.mrb[35].mxu1 }
 0x6bd   : > { %3140 = vst [vmem:[%s5113_s23 + $0x38] sm:$0xff] %v2962_v47  ;;  %3172 = vst [vmem:[%s5113_s23 + $0x138] sm:$0xff] %v3058_v10 }
 0x6bf   : > { %v2966_v0 = vpop.f32.mrb[26].mxu0  ;;  %v3062_v12 = vpop.f32.mrb[36].mxu1 }
 0x6c0   : > { %3141 = vst [vmem:[%s5113_s23 + $0x40] sm:$0xff] %v2966_v0  ;;  %3173 = vst [vmem:[%s5113_s23 + $0x140] sm:$0xff] %v3062_v12  ;;  %v2968_v5 = vpop.f32.mrb[27].mxu0  ;;  %v3064_v34 = vpop.f32.mrb[37].mxu1 }
 0x6c1   : > { %3142 = vst [vmem:[%s5113_s23 + $0x48] sm:$0xff] %v2968_v5  ;;  %3174 = vst [vmem:[%s5113_s23 + $0x148] sm:$0xff] %v3064_v34 }
 0x6c3   : > { %v2972_v37 = vpop.f32.mrb[28].mxu0  ;;  %v3068_v22 = vpop.f32.mrb[38].mxu1 }
 0x6c4   : > { %3143 = vst [vmem:[%s5113_s23 + $0x50] sm:$0xff] %v2972_v37  ;;  %3175 = vst [vmem:[%s5113_s23 + $0x150] sm:$0xff] %v3068_v22  ;;  %v2974_v40 = vpop.f32.mrb[29].mxu0  ;;  %v3070_v13 = vpop.f32.mrb[39].mxu1 }
 0x6c5   : > { %3144 = vst [vmem:[%s5113_s23 + $0x58] sm:$0xff] %v2974_v40  ;;  %3176 = vst [vmem:[%s5113_s23 + $0x158] sm:$0xff] %v3070_v13 }
 0x6c7   : > { %v2978_v11 = vpop.f32.mrb[30].mxu0  ;;  %v3074_v29 = vpop.f32.mrb[40].mxu1 }
 0x6c8   : > { %3145 = vst [vmem:[%s5113_s23 + $0x60] sm:$0xff] %v2978_v11  ;;  %3177 = vst [vmem:[%s5113_s23 + $0x160] sm:$0xff] %v3074_v29  ;;  %v2980_v45 = vpop.f32.mrb[31].mxu0  ;;  %v3076_v15 = vpop.f32.mrb[41].mxu1 }
 0x6c9   : > { %3146 = vst [vmem:[%s5113_s23 + $0x68] sm:$0xff] %v2980_v45  ;;  %3178 = vst [vmem:[%s5113_s23 + $0x168] sm:$0xff] %v3076_v15 }
 0x6cb   : > { %v2984_v30 = vpop.f32.mrb[32].mxu0  ;;  %v3080_v63 = vpop.f32.mrb[42].mxu1 }
 0x6cc   : > { %3147 = vst [vmem:[%s5113_s23 + $0x70] sm:$0xff] %v2984_v30  ;;  %3179 = vst [vmem:[%s5113_s23 + $0x170] sm:$0xff] %v3080_v63  ;;  %v2986_v58 = vpop.f32.mrb[33].mxu0  ;;  %v3082_v43 = vpop.f32.mrb[43].mxu1 }
 0x6cd   : > { %3148 = vst [vmem:[%s5113_s23 + $0x78] sm:$0xff] %v2986_v58  ;;  %3180 = vst [vmem:[%s5113_s23 + $0x178] sm:$0xff] %v3082_v43 }
 0x6cf   : > { %v2990_v46 = vpop.f32.mrb[34].mxu0  ;;  %v3086_v4 = vpop.f32.mrb[44].mxu1 }
 0x6d0   : > { %3149 = vst [vmem:[%s5113_s23 + $0x80] sm:$0xff] %v2990_v46  ;;  %3181 = vst [vmem:[%s5113_s23 + $0x180] sm:$0xff] %v3086_v4  ;;  %v2992_v57 = vpop.f32.mrb[35].mxu0  ;;  %v3088_v39 = vpop.f32.mrb[45].mxu1 }
 0x6d1   : > { %3150 = vst [vmem:[%s5113_s23 + $0x88] sm:$0xff] %v2992_v57  ;;  %3182 = vst [vmem:[%s5113_s23 + $0x188] sm:$0xff] %v3088_v39 }
 0x6d3   : > { %v2996_v59 = vpop.f32.mrb[36].mxu0  ;;  %v3092_v42 = vpop.f32.mrb[46].mxu1 }
 0x6d4   : > { %3151 = vst [vmem:[%s5113_s23 + $0x90] sm:$0xff] %v2996_v59  ;;  %3183 = vst [vmem:[%s5113_s23 + $0x190] sm:$0xff] %v3092_v42  ;;  %v2998_v48 = vpop.f32.mrb[37].mxu0  ;;  %v3094_v33 = vpop.f32.mrb[47].mxu1 }
 0x6d5   : > { %3152 = vst [vmem:[%s5113_s23 + $0x98] sm:$0xff] %v2998_v48  ;;  %3184 = vst [vmem:[%s5113_s23 + $0x198] sm:$0xff] %v3094_v33 }
 0x6d7   : > { %v3002_v20 = vpop.f32.mrb[38].mxu0  ;;  %v3098_v18 = vpop.f32.mrb[48].mxu1 }
 0x6d8   : > { %3153 = vst [vmem:[%s5113_s23 + $0xa0] sm:$0xff] %v3002_v20  ;;  %3185 = vst [vmem:[%s5113_s23 + $0x1a0] sm:$0xff] %v3098_v18  ;;  %v3004_v56 = vpop.f32.mrb[39].mxu0  ;;  %v3100_v27 = vpop.f32.mrb[49].mxu1 }
 0x6d9   : > { %3154 = vst [vmem:[%s5113_s23 + $0xa8] sm:$0xff] %v3004_v56  ;;  %3186 = vst [vmem:[%s5113_s23 + $0x1a8] sm:$0xff] %v3100_v27 }
 0x6db   : > { %v3008_v60 = vpop.f32.mrb[40].mxu0  ;;  %v3104_v36 = vpop.f32.mrb[50].mxu1 }
 0x6dc   : > { %3155 = vst [vmem:[%s5113_s23 + $0xb0] sm:$0xff] %v3008_v60  ;;  %3187 = vst [vmem:[%s5113_s23 + $0x1b0] sm:$0xff] %v3104_v36  ;;  %v3010_v23 = vpop.f32.mrb[41].mxu0  ;;  %v3106_v7 = vpop.f32.mrb[51].mxu1 }
 0x6dd   : > { %3156 = vst [vmem:[%s5113_s23 + $0xb8] sm:$0xff] %v3010_v23  ;;  %3188 = vst [vmem:[%s5113_s23 + $0x1b8] sm:$0xff] %v3106_v7 }
 0x6df   : > { %v3014_v6 = vpop.f32.mrb[42].mxu0  ;;  %v3110_v51 = vpop.f32.mrb[52].mxu1 }
 0x6e0   : > { %3157 = vst [vmem:[%s5113_s23 + $0xc0] sm:$0xff] %v3014_v6  ;;  %3189 = vst [vmem:[%s5113_s23 + $0x1c0] sm:$0xff] %v3110_v51  ;;  %v3016_v14 = vpop.f32.mrb[43].mxu0  ;;  %v3112_v19 = vpop.f32.mrb[53].mxu1 }
 0x6e1   : > { %3158 = vst [vmem:[%s5113_s23 + $0xc8] sm:$0xff] %v3016_v14  ;;  %3190 = vst [vmem:[%s5113_s23 + $0x1c8] sm:$0xff] %v3112_v19 }
 0x6e3   : > { %v3020_v3 = vpop.f32.mrb[44].mxu0  ;;  %v3116_v17 = vpop.f32.mrb[54].mxu1 }
 0x6e4   : > { %3159 = vst [vmem:[%s5113_s23 + $0xd0] sm:$0xff] %v3020_v3  ;;  %3191 = vst [vmem:[%s5113_s23 + $0x1d0] sm:$0xff] %v3116_v17  ;;  %v3022_v49 = vpop.f32.mrb[45].mxu0  ;;  %v3118_v61 = vpop.f32.mrb[55].mxu1 }
 0x6e5   : > { %3160 = vst [vmem:[%s5113_s23 + $0xd8] sm:$0xff] %v3022_v49  ;;  %3192 = vst [vmem:[%s5113_s23 + $0x1d8] sm:$0xff] %v3118_v61 }
 0x6e7   : > { %v3026_v2 = vpop.f32.mrb[46].mxu0  ;;  %v3122_v55 = vpop.f32.mrb[56].mxu1 }
 0x6e8   : > { %3161 = vst [vmem:[%s5113_s23 + $0xe0] sm:$0xff] %v3026_v2  ;;  %3193 = vst [vmem:[%s5113_s23 + $0x1e0] sm:$0xff] %v3122_v55  ;;  %v3028_v24 = vpop.f32.mrb[47].mxu0  ;;  %v3124_v53 = vpop.f32.mrb[57].mxu1 }
 0x6e9   : > { %3162 = vst [vmem:[%s5113_s23 + $0xe8] sm:$0xff] %v3028_v24  ;;  %3194 = vst [vmem:[%s5113_s23 + $0x1e8] sm:$0xff] %v3124_v53 }
 0x6eb   : > { %v3032_v54 = vpop.f32.mrb[48].mxu0  ;;  %v3128_v26 = vpop.f32.mrb[58].mxu1 }
 0x6ec   : > { %3163 = vst [vmem:[%s5113_s23 + $0xf0] sm:$0xff] %v3032_v54  ;;  %3195 = vst [vmem:[%s5113_s23 + $0x1f0] sm:$0xff] %v3128_v26  ;;  %v3034_v32 = vpop.f32.mrb[49].mxu0  ;;  %v3130_v31 = vpop.f32.mrb[59].mxu1 }
 0x6ed   : > { %3164 = vst [vmem:[%s5113_s23 + $0xf8] sm:$0xff] %v3034_v32  ;;  %3196 = vst [vmem:[%s5113_s23 + $0x1f8] sm:$0xff] %v3130_v31 }
 0x6ee   : > { %3590 = shalt.err (!%p3587_p3)
}
 0x6ef   : > { %s3591_s26 = scalar_lea.hbm %s5180_s22, 8192  ;;  %s3595_s14 = scalar_lea.hbm %s5245_s13, 16384 }
 0x6f0   : > { %p3592_p4 = scmp.ne.s32.totalorder %s5180_s22, %s3591_s26  ;;  %p3596_p9 = scmp.lt.u32.totalorder %s5180_s22, %s5245_s13 }
 0x6f1   : > { %p3597_p10 = scmp.lt.u32.totalorder %s3595_s14, %s3591_s26  ;;  %p3599_p12 = scmp.lt.u32.totalorder %s3591_s26, %s5180_s22 }
 0x6f2   : > { %p3593_p7 = pnand %p3592_p4, %p3770_p5 }
 0x6f3   : > { %p3598_p11 = por %p3597_p10, %p3596_p9 }
 0x6f4   : > { %p3594_p8 = pneg %p3593_p7 }
 0x6f5   : > { %p3600_p13 = por %p3599_p12, %p3598_p11 }
 0x6f7   : > { %p3601_p0 = pnand %p3600_p13, %p3594_p8 }
 0x6f9   : > { %3604 = shalt.err (!%p3601_p0)
}
 0x6fa   : > { %s3658_s21 = smov 256  }
 0x6fb   : > { %3518 = dma.vmem_to_hbm [thread:$0]  (%p3770_p5), %s5182_s16, 8192, %s5180_s22, %s5190_s9, %s3658_s21, %s3658_s21, %s5388_s24  }
 0x6fc PF: > { %p3524_p1 = scmp.ge.s32.totalorder %s3639_s30, 2  ;;  %s3242_s1 = sand.u32 1, %s3627_s27  }
 0x6fd   : > { %s3243_s0 = scalar_lea.sflag [#allocation4], %s3242_s1 }
 0x6fe   : > { %p3521_p2 = pnand %p3524_p1, %p3774_p6 }
 0x700   : > { %3622 = dma.done.wait (!%p3521_p2), %s3243_s0, 8192  }
 0x701   : > { %3624 = vsyncadd (!%p3521_p2), %s3243_s0, 4294959104  ;;  %p26_p3 = scmp.ge.s32.totalorder %s3757_s15, 4   ;;  %s5389_s27 = smov %s3631_s28 }
 0x702   : > { %s5390_s28 = smov %s3635_s29  ;;  %s5391_s29 = smov %s3768_s18 }
 0x703   : > { %s5392_s30 = smov %s3757_s15  ;;  %28 = sbr.rel (!%p26_p3) target bundleno = 6 (0x6), region = 125 }
 0x70a   :  { %3248 = vsyncpa [#allocation4], 1 }
 0x70b   :  { %3250 = vsyncpa [#allocation4 + $0x1], 1 }

</bundles_post_ra>
